<compile_context>
chip_gen: v6e
topology: v6e:2x2x1
jax: 0.10.0
libtpu: 0.0.40
codegen_flags: <defaults>
</compile_context>

<pallas_src>
import jax
import jax.numpy as jnp
from jax.experimental import pallas as pl
from jax.experimental.pallas import tpu as pltpu

# ----------------------------- configuration ------------------------------
B = 2            # batch
T = 8            # target sequence length
S = 16           # memory (encoder output) sequence length
E = 32           # embedding size
NHEAD = 4        # attention heads
DH = E // NHEAD  # head dim
G = NHEAD * B    # (head, batch) groups used by the batched score/ctx matmuls
FF = 64          # feed-forward hidden dim
NUM_LAYERS = 2
EPS = 1e-5       # LayerNorm eps (PyTorch default)
CDT = jnp.bfloat16   # MXU operand dtype (accumulation stays f32)
NEG = -1e30      # finite additive mask value (avoids inf-inf NaN)

# row indices inside the packed per-layer "vecs" tensor (see prepare_kernel_params)
(R_SA_BQ, R_SA_BK, R_SA_BV, R_SA_BO,
 R_CA_BQ, R_CA_BK, R_CA_BV, R_CA_BO,
 R_FF_B2,
 R_LN1_G, R_LN1_B, R_LN2_G, R_LN2_B, R_LN3_G, R_LN3_B) = range(15)
N_VEC_ROWS = 15


# --------------------------- in-kernel helpers -----------------------------
def _layer_norm(x, g, b):
    mu = jnp.mean(x, axis=-1, keepdims=True)
    var = jnp.mean(jnp.square(x - mu), axis=-1, keepdims=True)
    return (x - mu) * jax.lax.rsqrt(var + EPS) * g + b


def _split_heads(x2d, seq):
    # batch-major (B*seq, E) -> (NHEAD*B, seq, DH); group g = h*B + b.
    # Only static lane slices + leading-dim stack/reshape (no lane-dim reshapes).
    heads = [x2d[:, h * DH:(h + 1) * DH] for h in range(NHEAD)]    # (B*seq, DH) each
    xh = jnp.stack(heads, axis=0)                                  # (NHEAD, B*seq, DH)
    return xh.reshape(NHEAD * B, seq, DH)                          # vreg-boundary split


def _merge_heads(ctx):
    # (NHEAD*B, T, DH) -> batch-major (B*T, E); heads concatenated along lanes.
    ctx3 = ctx.reshape(NHEAD, B * T, DH)
    return jnp.concatenate([ctx3[h] for h in range(NHEAD)], axis=-1)


def _attend(q, k, v, mask):
    # q: (G, Tq, DH), k/v: (G, Tk, DH) f32.  Softmax scale already folded into q.
    s = jax.lax.dot_general(q.astype(CDT), k.astype(CDT),
                            (((2,), (2,)), ((0,), (0,))),
                            preferred_element_type=jnp.float32)    # (G, Tq, Tk)
    if mask is not None:
        s = s + mask
    s = s - jnp.max(s, axis=-1, keepdims=True)
    p = jnp.exp(s)
    # EUP approx reciprocal: ~1e-3 rel error, fine for eval-mode inference.
    p = p * pl.reciprocal(jnp.sum(p, axis=-1, keepdims=True), approx=True)
    return jax.lax.dot_general(p.astype(CDT), v.astype(CDT),
                               (((2,), (1,)), ((0,), (0,))),
                               preferred_element_type=jnp.float32)  # (G, Tq, DH)


# ------------------------------ fused kernel -------------------------------
def fused_decoder_kernel(tgt_ref, mem_ref, attn_w_ref, ffn_w1_ref, ffn_w2_ref,
                         ffn_b1_ref, vecs_ref, fnorm_ref, out_ref):
    x = tgt_ref[...]                       # (B*T, E) f32 batch-major residual stream
    mem_bf = mem_ref[...].astype(CDT)      # (B*S, E)

    attn_w = attn_w_ref[...]               # (L, 2, E, 4E) bf16
    ffn_w1 = ffn_w1_ref[...]               # (L, E, FF)    bf16
    ffn_w2 = ffn_w2_ref[...]               # (L, FF, E)    bf16
    ffn_b1 = ffn_b1_ref[...]               # (L, 1, FF)    f32
    vecs = vecs_ref[...]                   # (L, 15, E)    f32

    # causal tgt_mask built in-kernel (no DMA); finite NEG => no NaN from inf-inf.
    row = jax.lax.broadcasted_iota(jnp.int32, (T, T), 0)
    col = jax.lax.broadcasted_iota(jnp.int32, (T, T), 1)
    causal = jnp.where(col <= row, 0.0, NEG).astype(jnp.float32)

    for l in range(NUM_LAYERS):            # unrolled; residual never leaves VMEM
        vec = vecs[l]                      # (15, E)

        # --------------- self-attention + add & norm (dropout = identity) ---------------
        w = attn_w[l, 0]                   # (E, 4E): [Wq^T*scale | Wk^T | Wv^T | Wo^T]
        qkv = jnp.dot(x.astype(CDT), w[:, :3 * E],
                      preferred_element_type=jnp.float32)                 # (B*T, 3E)
        q = _split_heads(qkv[:, 0 * E:1 * E] + vec[R_SA_BQ:R_SA_BQ + 1], T)
        k = _split_heads(qkv[:, 1 * E:2 * E] + vec[R_SA_BK:R_SA_BK + 1], T)
        v = _split_heads(qkv[:, 2 * E:3 * E] + vec[R_SA_BV:R_SA_BV + 1], T)
        o = _merge_heads(_attend(q, k, v, causal))                         # (B*T, E)
        sa = jnp.dot(o.astype(CDT), w[:, 3 * E:],
                     preferred_element_type=jnp.float32) + vec[R_SA_BO:R_SA_BO + 1]
        x = _layer_norm(x + sa, vec[R_LN1_G:R_LN1_G + 1], vec[R_LN1_B:R_LN1_B + 1])

        # --------------- cross-attention over encoder memory (no mask) ---------------
        w = attn_w[l, 1]
        qx = jnp.dot(x.astype(CDT), w[:, :E],
                     preferred_element_type=jnp.float32)                  # (B*T, E)
        kvm = jnp.dot(mem_bf, w[:, E:3 * E],
                      preferred_element_type=jnp.float32)                 # (B*S, 2E)
        q = _split_heads(qx + vec[R_CA_BQ:R_CA_BQ + 1], T)
        k = _split_heads(kvm[:, :E] + vec[R_CA_BK:R_CA_BK + 1], S)
        v = _split_heads(kvm[:, E:] + vec[R_CA_BV:R_CA_BV + 1], S)
        o = _merge_heads(_attend(q, k, v, None))
        ca = jnp.dot(o.astype(CDT), w[:, 3 * E:],
                     preferred_element_type=jnp.float32) + vec[R_CA_BO:R_CA_BO + 1]
        x = _layer_norm(x + ca, vec[R_LN2_G:R_LN2_G + 1], vec[R_LN2_B:R_LN2_B + 1])

        # --------------- feed-forward (ReLU, PyTorch default) ---------------
        h = jnp.dot(x.astype(CDT), ffn_w1[l],
                    preferred_element_type=jnp.float32) + ffn_b1[l]
        h = jnp.maximum(h, 0.0)
        f = jnp.dot(h.astype(CDT), ffn_w2[l],
                    preferred_element_type=jnp.float32) + vec[R_FF_B2:R_FF_B2 + 1]
        x = _layer_norm(x + f, vec[R_LN3_G:R_LN3_G + 1], vec[R_LN3_B:R_LN3_B + 1])

    fn = fnorm_ref[...]                    # (2, E): final LayerNorm gamma / beta
    out_ref[...] = _layer_norm(x, fn[0:1], fn[1:2])


# ------------------------------- wrapper ------------------------------------
@jax.jit
def transformer_decoder_pallas(tgt, memory, kernel_params):
    """tgt: (T, B, E), memory: (S, B, E) -- PyTorch batch_first=False layout."""
    # lane-dense 2-D, batch-major kernel I/O; relayout done by XLA in the wrapper.
    tgt2d = jnp.transpose(tgt, (1, 0, 2)).reshape(B * T, E)
    mem2d = jnp.transpose(memory, (1, 0, 2)).reshape(B * S, E)
    inputs = (tgt2d, mem2d) + tuple(kernel_params)
    out2d = pl.pallas_call(
        fused_decoder_kernel,
        out_shape=jax.ShapeDtypeStruct((B * T, E), jnp.float32),
        in_specs=[pl.BlockSpec(memory_space=pltpu.MemorySpace.VMEM) for _ in inputs],
        out_specs=pl.BlockSpec(memory_space=pltpu.MemorySpace.VMEM),
        compiler_params=pltpu.CompilerParams(vmem_limit_bytes=32 * 1024 * 1024),
    )(*inputs)
    return jnp.transpose(out2d.reshape(B, T, E), (1, 0, 2))


# ----------------------- host-side parameter packing ------------------------
def prepare_kernel_params(layer_params, final_g, final_b):
    """Pack & pre-transpose weights once on the host:
      attn_w : (L, 2, E, 4E) bf16  per attn type: [Wq^T*scale | Wk^T | Wv^T | Wo^T]
      ffn_w1 : (L, E, FF) bf16,  ffn_w2: (L, FF, E) bf16,  ffn_b1: (L, 1, FF) f32
      vecs   : (L, 15, E) f32  (attn biases, ffn b2, all LayerNorm gammas/betas)
      fnorm  : (2, E) f32      (final LayerNorm gamma / beta)
    1/sqrt(DH) is folded into the Q projection weight & bias."""
    scale = 1.0 / (DH ** 0.5)
    attn_w, ffn_w1, ffn_w2, ffn_b1, vecs = [], [], [], [], []
    for p in layer_params:
        per_attn = []
        for pre in ("sa", "ca"):
            in_w, out_w = p[pre + "_in_w"], p[pre + "_out_w"]
            per_attn.append(jnp.concatenate(
                [(in_w[:E] * scale).T, in_w[E:2 * E].T, in_w[2 * E:].T, out_w.T],
                axis=1))                                           # (E, 4E)
        attn_w.append(jnp.stack(per_attn, axis=0))                 # (2, E, 4E)
        ffn_w1.append(p["l1_w"].T)                                 # (E, FF)
        ffn_w2.append(p["l2_w"].T)                                 # (FF, E)
        ffn_b1.append(p["l1_b"].reshape(1, FF))
        sab, cab = p["sa_in_b"], p["ca_in_b"]
        vecs.append(jnp.stack([
            sab[:E] * scale, sab[E:2 * E], sab[2 * E:], p["sa_out_b"],
            cab[:E] * scale, cab[E:2 * E], cab[2 * E:], p["ca_out_b"],
            p["l2_b"],
            p["ln1_g"], p["ln1_b"], p["ln2_g"], p["ln2_b"], p["ln3_g"], p["ln3_b"],
        ], axis=0))                                                # (15, E)
    return (jnp.stack(attn_w).astype(CDT),
            jnp.stack(ffn_w1).astype(CDT),
            jnp.stack(ffn_w2).astype(CDT),
            jnp.stack(ffn_b1).astype(jnp.float32),
            jnp.stack(vecs).astype(jnp.float32),
            jnp.stack([final_g, final_b]).astype(jnp.float32))


# --------------------------- reference (plain JAX) ---------------------------
def _ref_ln(x, g, b):
    mu = jnp.mean(x, axis=-1, keepdims=True)
    var = jnp.mean(jnp.square(x - mu), axis=-1, keepdims=True)
    return (x - mu) * jax.lax.rsqrt(var + EPS) * g + b


def _ref_mha(q_in, kv_in, mask, in_w, in_b, out_w, out_b):
    wq, wk, wv = in_w[0:E], in_w[E:2 * E], in_w[2 * E:3 * E]
    bq, bk, bv = in_b[0:E], in_b[E:2 * E], in_b[2 * E:3 * E]
    q = q_in @ wq.T + bq
    k = kv_in @ wk.T + bk
    v = kv_in @ wv.T + bv
    scale = 1.0 / (DH ** 0.5)
    heads = []
    for h in range(NHEAD):
        sl = slice(h * DH, (h + 1) * DH)
        s = (q[:, sl] * scale) @ k[:, sl].T
        if mask is not None:
            s = s + mask
        heads.append(jax.nn.softmax(s, axis=-1) @ v[:, sl])
    return jnp.concatenate(heads, axis=-1) @ out_w.T + out_b


def _ref_layer(x, mem, tmask, p):
    sa = _ref_mha(x, x, tmask, p["sa_in_w"], p["sa_in_b"], p["sa_out_w"], p["sa_out_b"])
    x = _ref_ln(x + sa, p["ln1_g"], p["ln1_b"])
    ca = _ref_mha(x, mem, None, p["ca_in_w"], p["ca_in_b"], p["ca_out_w"], p["ca_out_b"])
    x = _ref_ln(x + ca, p["ln2_g"], p["ln2_b"])
    h = jnp.maximum(x @ p["l1_w"].T + p["l1_b"], 0.0)
    return _ref_ln(x + h @ p["l2_w"].T + p["l2_b"], p["ln3_g"], p["ln3_b"])


def ref_transformer_decoder(tgt, memory, layer_params, final_g, final_b, tgt_mask):
    def one(x, mem):
        for p in layer_params:
            x = _ref_layer(x, mem, tgt_mask, p)
        return _ref_ln(x, final_g, final_b)
    out = jax.vmap(one)(jnp.transpose(tgt, (1, 0, 2)), jnp.transpose(memory, (1, 0, 2)))
    return jnp.transpose(out, (1, 0, 2))


# ------------------------------ param init ----------------------------------
def init_layer_params(key):
    ks = jax.random.split(key, 12)
    nrm = lambda k, shape, s=0.1: (s * jax.random.normal(k, shape)).astype(jnp.float32)
    ones = lambda: jnp.ones((E,), jnp.float32)
    zeros = lambda: jnp.zeros((E,), jnp.float32)
    return {
        "sa_in_w": nrm(ks[0], (3 * E, E)), "sa_in_b": nrm(ks[1], (3 * E,), 0.02),
        "sa_out_w": nrm(ks[2], (E, E)),    "sa_out_b": nrm(ks[3], (E,), 0.02),
        "ca_in_w": nrm(ks[4], (3 * E, E)), "ca_in_b": nrm(ks[5], (3 * E,), 0.02),
        "ca_out_w": nrm(ks[6], (E, E)),    "ca_out_b": nrm(ks[7], (E,), 0.02),
        "l1_w": nrm(ks[8], (FF, E)),       "l1_b": nrm(ks[9], (FF,), 0.02),
        "l2_w": nrm(ks[10], (E, FF)),      "l2_b": nrm(ks[11], (E,), 0.02),
        "ln1_g": ones(), "ln1_b": zeros(),
        "ln2_g": ones(), "ln2_b": zeros(),
        "ln3_g": ones(), "ln3_b": zeros(),
    }


if __name__ == "__main__":
    root = jax.random.PRNGKey(0)
    k_tgt, k_mem, k_par = jax.random.split(root, 3)

    # PyTorch-style inputs: tgt (T, B, E), memory (S, B, E)
    tgt = jax.random.normal(k_tgt, (T, B, E), jnp.float32)
    memory = jax.random.normal(k_mem, (S, B, E), jnp.float32)

    # causal tgt_mask (used only by the JAX reference; the kernel builds it internally)
    row = jax.lax.broadcasted_iota(jnp.int32, (T, T), 0)
    col = jax.lax.broadcasted_iota(jnp.int32, (T, T), 1)
    tgt_mask = jnp.where(col <= row, 0.0, -jnp.inf).astype(jnp.float32)

    layer_params = [init_layer_params(jax.random.fold_in(k_par, i))
                    for i in range(NUM_LAYERS)]
    final_g = jnp.ones((E,), jnp.float32)
    final_b = jnp.zeros((E,), jnp.float32)

    kparams = prepare_kernel_params(layer_params, final_g, final_b)

    out = jax.block_until_ready(transformer_decoder_pallas(tgt, memory, kparams))
    ref = jax.block_until_ready(
        ref_transformer_decoder(tgt, memory, layer_params, final_g, final_b, tgt_mask))

    assert out.shape == (T, B, E), out.shape
    max_diff = float(jnp.max(jnp.abs(out - ref)))
    assert max_diff < 5e-2, f"mismatch vs reference: {max_diff}"
    print("KERNEL_OK")
</pallas_src>

<mosaic_0001>
module attributes {stable_mosaic.version = 11 : i64} {
  func.func @fused_decoder_kernel(%arg0: memref<16x32xf32, #tpu.memory_space<vmem>>, %arg1: memref<32x32xf32, #tpu.memory_space<vmem>>, %arg2: memref<2x2x32x128xbf16, #tpu.memory_space<vmem>>, %arg3: memref<2x32x64xbf16, #tpu.memory_space<vmem>>, %arg4: memref<2x64x32xbf16, #tpu.memory_space<vmem>>, %arg5: memref<2x1x64xf32, #tpu.memory_space<vmem>>, %arg6: memref<2x15x32xf32, #tpu.memory_space<vmem>>, %arg7: memref<2x32xf32, #tpu.memory_space<vmem>>, %arg8: memref<16x32xf32, #tpu.memory_space<vmem>>) attributes {dimension_semantics = [], scalar_prefetch = 0 : i64, scratch_operands = 0 : i64, tpu.core_type = #tpu.core_type<tc>} {
    %c0 = arith.constant 0 : index
    %c0_0 = arith.constant 0 : index
    %0 = vector.load %arg0[%c0, %c0_0] : memref<16x32xf32, #tpu.memory_space<vmem>>, vector<16x32xf32>
    %c0_1 = arith.constant 0 : index
    %c0_2 = arith.constant 0 : index
    %1 = vector.load %arg1[%c0_1, %c0_2] : memref<32x32xf32, #tpu.memory_space<vmem>>, vector<32x32xf32>
    %2 = arith.truncf %1 : vector<32x32xf32> to vector<32x32xbf16>
    %c0_3 = arith.constant 0 : index
    %c0_4 = arith.constant 0 : index
    %c0_5 = arith.constant 0 : index
    %c0_6 = arith.constant 0 : index
    %3 = vector.load %arg2[%c0_3, %c0_4, %c0_5, %c0_6] : memref<2x2x32x128xbf16, #tpu.memory_space<vmem>>, vector<2x2x32x128xbf16>
    %c0_7 = arith.constant 0 : index
    %c0_8 = arith.constant 0 : index
    %c0_9 = arith.constant 0 : index
    %4 = vector.load %arg3[%c0_7, %c0_8, %c0_9] : memref<2x32x64xbf16, #tpu.memory_space<vmem>>, vector<2x32x64xbf16>
    %c0_10 = arith.constant 0 : index
    %c0_11 = arith.constant 0 : index
    %c0_12 = arith.constant 0 : index
    %5 = vector.load %arg4[%c0_10, %c0_11, %c0_12] : memref<2x64x32xbf16, #tpu.memory_space<vmem>>, vector<2x64x32xbf16>
    %c0_13 = arith.constant 0 : index
    %c0_14 = arith.constant 0 : index
    %c0_15 = arith.constant 0 : index
    %6 = vector.load %arg5[%c0_13, %c0_14, %c0_15] : memref<2x1x64xf32, #tpu.memory_space<vmem>>, vector<2x1x64xf32>
    %c0_16 = arith.constant 0 : index
    %c0_17 = arith.constant 0 : index
    %c0_18 = arith.constant 0 : index
    %7 = vector.load %arg6[%c0_16, %c0_17, %c0_18] : memref<2x15x32xf32, #tpu.memory_space<vmem>>, vector<2x15x32xf32>
    %8 = tpu.iota {dimensions = array<i32: 0>} : vector<8x8xi32>
    %9 = tpu.iota {dimensions = array<i32: 1>} : vector<8x8xi32>
    %10 = arith.cmpi sle, %9, %8 : vector<8x8xi32>
    %cst = arith.constant 0.000000e+00 : f32
    %cst_19 = arith.constant -1.000000e+30 : f32
    %11 = vector.broadcast %cst : f32 to vector<8x8xf32>
    %12 = vector.broadcast %cst_19 : f32 to vector<8x8xf32>
    %13 = arith.select %10, %11, %12 : vector<8x8xi1>, vector<8x8xf32>
    %14 = vector.extract_strided_slice %7 {offsets = [0, 0, 0], sizes = [1, 15, 32], strides = [1, 1, 1]} : vector<2x15x32xf32> to vector<1x15x32xf32>
    %15 = vector.shape_cast %14 : vector<1x15x32xf32> to vector<15x32xf32>
    %16 = vector.extract_strided_slice %3 {offsets = [0, 0, 0, 0], sizes = [1, 1, 32, 128], strides = [1, 1, 1, 1]} : vector<2x2x32x128xbf16> to vector<1x1x32x128xbf16>
    %17 = vector.shape_cast %16 : vector<1x1x32x128xbf16> to vector<32x128xbf16>
    %18 = arith.truncf %0 : vector<16x32xf32> to vector<16x32xbf16>
    %19 = vector.extract_strided_slice %17 {offsets = [0, 0], sizes = [32, 96], strides = [1, 1]} : vector<32x128xbf16> to vector<32x96xbf16>
    %cst_20 = arith.constant dense<0.000000e+00> : vector<16x96xf32>
    %20 = tpu.matmul %18, %19, %cst_20 {dimension_numbers = #tpu.dot_dimension_numbers<[1], [0], [0], [1], [0, 0, 1, 1], [], []>} : vector<16x32xbf16>, vector<32x96xbf16>, vector<16x96xf32> -> vector<16x96xf32>
    %21 = vector.extract_strided_slice %20 {offsets = [0, 0], sizes = [16, 32], strides = [1, 1]} : vector<16x96xf32> to vector<16x32xf32>
    %22 = vector.extract_strided_slice %15 {offsets = [0, 0], sizes = [1, 32], strides = [1, 1]} : vector<15x32xf32> to vector<1x32xf32>
    %23 = vector.broadcast %22 : vector<1x32xf32> to vector<16x32xf32>
    %24 = arith.addf %21, %23 : vector<16x32xf32>
    %25 = vector.extract_strided_slice %24 {offsets = [0, 0], sizes = [16, 8], strides = [1, 1]} : vector<16x32xf32> to vector<16x8xf32>
    %26 = vector.extract_strided_slice %24 {offsets = [0, 8], sizes = [16, 8], strides = [1, 1]} : vector<16x32xf32> to vector<16x8xf32>
    %27 = vector.extract_strided_slice %24 {offsets = [0, 16], sizes = [16, 8], strides = [1, 1]} : vector<16x32xf32> to vector<16x8xf32>
    %28 = vector.extract_strided_slice %24 {offsets = [0, 24], sizes = [16, 8], strides = [1, 1]} : vector<16x32xf32> to vector<16x8xf32>
    %29 = vector.shape_cast %25 : vector<16x8xf32> to vector<1x16x8xf32>
    %30 = vector.shape_cast %26 : vector<16x8xf32> to vector<1x16x8xf32>
    %31 = vector.shape_cast %27 : vector<16x8xf32> to vector<1x16x8xf32>
    %32 = vector.shape_cast %28 : vector<16x8xf32> to vector<1x16x8xf32>
    %33 = tpu.concatenate %29, %30, %31, %32 in 0 : vector<1x16x8xf32>, vector<1x16x8xf32>, vector<1x16x8xf32>, vector<1x16x8xf32> -> vector<4x16x8xf32>
    %34 = vector.shape_cast %33 : vector<4x16x8xf32> to vector<8x8x8xf32>
    %35 = vector.extract_strided_slice %20 {offsets = [0, 32], sizes = [16, 32], strides = [1, 1]} : vector<16x96xf32> to vector<16x32xf32>
    %36 = vector.extract_strided_slice %15 {offsets = [1, 0], sizes = [1, 32], strides = [1, 1]} : vector<15x32xf32> to vector<1x32xf32>
    %37 = vector.broadcast %36 : vector<1x32xf32> to vector<16x32xf32>
    %38 = arith.addf %35, %37 : vector<16x32xf32>
    %39 = vector.extract_strided_slice %38 {offsets = [0, 0], sizes = [16, 8], strides = [1, 1]} : vector<16x32xf32> to vector<16x8xf32>
    %40 = vector.extract_strided_slice %38 {offsets = [0, 8], sizes = [16, 8], strides = [1, 1]} : vector<16x32xf32> to vector<16x8xf32>
    %41 = vector.extract_strided_slice %38 {offsets = [0, 16], sizes = [16, 8], strides = [1, 1]} : vector<16x32xf32> to vector<16x8xf32>
    %42 = vector.extract_strided_slice %38 {offsets = [0, 24], sizes = [16, 8], strides = [1, 1]} : vector<16x32xf32> to vector<16x8xf32>
    %43 = vector.shape_cast %39 : vector<16x8xf32> to vector<1x16x8xf32>
    %44 = vector.shape_cast %40 : vector<16x8xf32> to vector<1x16x8xf32>
    %45 = vector.shape_cast %41 : vector<16x8xf32> to vector<1x16x8xf32>
    %46 = vector.shape_cast %42 : vector<16x8xf32> to vector<1x16x8xf32>
    %47 = tpu.concatenate %43, %44, %45, %46 in 0 : vector<1x16x8xf32>, vector<1x16x8xf32>, vector<1x16x8xf32>, vector<1x16x8xf32> -> vector<4x16x8xf32>
    %48 = vector.shape_cast %47 : vector<4x16x8xf32> to vector<8x8x8xf32>
    %49 = vector.extract_strided_slice %20 {offsets = [0, 64], sizes = [16, 32], strides = [1, 1]} : vector<16x96xf32> to vector<16x32xf32>
    %50 = vector.extract_strided_slice %15 {offsets = [2, 0], sizes = [1, 32], strides = [1, 1]} : vector<15x32xf32> to vector<1x32xf32>
    %51 = vector.broadcast %50 : vector<1x32xf32> to vector<16x32xf32>
    %52 = arith.addf %49, %51 : vector<16x32xf32>
    %53 = vector.extract_strided_slice %52 {offsets = [0, 0], sizes = [16, 8], strides = [1, 1]} : vector<16x32xf32> to vector<16x8xf32>
    %54 = vector.extract_strided_slice %52 {offsets = [0, 8], sizes = [16, 8], strides = [1, 1]} : vector<16x32xf32> to vector<16x8xf32>
    %55 = vector.extract_strided_slice %52 {offsets = [0, 16], sizes = [16, 8], strides = [1, 1]} : vector<16x32xf32> to vector<16x8xf32>
    %56 = vector.extract_strided_slice %52 {offsets = [0, 24], sizes = [16, 8], strides = [1, 1]} : vector<16x32xf32> to vector<16x8xf32>
    %57 = vector.shape_cast %53 : vector<16x8xf32> to vector<1x16x8xf32>
    %58 = vector.shape_cast %54 : vector<16x8xf32> to vector<1x16x8xf32>
    %59 = vector.shape_cast %55 : vector<16x8xf32> to vector<1x16x8xf32>
    %60 = vector.shape_cast %56 : vector<16x8xf32> to vector<1x16x8xf32>
    %61 = tpu.concatenate %57, %58, %59, %60 in 0 : vector<1x16x8xf32>, vector<1x16x8xf32>, vector<1x16x8xf32>, vector<1x16x8xf32> -> vector<4x16x8xf32>
    %62 = vector.shape_cast %61 : vector<4x16x8xf32> to vector<8x8x8xf32>
    %63 = arith.truncf %34 : vector<8x8x8xf32> to vector<8x8x8xbf16>
    %64 = arith.truncf %48 : vector<8x8x8xf32> to vector<8x8x8xbf16>
    %cst_21 = arith.constant dense<0.000000e+00> : vector<8x8x8xf32>
    %65 = tpu.matmul %63, %64, %cst_21 {dimension_numbers = #tpu.dot_dimension_numbers<[2], [2], [1], [1], [0, 0, 0, 1, 1, 1], [0], [0]>} : vector<8x8x8xbf16>, vector<8x8x8xbf16>, vector<8x8x8xf32> -> vector<8x8x8xf32>
    %66 = vector.shape_cast %13 : vector<8x8xf32> to vector<1x8x8xf32>
    %67 = vector.broadcast %66 : vector<1x8x8xf32> to vector<8x8x8xf32>
    %68 = arith.addf %65, %67 : vector<8x8x8xf32>
    %cst_22 = arith.constant dense<0xFF800000> : vector<8x8xf32>
    %69 = vector.multi_reduction <maximumf>, %68, %cst_22 [2] : vector<8x8x8xf32> to vector<8x8xf32>
    %70 = vector.shape_cast %69 : vector<8x8xf32> to vector<8x8x1xf32>
    %71 = vector.broadcast %70 : vector<8x8x1xf32> to vector<8x8x8xf32>
    %72 = arith.subf %68, %71 : vector<8x8x8xf32>
    %73 = math.exp %72 : vector<8x8x8xf32>
    %cst_23 = arith.constant dense<0.000000e+00> : vector<8x8xf32>
    %74 = vector.multi_reduction <add>, %73, %cst_23 [2] : vector<8x8x8xf32> to vector<8x8xf32>
    %75 = vector.shape_cast %74 : vector<8x8xf32> to vector<8x8x1xf32>
    %76 = tpu.reciprocal %75 {approx = true} : vector<8x8x1xf32> -> vector<8x8x1xf32>
    %77 = vector.broadcast %76 : vector<8x8x1xf32> to vector<8x8x8xf32>
    %78 = arith.mulf %73, %77 : vector<8x8x8xf32>
    %79 = arith.truncf %78 : vector<8x8x8xf32> to vector<8x8x8xbf16>
    %80 = arith.truncf %62 : vector<8x8x8xf32> to vector<8x8x8xbf16>
    %cst_24 = arith.constant dense<0.000000e+00> : vector<8x8x8xf32>
    %81 = tpu.matmul %79, %80, %cst_24 {dimension_numbers = #tpu.dot_dimension_numbers<[2], [1], [1], [2], [0, 0, 0, 1, 1, 2], [0], [0]>} : vector<8x8x8xbf16>, vector<8x8x8xbf16>, vector<8x8x8xf32> -> vector<8x8x8xf32>
    %82 = vector.shape_cast %81 : vector<8x8x8xf32> to vector<4x16x8xf32>
    %83 = vector.extract_strided_slice %82 {offsets = [0, 0, 0], sizes = [1, 16, 8], strides = [1, 1, 1]} : vector<4x16x8xf32> to vector<1x16x8xf32>
    %84 = vector.shape_cast %83 : vector<1x16x8xf32> to vector<16x8xf32>
    %85 = vector.extract_strided_slice %82 {offsets = [1, 0, 0], sizes = [1, 16, 8], strides = [1, 1, 1]} : vector<4x16x8xf32> to vector<1x16x8xf32>
    %86 = vector.shape_cast %85 : vector<1x16x8xf32> to vector<16x8xf32>
    %87 = vector.extract_strided_slice %82 {offsets = [2, 0, 0], sizes = [1, 16, 8], strides = [1, 1, 1]} : vector<4x16x8xf32> to vector<1x16x8xf32>
    %88 = vector.shape_cast %87 : vector<1x16x8xf32> to vector<16x8xf32>
    %89 = vector.extract_strided_slice %82 {offsets = [3, 0, 0], sizes = [1, 16, 8], strides = [1, 1, 1]} : vector<4x16x8xf32> to vector<1x16x8xf32>
    %90 = vector.shape_cast %89 : vector<1x16x8xf32> to vector<16x8xf32>
    %91 = tpu.concatenate %84, %86, %88, %90 in 1 : vector<16x8xf32>, vector<16x8xf32>, vector<16x8xf32>, vector<16x8xf32> -> vector<16x32xf32>
    %92 = arith.truncf %91 : vector<16x32xf32> to vector<16x32xbf16>
    %93 = vector.extract_strided_slice %17 {offsets = [0, 96], sizes = [32, 32], strides = [1, 1]} : vector<32x128xbf16> to vector<32x32xbf16>
    %cst_25 = arith.constant dense<0.000000e+00> : vector<16x32xf32>
    %94 = tpu.matmul %92, %93, %cst_25 {dimension_numbers = #tpu.dot_dimension_numbers<[1], [0], [0], [1], [0, 0, 1, 1], [], []>} : vector<16x32xbf16>, vector<32x32xbf16>, vector<16x32xf32> -> vector<16x32xf32>
    %95 = vector.extract_strided_slice %15 {offsets = [3, 0], sizes = [1, 32], strides = [1, 1]} : vector<15x32xf32> to vector<1x32xf32>
    %96 = vector.broadcast %95 : vector<1x32xf32> to vector<16x32xf32>
    %97 = arith.addf %94, %96 : vector<16x32xf32>
    %98 = arith.addf %0, %97 : vector<16x32xf32>
    %99 = vector.extract_strided_slice %15 {offsets = [9, 0], sizes = [1, 32], strides = [1, 1]} : vector<15x32xf32> to vector<1x32xf32>
    %100 = vector.extract_strided_slice %15 {offsets = [10, 0], sizes = [1, 32], strides = [1, 1]} : vector<15x32xf32> to vector<1x32xf32>
    %cst_26 = arith.constant dense<0.000000e+00> : vector<16xf32>
    %101 = vector.multi_reduction <add>, %98, %cst_26 [1] : vector<16x32xf32> to vector<16xf32>
    %102 = vector.shape_cast %101 : vector<16xf32> to vector<16x1xf32>
    %cst_27 = arith.constant 3.200000e+01 : f32
    %103 = vector.broadcast %cst_27 : f32 to vector<16x1xf32>
    %104 = arith.divf %102, %103 : vector<16x1xf32>
    %105 = vector.broadcast %104 : vector<16x1xf32> to vector<16x32xf32>
    %106 = arith.subf %98, %105 : vector<16x32xf32>
    %107 = arith.mulf %106, %106 : vector<16x32xf32>
    %cst_28 = arith.constant dense<0.000000e+00> : vector<16xf32>
    %108 = vector.multi_reduction <add>, %107, %cst_28 [1] : vector<16x32xf32> to vector<16xf32>
    %109 = vector.shape_cast %108 : vector<16xf32> to vector<16x1xf32>
    %cst_29 = arith.constant 3.200000e+01 : f32
    %110 = vector.broadcast %cst_29 : f32 to vector<16x1xf32>
    %111 = arith.divf %109, %110 : vector<16x1xf32>
    %112 = vector.broadcast %104 : vector<16x1xf32> to vector<16x32xf32>
    %113 = arith.subf %98, %112 : vector<16x32xf32>
    %cst_30 = arith.constant 9.99999974E-6 : f32
    %114 = vector.broadcast %cst_30 : f32 to vector<16x1xf32>
    %115 = arith.addf %111, %114 : vector<16x1xf32>
    %116 = math.rsqrt %115 : vector<16x1xf32>
    %117 = vector.broadcast %116 : vector<16x1xf32> to vector<16x32xf32>
    %118 = arith.mulf %113, %117 : vector<16x32xf32>
    %119 = vector.broadcast %99 : vector<1x32xf32> to vector<16x32xf32>
    %120 = arith.mulf %118, %119 : vector<16x32xf32>
    %121 = vector.broadcast %100 : vector<1x32xf32> to vector<16x32xf32>
    %122 = arith.addf %120, %121 : vector<16x32xf32>
    %123 = vector.extract_strided_slice %3 {offsets = [0, 1, 0, 0], sizes = [1, 1, 32, 128], strides = [1, 1, 1, 1]} : vector<2x2x32x128xbf16> to vector<1x1x32x128xbf16>
    %124 = vector.shape_cast %123 : vector<1x1x32x128xbf16> to vector<32x128xbf16>
    %125 = arith.truncf %122 : vector<16x32xf32> to vector<16x32xbf16>
    %126 = vector.extract_strided_slice %124 {offsets = [0, 0], sizes = [32, 32], strides = [1, 1]} : vector<32x128xbf16> to vector<32x32xbf16>
    %cst_31 = arith.constant dense<0.000000e+00> : vector<16x32xf32>
    %127 = tpu.matmul %125, %126, %cst_31 {dimension_numbers = #tpu.dot_dimension_numbers<[1], [0], [0], [1], [0, 0, 1, 1], [], []>} : vector<16x32xbf16>, vector<32x32xbf16>, vector<16x32xf32> -> vector<16x32xf32>
    %128 = vector.extract_strided_slice %124 {offsets = [0, 32], sizes = [32, 64], strides = [1, 1]} : vector<32x128xbf16> to vector<32x64xbf16>
    %cst_32 = arith.constant dense<0.000000e+00> : vector<32x64xf32>
    %129 = tpu.matmul %2, %128, %cst_32 {dimension_numbers = #tpu.dot_dimension_numbers<[1], [0], [0], [1], [0, 0, 1, 1], [], []>} : vector<32x32xbf16>, vector<32x64xbf16>, vector<32x64xf32> -> vector<32x64xf32>
    %130 = vector.extract_strided_slice %15 {offsets = [4, 0], sizes = [1, 32], strides = [1, 1]} : vector<15x32xf32> to vector<1x32xf32>
    %131 = vector.broadcast %130 : vector<1x32xf32> to vector<16x32xf32>
    %132 = arith.addf %127, %131 : vector<16x32xf32>
    %133 = vector.extract_strided_slice %132 {offsets = [0, 0], sizes = [16, 8], strides = [1, 1]} : vector<16x32xf32> to vector<16x8xf32>
    %134 = vector.extract_strided_slice %132 {offsets = [0, 8], sizes = [16, 8], strides = [1, 1]} : vector<16x32xf32> to vector<16x8xf32>
    %135 = vector.extract_strided_slice %132 {offsets = [0, 16], sizes = [16, 8], strides = [1, 1]} : vector<16x32xf32> to vector<16x8xf32>
    %136 = vector.extract_strided_slice %132 {offsets = [0, 24], sizes = [16, 8], strides = [1, 1]} : vector<16x32xf32> to vector<16x8xf32>
    %137 = vector.shape_cast %133 : vector<16x8xf32> to vector<1x16x8xf32>
    %138 = vector.shape_cast %134 : vector<16x8xf32> to vector<1x16x8xf32>
    %139 = vector.shape_cast %135 : vector<16x8xf32> to vector<1x16x8xf32>
    %140 = vector.shape_cast %136 : vector<16x8xf32> to vector<1x16x8xf32>
    %141 = tpu.concatenate %137, %138, %139, %140 in 0 : vector<1x16x8xf32>, vector<1x16x8xf32>, vector<1x16x8xf32>, vector<1x16x8xf32> -> vector<4x16x8xf32>
    %142 = vector.shape_cast %141 : vector<4x16x8xf32> to vector<8x8x8xf32>
    %143 = vector.extract_strided_slice %129 {offsets = [0, 0], sizes = [32, 32], strides = [1, 1]} : vector<32x64xf32> to vector<32x32xf32>
    %144 = vector.extract_strided_slice %15 {offsets = [5, 0], sizes = [1, 32], strides = [1, 1]} : vector<15x32xf32> to vector<1x32xf32>
    %145 = vector.broadcast %144 : vector<1x32xf32> to vector<32x32xf32>
    %146 = arith.addf %143, %145 : vector<32x32xf32>
    %147 = vector.extract_strided_slice %146 {offsets = [0, 0], sizes = [32, 8], strides = [1, 1]} : vector<32x32xf32> to vector<32x8xf32>
    %148 = vector.extract_strided_slice %146 {offsets = [0, 8], sizes = [32, 8], strides = [1, 1]} : vector<32x32xf32> to vector<32x8xf32>
    %149 = vector.extract_strided_slice %146 {offsets = [0, 16], sizes = [32, 8], strides = [1, 1]} : vector<32x32xf32> to vector<32x8xf32>
    %150 = vector.extract_strided_slice %146 {offsets = [0, 24], sizes = [32, 8], strides = [1, 1]} : vector<32x32xf32> to vector<32x8xf32>
    %151 = vector.shape_cast %147 : vector<32x8xf32> to vector<1x32x8xf32>
    %152 = vector.shape_cast %148 : vector<32x8xf32> to vector<1x32x8xf32>
    %153 = vector.shape_cast %149 : vector<32x8xf32> to vector<1x32x8xf32>
    %154 = vector.shape_cast %150 : vector<32x8xf32> to vector<1x32x8xf32>
    %155 = tpu.concatenate %151, %152, %153, %154 in 0 : vector<1x32x8xf32>, vector<1x32x8xf32>, vector<1x32x8xf32>, vector<1x32x8xf32> -> vector<4x32x8xf32>
    %156 = vector.shape_cast %155 : vector<4x32x8xf32> to vector<8x16x8xf32>
    %157 = vector.extract_strided_slice %129 {offsets = [0, 32], sizes = [32, 32], strides = [1, 1]} : vector<32x64xf32> to vector<32x32xf32>
    %158 = vector.extract_strided_slice %15 {offsets = [6, 0], sizes = [1, 32], strides = [1, 1]} : vector<15x32xf32> to vector<1x32xf32>
    %159 = vector.broadcast %158 : vector<1x32xf32> to vector<32x32xf32>
    %160 = arith.addf %157, %159 : vector<32x32xf32>
    %161 = vector.extract_strided_slice %160 {offsets = [0, 0], sizes = [32, 8], strides = [1, 1]} : vector<32x32xf32> to vector<32x8xf32>
    %162 = vector.extract_strided_slice %160 {offsets = [0, 8], sizes = [32, 8], strides = [1, 1]} : vector<32x32xf32> to vector<32x8xf32>
    %163 = vector.extract_strided_slice %160 {offsets = [0, 16], sizes = [32, 8], strides = [1, 1]} : vector<32x32xf32> to vector<32x8xf32>
    %164 = vector.extract_strided_slice %160 {offsets = [0, 24], sizes = [32, 8], strides = [1, 1]} : vector<32x32xf32> to vector<32x8xf32>
    %165 = vector.shape_cast %161 : vector<32x8xf32> to vector<1x32x8xf32>
    %166 = vector.shape_cast %162 : vector<32x8xf32> to vector<1x32x8xf32>
    %167 = vector.shape_cast %163 : vector<32x8xf32> to vector<1x32x8xf32>
    %168 = vector.shape_cast %164 : vector<32x8xf32> to vector<1x32x8xf32>
    %169 = tpu.concatenate %165, %166, %167, %168 in 0 : vector<1x32x8xf32>, vector<1x32x8xf32>, vector<1x32x8xf32>, vector<1x32x8xf32> -> vector<4x32x8xf32>
    %170 = vector.shape_cast %169 : vector<4x32x8xf32> to vector<8x16x8xf32>
    %171 = arith.truncf %142 : vector<8x8x8xf32> to vector<8x8x8xbf16>
    %172 = arith.truncf %156 : vector<8x16x8xf32> to vector<8x16x8xbf16>
    %cst_33 = arith.constant dense<0.000000e+00> : vector<8x8x16xf32>
    %173 = tpu.matmul %171, %172, %cst_33 {dimension_numbers = #tpu.dot_dimension_numbers<[2], [2], [1], [1], [0, 0, 0, 1, 1, 1], [0], [0]>} : vector<8x8x8xbf16>, vector<8x16x8xbf16>, vector<8x8x16xf32> -> vector<8x8x16xf32>
    %cst_34 = arith.constant dense<0xFF800000> : vector<8x8xf32>
    %174 = vector.multi_reduction <maximumf>, %173, %cst_34 [2] : vector<8x8x16xf32> to vector<8x8xf32>
    %175 = vector.shape_cast %174 : vector<8x8xf32> to vector<8x8x1xf32>
    %176 = vector.broadcast %175 : vector<8x8x1xf32> to vector<8x8x16xf32>
    %177 = arith.subf %173, %176 : vector<8x8x16xf32>
    %178 = math.exp %177 : vector<8x8x16xf32>
    %cst_35 = arith.constant dense<0.000000e+00> : vector<8x8xf32>
    %179 = vector.multi_reduction <add>, %178, %cst_35 [2] : vector<8x8x16xf32> to vector<8x8xf32>
    %180 = vector.shape_cast %179 : vector<8x8xf32> to vector<8x8x1xf32>
    %181 = tpu.reciprocal %180 {approx = true} : vector<8x8x1xf32> -> vector<8x8x1xf32>
    %182 = vector.broadcast %181 : vector<8x8x1xf32> to vector<8x8x16xf32>
    %183 = arith.mulf %178, %182 : vector<8x8x16xf32>
    %184 = arith.truncf %183 : vector<8x8x16xf32> to vector<8x8x16xbf16>
    %185 = arith.truncf %170 : vector<8x16x8xf32> to vector<8x16x8xbf16>
    %cst_36 = arith.constant dense<0.000000e+00> : vector<8x8x8xf32>
    %186 = tpu.matmul %184, %185, %cst_36 {dimension_numbers = #tpu.dot_dimension_numbers<[2], [1], [1], [2], [0, 0, 0, 1, 1, 2], [0], [0]>} : vector<8x8x16xbf16>, vector<8x16x8xbf16>, vector<8x8x8xf32> -> vector<8x8x8xf32>
    %187 = vector.shape_cast %186 : vector<8x8x8xf32> to vector<4x16x8xf32>
    %188 = vector.extract_strided_slice %187 {offsets = [0, 0, 0], sizes = [1, 16, 8], strides = [1, 1, 1]} : vector<4x16x8xf32> to vector<1x16x8xf32>
    %189 = vector.shape_cast %188 : vector<1x16x8xf32> to vector<16x8xf32>
    %190 = vector.extract_strided_slice %187 {offsets = [1, 0, 0], sizes = [1, 16, 8], strides = [1, 1, 1]} : vector<4x16x8xf32> to vector<1x16x8xf32>
    %191 = vector.shape_cast %190 : vector<1x16x8xf32> to vector<16x8xf32>
    %192 = vector.extract_strided_slice %187 {offsets = [2, 0, 0], sizes = [1, 16, 8], strides = [1, 1, 1]} : vector<4x16x8xf32> to vector<1x16x8xf32>
    %193 = vector.shape_cast %192 : vector<1x16x8xf32> to vector<16x8xf32>
    %194 = vector.extract_strided_slice %187 {offsets = [3, 0, 0], sizes = [1, 16, 8], strides = [1, 1, 1]} : vector<4x16x8xf32> to vector<1x16x8xf32>
    %195 = vector.shape_cast %194 : vector<1x16x8xf32> to vector<16x8xf32>
    %196 = tpu.concatenate %189, %191, %193, %195 in 1 : vector<16x8xf32>, vector<16x8xf32>, vector<16x8xf32>, vector<16x8xf32> -> vector<16x32xf32>
    %197 = arith.truncf %196 : vector<16x32xf32> to vector<16x32xbf16>
    %198 = vector.extract_strided_slice %124 {offsets = [0, 96], sizes = [32, 32], strides = [1, 1]} : vector<32x128xbf16> to vector<32x32xbf16>
    %cst_37 = arith.constant dense<0.000000e+00> : vector<16x32xf32>
    %199 = tpu.matmul %197, %198, %cst_37 {dimension_numbers = #tpu.dot_dimension_numbers<[1], [0], [0], [1], [0, 0, 1, 1], [], []>} : vector<16x32xbf16>, vector<32x32xbf16>, vector<16x32xf32> -> vector<16x32xf32>
    %200 = vector.extract_strided_slice %15 {offsets = [7, 0], sizes = [1, 32], strides = [1, 1]} : vector<15x32xf32> to vector<1x32xf32>
    %201 = vector.broadcast %200 : vector<1x32xf32> to vector<16x32xf32>
    %202 = arith.addf %199, %201 : vector<16x32xf32>
    %203 = arith.addf %122, %202 : vector<16x32xf32>
    %204 = vector.extract_strided_slice %15 {offsets = [11, 0], sizes = [1, 32], strides = [1, 1]} : vector<15x32xf32> to vector<1x32xf32>
    %205 = vector.extract_strided_slice %15 {offsets = [12, 0], sizes = [1, 32], strides = [1, 1]} : vector<15x32xf32> to vector<1x32xf32>
    %cst_38 = arith.constant dense<0.000000e+00> : vector<16xf32>
    %206 = vector.multi_reduction <add>, %203, %cst_38 [1] : vector<16x32xf32> to vector<16xf32>
    %207 = vector.shape_cast %206 : vector<16xf32> to vector<16x1xf32>
    %cst_39 = arith.constant 3.200000e+01 : f32
    %208 = vector.broadcast %cst_39 : f32 to vector<16x1xf32>
    %209 = arith.divf %207, %208 : vector<16x1xf32>
    %210 = vector.broadcast %209 : vector<16x1xf32> to vector<16x32xf32>
    %211 = arith.subf %203, %210 : vector<16x32xf32>
    %212 = arith.mulf %211, %211 : vector<16x32xf32>
    %cst_40 = arith.constant dense<0.000000e+00> : vector<16xf32>
    %213 = vector.multi_reduction <add>, %212, %cst_40 [1] : vector<16x32xf32> to vector<16xf32>
    %214 = vector.shape_cast %213 : vector<16xf32> to vector<16x1xf32>
    %cst_41 = arith.constant 3.200000e+01 : f32
    %215 = vector.broadcast %cst_41 : f32 to vector<16x1xf32>
    %216 = arith.divf %214, %215 : vector<16x1xf32>
    %217 = vector.broadcast %209 : vector<16x1xf32> to vector<16x32xf32>
    %218 = arith.subf %203, %217 : vector<16x32xf32>
    %cst_42 = arith.constant 9.99999974E-6 : f32
    %219 = vector.broadcast %cst_42 : f32 to vector<16x1xf32>
    %220 = arith.addf %216, %219 : vector<16x1xf32>
    %221 = math.rsqrt %220 : vector<16x1xf32>
    %222 = vector.broadcast %221 : vector<16x1xf32> to vector<16x32xf32>
    %223 = arith.mulf %218, %222 : vector<16x32xf32>
    %224 = vector.broadcast %204 : vector<1x32xf32> to vector<16x32xf32>
    %225 = arith.mulf %223, %224 : vector<16x32xf32>
    %226 = vector.broadcast %205 : vector<1x32xf32> to vector<16x32xf32>
    %227 = arith.addf %225, %226 : vector<16x32xf32>
    %228 = arith.truncf %227 : vector<16x32xf32> to vector<16x32xbf16>
    %229 = vector.extract_strided_slice %4 {offsets = [0, 0, 0], sizes = [1, 32, 64], strides = [1, 1, 1]} : vector<2x32x64xbf16> to vector<1x32x64xbf16>
    %230 = vector.shape_cast %229 : vector<1x32x64xbf16> to vector<32x64xbf16>
    %cst_43 = arith.constant dense<0.000000e+00> : vector<16x64xf32>
    %231 = tpu.matmul %228, %230, %cst_43 {dimension_numbers = #tpu.dot_dimension_numbers<[1], [0], [0], [1], [0, 0, 1, 1], [], []>} : vector<16x32xbf16>, vector<32x64xbf16>, vector<16x64xf32> -> vector<16x64xf32>
    %232 = vector.extract_strided_slice %6 {offsets = [0, 0, 0], sizes = [1, 1, 64], strides = [1, 1, 1]} : vector<2x1x64xf32> to vector<1x1x64xf32>
    %233 = vector.shape_cast %232 : vector<1x1x64xf32> to vector<1x64xf32>
    %234 = vector.broadcast %233 : vector<1x64xf32> to vector<16x64xf32>
    %235 = arith.addf %231, %234 : vector<16x64xf32>
    %cst_44 = arith.constant 0.000000e+00 : f32
    %236 = vector.broadcast %cst_44 : f32 to vector<16x64xf32>
    %237 = arith.maximumf %235, %236 : vector<16x64xf32>
    %238 = arith.truncf %237 : vector<16x64xf32> to vector<16x64xbf16>
    %239 = vector.extract_strided_slice %5 {offsets = [0, 0, 0], sizes = [1, 64, 32], strides = [1, 1, 1]} : vector<2x64x32xbf16> to vector<1x64x32xbf16>
    %240 = vector.shape_cast %239 : vector<1x64x32xbf16> to vector<64x32xbf16>
    %cst_45 = arith.constant dense<0.000000e+00> : vector<16x32xf32>
    %241 = tpu.matmul %238, %240, %cst_45 {dimension_numbers = #tpu.dot_dimension_numbers<[1], [0], [0], [1], [0, 0, 1, 1], [], []>} : vector<16x64xbf16>, vector<64x32xbf16>, vector<16x32xf32> -> vector<16x32xf32>
    %242 = vector.extract_strided_slice %15 {offsets = [8, 0], sizes = [1, 32], strides = [1, 1]} : vector<15x32xf32> to vector<1x32xf32>
    %243 = vector.broadcast %242 : vector<1x32xf32> to vector<16x32xf32>
    %244 = arith.addf %241, %243 : vector<16x32xf32>
    %245 = arith.addf %227, %244 : vector<16x32xf32>
    %246 = vector.extract_strided_slice %15 {offsets = [13, 0], sizes = [1, 32], strides = [1, 1]} : vector<15x32xf32> to vector<1x32xf32>
    %247 = vector.extract_strided_slice %15 {offsets = [14, 0], sizes = [1, 32], strides = [1, 1]} : vector<15x32xf32> to vector<1x32xf32>
    %cst_46 = arith.constant dense<0.000000e+00> : vector<16xf32>
    %248 = vector.multi_reduction <add>, %245, %cst_46 [1] : vector<16x32xf32> to vector<16xf32>
    %249 = vector.shape_cast %248 : vector<16xf32> to vector<16x1xf32>
    %cst_47 = arith.constant 3.200000e+01 : f32
    %250 = vector.broadcast %cst_47 : f32 to vector<16x1xf32>
    %251 = arith.divf %249, %250 : vector<16x1xf32>
    %252 = vector.broadcast %251 : vector<16x1xf32> to vector<16x32xf32>
    %253 = arith.subf %245, %252 : vector<16x32xf32>
    %254 = arith.mulf %253, %253 : vector<16x32xf32>
    %cst_48 = arith.constant dense<0.000000e+00> : vector<16xf32>
    %255 = vector.multi_reduction <add>, %254, %cst_48 [1] : vector<16x32xf32> to vector<16xf32>
    %256 = vector.shape_cast %255 : vector<16xf32> to vector<16x1xf32>
    %cst_49 = arith.constant 3.200000e+01 : f32
    %257 = vector.broadcast %cst_49 : f32 to vector<16x1xf32>
    %258 = arith.divf %256, %257 : vector<16x1xf32>
    %259 = vector.broadcast %251 : vector<16x1xf32> to vector<16x32xf32>
    %260 = arith.subf %245, %259 : vector<16x32xf32>
    %cst_50 = arith.constant 9.99999974E-6 : f32
    %261 = vector.broadcast %cst_50 : f32 to vector<16x1xf32>
    %262 = arith.addf %258, %261 : vector<16x1xf32>
    %263 = math.rsqrt %262 : vector<16x1xf32>
    %264 = vector.broadcast %263 : vector<16x1xf32> to vector<16x32xf32>
    %265 = arith.mulf %260, %264 : vector<16x32xf32>
    %266 = vector.broadcast %246 : vector<1x32xf32> to vector<16x32xf32>
    %267 = arith.mulf %265, %266 : vector<16x32xf32>
    %268 = vector.broadcast %247 : vector<1x32xf32> to vector<16x32xf32>
    %269 = arith.addf %267, %268 : vector<16x32xf32>
    %270 = vector.extract_strided_slice %7 {offsets = [1, 0, 0], sizes = [1, 15, 32], strides = [1, 1, 1]} : vector<2x15x32xf32> to vector<1x15x32xf32>
    %271 = vector.shape_cast %270 : vector<1x15x32xf32> to vector<15x32xf32>
    %272 = vector.extract_strided_slice %3 {offsets = [1, 0, 0, 0], sizes = [1, 1, 32, 128], strides = [1, 1, 1, 1]} : vector<2x2x32x128xbf16> to vector<1x1x32x128xbf16>
    %273 = vector.shape_cast %272 : vector<1x1x32x128xbf16> to vector<32x128xbf16>
    %274 = arith.truncf %269 : vector<16x32xf32> to vector<16x32xbf16>
    %275 = vector.extract_strided_slice %273 {offsets = [0, 0], sizes = [32, 96], strides = [1, 1]} : vector<32x128xbf16> to vector<32x96xbf16>
    %cst_51 = arith.constant dense<0.000000e+00> : vector<16x96xf32>
    %276 = tpu.matmul %274, %275, %cst_51 {dimension_numbers = #tpu.dot_dimension_numbers<[1], [0], [0], [1], [0, 0, 1, 1], [], []>} : vector<16x32xbf16>, vector<32x96xbf16>, vector<16x96xf32> -> vector<16x96xf32>
    %277 = vector.extract_strided_slice %276 {offsets = [0, 0], sizes = [16, 32], strides = [1, 1]} : vector<16x96xf32> to vector<16x32xf32>
    %278 = vector.extract_strided_slice %271 {offsets = [0, 0], sizes = [1, 32], strides = [1, 1]} : vector<15x32xf32> to vector<1x32xf32>
    %279 = vector.broadcast %278 : vector<1x32xf32> to vector<16x32xf32>
    %280 = arith.addf %277, %279 : vector<16x32xf32>
    %281 = vector.extract_strided_slice %280 {offsets = [0, 0], sizes = [16, 8], strides = [1, 1]} : vector<16x32xf32> to vector<16x8xf32>
    %282 = vector.extract_strided_slice %280 {offsets = [0, 8], sizes = [16, 8], strides = [1, 1]} : vector<16x32xf32> to vector<16x8xf32>
    %283 = vector.extract_strided_slice %280 {offsets = [0, 16], sizes = [16, 8], strides = [1, 1]} : vector<16x32xf32> to vector<16x8xf32>
    %284 = vector.extract_strided_slice %280 {offsets = [0, 24], sizes = [16, 8], strides = [1, 1]} : vector<16x32xf32> to vector<16x8xf32>
    %285 = vector.shape_cast %281 : vector<16x8xf32> to vector<1x16x8xf32>
    %286 = vector.shape_cast %282 : vector<16x8xf32> to vector<1x16x8xf32>
    %287 = vector.shape_cast %283 : vector<16x8xf32> to vector<1x16x8xf32>
    %288 = vector.shape_cast %284 : vector<16x8xf32> to vector<1x16x8xf32>
    %289 = tpu.concatenate %285, %286, %287, %288 in 0 : vector<1x16x8xf32>, vector<1x16x8xf32>, vector<1x16x8xf32>, vector<1x16x8xf32> -> vector<4x16x8xf32>
    %290 = vector.shape_cast %289 : vector<4x16x8xf32> to vector<8x8x8xf32>
    %291 = vector.extract_strided_slice %276 {offsets = [0, 32], sizes = [16, 32], strides = [1, 1]} : vector<16x96xf32> to vector<16x32xf32>
    %292 = vector.extract_strided_slice %271 {offsets = [1, 0], sizes = [1, 32], strides = [1, 1]} : vector<15x32xf32> to vector<1x32xf32>
    %293 = vector.broadcast %292 : vector<1x32xf32> to vector<16x32xf32>
    %294 = arith.addf %291, %293 : vector<16x32xf32>
    %295 = vector.extract_strided_slice %294 {offsets = [0, 0], sizes = [16, 8], strides = [1, 1]} : vector<16x32xf32> to vector<16x8xf32>
    %296 = vector.extract_strided_slice %294 {offsets = [0, 8], sizes = [16, 8], strides = [1, 1]} : vector<16x32xf32> to vector<16x8xf32>
    %297 = vector.extract_strided_slice %294 {offsets = [0, 16], sizes = [16, 8], strides = [1, 1]} : vector<16x32xf32> to vector<16x8xf32>
    %298 = vector.extract_strided_slice %294 {offsets = [0, 24], sizes = [16, 8], strides = [1, 1]} : vector<16x32xf32> to vector<16x8xf32>
    %299 = vector.shape_cast %295 : vector<16x8xf32> to vector<1x16x8xf32>
    %300 = vector.shape_cast %296 : vector<16x8xf32> to vector<1x16x8xf32>
    %301 = vector.shape_cast %297 : vector<16x8xf32> to vector<1x16x8xf32>
    %302 = vector.shape_cast %298 : vector<16x8xf32> to vector<1x16x8xf32>
    %303 = tpu.concatenate %299, %300, %301, %302 in 0 : vector<1x16x8xf32>, vector<1x16x8xf32>, vector<1x16x8xf32>, vector<1x16x8xf32> -> vector<4x16x8xf32>
    %304 = vector.shape_cast %303 : vector<4x16x8xf32> to vector<8x8x8xf32>
    %305 = vector.extract_strided_slice %276 {offsets = [0, 64], sizes = [16, 32], strides = [1, 1]} : vector<16x96xf32> to vector<16x32xf32>
    %306 = vector.extract_strided_slice %271 {offsets = [2, 0], sizes = [1, 32], strides = [1, 1]} : vector<15x32xf32> to vector<1x32xf32>
    %307 = vector.broadcast %306 : vector<1x32xf32> to vector<16x32xf32>
    %308 = arith.addf %305, %307 : vector<16x32xf32>
    %309 = vector.extract_strided_slice %308 {offsets = [0, 0], sizes = [16, 8], strides = [1, 1]} : vector<16x32xf32> to vector<16x8xf32>
    %310 = vector.extract_strided_slice %308 {offsets = [0, 8], sizes = [16, 8], strides = [1, 1]} : vector<16x32xf32> to vector<16x8xf32>
    %311 = vector.extract_strided_slice %308 {offsets = [0, 16], sizes = [16, 8], strides = [1, 1]} : vector<16x32xf32> to vector<16x8xf32>
    %312 = vector.extract_strided_slice %308 {offsets = [0, 24], sizes = [16, 8], strides = [1, 1]} : vector<16x32xf32> to vector<16x8xf32>
    %313 = vector.shape_cast %309 : vector<16x8xf32> to vector<1x16x8xf32>
    %314 = vector.shape_cast %310 : vector<16x8xf32> to vector<1x16x8xf32>
    %315 = vector.shape_cast %311 : vector<16x8xf32> to vector<1x16x8xf32>
    %316 = vector.shape_cast %312 : vector<16x8xf32> to vector<1x16x8xf32>
    %317 = tpu.concatenate %313, %314, %315, %316 in 0 : vector<1x16x8xf32>, vector<1x16x8xf32>, vector<1x16x8xf32>, vector<1x16x8xf32> -> vector<4x16x8xf32>
    %318 = vector.shape_cast %317 : vector<4x16x8xf32> to vector<8x8x8xf32>
    %319 = arith.truncf %290 : vector<8x8x8xf32> to vector<8x8x8xbf16>
    %320 = arith.truncf %304 : vector<8x8x8xf32> to vector<8x8x8xbf16>
    %cst_52 = arith.constant dense<0.000000e+00> : vector<8x8x8xf32>
    %321 = tpu.matmul %319, %320, %cst_52 {dimension_numbers = #tpu.dot_dimension_numbers<[2], [2], [1], [1], [0, 0, 0, 1, 1, 1], [0], [0]>} : vector<8x8x8xbf16>, vector<8x8x8xbf16>, vector<8x8x8xf32> -> vector<8x8x8xf32>
    %322 = vector.shape_cast %13 : vector<8x8xf32> to vector<1x8x8xf32>
    %323 = vector.broadcast %322 : vector<1x8x8xf32> to vector<8x8x8xf32>
    %324 = arith.addf %321, %323 : vector<8x8x8xf32>
    %cst_53 = arith.constant dense<0xFF800000> : vector<8x8xf32>
    %325 = vector.multi_reduction <maximumf>, %324, %cst_53 [2] : vector<8x8x8xf32> to vector<8x8xf32>
    %326 = vector.shape_cast %325 : vector<8x8xf32> to vector<8x8x1xf32>
    %327 = vector.broadcast %326 : vector<8x8x1xf32> to vector<8x8x8xf32>
    %328 = arith.subf %324, %327 : vector<8x8x8xf32>
    %329 = math.exp %328 : vector<8x8x8xf32>
    %cst_54 = arith.constant dense<0.000000e+00> : vector<8x8xf32>
    %330 = vector.multi_reduction <add>, %329, %cst_54 [2] : vector<8x8x8xf32> to vector<8x8xf32>
    %331 = vector.shape_cast %330 : vector<8x8xf32> to vector<8x8x1xf32>
    %332 = tpu.reciprocal %331 {approx = true} : vector<8x8x1xf32> -> vector<8x8x1xf32>
    %333 = vector.broadcast %332 : vector<8x8x1xf32> to vector<8x8x8xf32>
    %334 = arith.mulf %329, %333 : vector<8x8x8xf32>
    %335 = arith.truncf %334 : vector<8x8x8xf32> to vector<8x8x8xbf16>
    %336 = arith.truncf %318 : vector<8x8x8xf32> to vector<8x8x8xbf16>
    %cst_55 = arith.constant dense<0.000000e+00> : vector<8x8x8xf32>
    %337 = tpu.matmul %335, %336, %cst_55 {dimension_numbers = #tpu.dot_dimension_numbers<[2], [1], [1], [2], [0, 0, 0, 1, 1, 2], [0], [0]>} : vector<8x8x8xbf16>, vector<8x8x8xbf16>, vector<8x8x8xf32> -> vector<8x8x8xf32>
    %338 = vector.shape_cast %337 : vector<8x8x8xf32> to vector<4x16x8xf32>
    %339 = vector.extract_strided_slice %338 {offsets = [0, 0, 0], sizes = [1, 16, 8], strides = [1, 1, 1]} : vector<4x16x8xf32> to vector<1x16x8xf32>
    %340 = vector.shape_cast %339 : vector<1x16x8xf32> to vector<16x8xf32>
    %341 = vector.extract_strided_slice %338 {offsets = [1, 0, 0], sizes = [1, 16, 8], strides = [1, 1, 1]} : vector<4x16x8xf32> to vector<1x16x8xf32>
    %342 = vector.shape_cast %341 : vector<1x16x8xf32> to vector<16x8xf32>
    %343 = vector.extract_strided_slice %338 {offsets = [2, 0, 0], sizes = [1, 16, 8], strides = [1, 1, 1]} : vector<4x16x8xf32> to vector<1x16x8xf32>
    %344 = vector.shape_cast %343 : vector<1x16x8xf32> to vector<16x8xf32>
    %345 = vector.extract_strided_slice %338 {offsets = [3, 0, 0], sizes = [1, 16, 8], strides = [1, 1, 1]} : vector<4x16x8xf32> to vector<1x16x8xf32>
    %346 = vector.shape_cast %345 : vector<1x16x8xf32> to vector<16x8xf32>
    %347 = tpu.concatenate %340, %342, %344, %346 in 1 : vector<16x8xf32>, vector<16x8xf32>, vector<16x8xf32>, vector<16x8xf32> -> vector<16x32xf32>
    %348 = arith.truncf %347 : vector<16x32xf32> to vector<16x32xbf16>
    %349 = vector.extract_strided_slice %273 {offsets = [0, 96], sizes = [32, 32], strides = [1, 1]} : vector<32x128xbf16> to vector<32x32xbf16>
    %cst_56 = arith.constant dense<0.000000e+00> : vector<16x32xf32>
    %350 = tpu.matmul %348, %349, %cst_56 {dimension_numbers = #tpu.dot_dimension_numbers<[1], [0], [0], [1], [0, 0, 1, 1], [], []>} : vector<16x32xbf16>, vector<32x32xbf16>, vector<16x32xf32> -> vector<16x32xf32>
    %351 = vector.extract_strided_slice %271 {offsets = [3, 0], sizes = [1, 32], strides = [1, 1]} : vector<15x32xf32> to vector<1x32xf32>
    %352 = vector.broadcast %351 : vector<1x32xf32> to vector<16x32xf32>
    %353 = arith.addf %350, %352 : vector<16x32xf32>
    %354 = arith.addf %269, %353 : vector<16x32xf32>
    %355 = vector.extract_strided_slice %271 {offsets = [9, 0], sizes = [1, 32], strides = [1, 1]} : vector<15x32xf32> to vector<1x32xf32>
    %356 = vector.extract_strided_slice %271 {offsets = [10, 0], sizes = [1, 32], strides = [1, 1]} : vector<15x32xf32> to vector<1x32xf32>
    %cst_57 = arith.constant dense<0.000000e+00> : vector<16xf32>
    %357 = vector.multi_reduction <add>, %354, %cst_57 [1] : vector<16x32xf32> to vector<16xf32>
    %358 = vector.shape_cast %357 : vector<16xf32> to vector<16x1xf32>
    %cst_58 = arith.constant 3.200000e+01 : f32
    %359 = vector.broadcast %cst_58 : f32 to vector<16x1xf32>
    %360 = arith.divf %358, %359 : vector<16x1xf32>
    %361 = vector.broadcast %360 : vector<16x1xf32> to vector<16x32xf32>
    %362 = arith.subf %354, %361 : vector<16x32xf32>
    %363 = arith.mulf %362, %362 : vector<16x32xf32>
    %cst_59 = arith.constant dense<0.000000e+00> : vector<16xf32>
    %364 = vector.multi_reduction <add>, %363, %cst_59 [1] : vector<16x32xf32> to vector<16xf32>
    %365 = vector.shape_cast %364 : vector<16xf32> to vector<16x1xf32>
    %cst_60 = arith.constant 3.200000e+01 : f32
    %366 = vector.broadcast %cst_60 : f32 to vector<16x1xf32>
    %367 = arith.divf %365, %366 : vector<16x1xf32>
    %368 = vector.broadcast %360 : vector<16x1xf32> to vector<16x32xf32>
    %369 = arith.subf %354, %368 : vector<16x32xf32>
    %cst_61 = arith.constant 9.99999974E-6 : f32
    %370 = vector.broadcast %cst_61 : f32 to vector<16x1xf32>
    %371 = arith.addf %367, %370 : vector<16x1xf32>
    %372 = math.rsqrt %371 : vector<16x1xf32>
    %373 = vector.broadcast %372 : vector<16x1xf32> to vector<16x32xf32>
    %374 = arith.mulf %369, %373 : vector<16x32xf32>
    %375 = vector.broadcast %355 : vector<1x32xf32> to vector<16x32xf32>
    %376 = arith.mulf %374, %375 : vector<16x32xf32>
    %377 = vector.broadcast %356 : vector<1x32xf32> to vector<16x32xf32>
    %378 = arith.addf %376, %377 : vector<16x32xf32>
    %379 = vector.extract_strided_slice %3 {offsets = [1, 1, 0, 0], sizes = [1, 1, 32, 128], strides = [1, 1, 1, 1]} : vector<2x2x32x128xbf16> to vector<1x1x32x128xbf16>
    %380 = vector.shape_cast %379 : vector<1x1x32x128xbf16> to vector<32x128xbf16>
    %381 = arith.truncf %378 : vector<16x32xf32> to vector<16x32xbf16>
    %382 = vector.extract_strided_slice %380 {offsets = [0, 0], sizes = [32, 32], strides = [1, 1]} : vector<32x128xbf16> to vector<32x32xbf16>
    %cst_62 = arith.constant dense<0.000000e+00> : vector<16x32xf32>
    %383 = tpu.matmul %381, %382, %cst_62 {dimension_numbers = #tpu.dot_dimension_numbers<[1], [0], [0], [1], [0, 0, 1, 1], [], []>} : vector<16x32xbf16>, vector<32x32xbf16>, vector<16x32xf32> -> vector<16x32xf32>
    %384 = vector.extract_strided_slice %380 {offsets = [0, 32], sizes = [32, 64], strides = [1, 1]} : vector<32x128xbf16> to vector<32x64xbf16>
    %cst_63 = arith.constant dense<0.000000e+00> : vector<32x64xf32>
    %385 = tpu.matmul %2, %384, %cst_63 {dimension_numbers = #tpu.dot_dimension_numbers<[1], [0], [0], [1], [0, 0, 1, 1], [], []>} : vector<32x32xbf16>, vector<32x64xbf16>, vector<32x64xf32> -> vector<32x64xf32>
    %386 = vector.extract_strided_slice %271 {offsets = [4, 0], sizes = [1, 32], strides = [1, 1]} : vector<15x32xf32> to vector<1x32xf32>
    %387 = vector.broadcast %386 : vector<1x32xf32> to vector<16x32xf32>
    %388 = arith.addf %383, %387 : vector<16x32xf32>
    %389 = vector.extract_strided_slice %388 {offsets = [0, 0], sizes = [16, 8], strides = [1, 1]} : vector<16x32xf32> to vector<16x8xf32>
    %390 = vector.extract_strided_slice %388 {offsets = [0, 8], sizes = [16, 8], strides = [1, 1]} : vector<16x32xf32> to vector<16x8xf32>
    %391 = vector.extract_strided_slice %388 {offsets = [0, 16], sizes = [16, 8], strides = [1, 1]} : vector<16x32xf32> to vector<16x8xf32>
    %392 = vector.extract_strided_slice %388 {offsets = [0, 24], sizes = [16, 8], strides = [1, 1]} : vector<16x32xf32> to vector<16x8xf32>
    %393 = vector.shape_cast %389 : vector<16x8xf32> to vector<1x16x8xf32>
    %394 = vector.shape_cast %390 : vector<16x8xf32> to vector<1x16x8xf32>
    %395 = vector.shape_cast %391 : vector<16x8xf32> to vector<1x16x8xf32>
    %396 = vector.shape_cast %392 : vector<16x8xf32> to vector<1x16x8xf32>
    %397 = tpu.concatenate %393, %394, %395, %396 in 0 : vector<1x16x8xf32>, vector<1x16x8xf32>, vector<1x16x8xf32>, vector<1x16x8xf32> -> vector<4x16x8xf32>
    %398 = vector.shape_cast %397 : vector<4x16x8xf32> to vector<8x8x8xf32>
    %399 = vector.extract_strided_slice %385 {offsets = [0, 0], sizes = [32, 32], strides = [1, 1]} : vector<32x64xf32> to vector<32x32xf32>
    %400 = vector.extract_strided_slice %271 {offsets = [5, 0], sizes = [1, 32], strides = [1, 1]} : vector<15x32xf32> to vector<1x32xf32>
    %401 = vector.broadcast %400 : vector<1x32xf32> to vector<32x32xf32>
    %402 = arith.addf %399, %401 : vector<32x32xf32>
    %403 = vector.extract_strided_slice %402 {offsets = [0, 0], sizes = [32, 8], strides = [1, 1]} : vector<32x32xf32> to vector<32x8xf32>
    %404 = vector.extract_strided_slice %402 {offsets = [0, 8], sizes = [32, 8], strides = [1, 1]} : vector<32x32xf32> to vector<32x8xf32>
    %405 = vector.extract_strided_slice %402 {offsets = [0, 16], sizes = [32, 8], strides = [1, 1]} : vector<32x32xf32> to vector<32x8xf32>
    %406 = vector.extract_strided_slice %402 {offsets = [0, 24], sizes = [32, 8], strides = [1, 1]} : vector<32x32xf32> to vector<32x8xf32>
    %407 = vector.shape_cast %403 : vector<32x8xf32> to vector<1x32x8xf32>
    %408 = vector.shape_cast %404 : vector<32x8xf32> to vector<1x32x8xf32>
    %409 = vector.shape_cast %405 : vector<32x8xf32> to vector<1x32x8xf32>
    %410 = vector.shape_cast %406 : vector<32x8xf32> to vector<1x32x8xf32>
    %411 = tpu.concatenate %407, %408, %409, %410 in 0 : vector<1x32x8xf32>, vector<1x32x8xf32>, vector<1x32x8xf32>, vector<1x32x8xf32> -> vector<4x32x8xf32>
    %412 = vector.shape_cast %411 : vector<4x32x8xf32> to vector<8x16x8xf32>
    %413 = vector.extract_strided_slice %385 {offsets = [0, 32], sizes = [32, 32], strides = [1, 1]} : vector<32x64xf32> to vector<32x32xf32>
    %414 = vector.extract_strided_slice %271 {offsets = [6, 0], sizes = [1, 32], strides = [1, 1]} : vector<15x32xf32> to vector<1x32xf32>
    %415 = vector.broadcast %414 : vector<1x32xf32> to vector<32x32xf32>
    %416 = arith.addf %413, %415 : vector<32x32xf32>
    %417 = vector.extract_strided_slice %416 {offsets = [0, 0], sizes = [32, 8], strides = [1, 1]} : vector<32x32xf32> to vector<32x8xf32>
    %418 = vector.extract_strided_slice %416 {offsets = [0, 8], sizes = [32, 8], strides = [1, 1]} : vector<32x32xf32> to vector<32x8xf32>
    %419 = vector.extract_strided_slice %416 {offsets = [0, 16], sizes = [32, 8], strides = [1, 1]} : vector<32x32xf32> to vector<32x8xf32>
    %420 = vector.extract_strided_slice %416 {offsets = [0, 24], sizes = [32, 8], strides = [1, 1]} : vector<32x32xf32> to vector<32x8xf32>
    %421 = vector.shape_cast %417 : vector<32x8xf32> to vector<1x32x8xf32>
    %422 = vector.shape_cast %418 : vector<32x8xf32> to vector<1x32x8xf32>
    %423 = vector.shape_cast %419 : vector<32x8xf32> to vector<1x32x8xf32>
    %424 = vector.shape_cast %420 : vector<32x8xf32> to vector<1x32x8xf32>
    %425 = tpu.concatenate %421, %422, %423, %424 in 0 : vector<1x32x8xf32>, vector<1x32x8xf32>, vector<1x32x8xf32>, vector<1x32x8xf32> -> vector<4x32x8xf32>
    %426 = vector.shape_cast %425 : vector<4x32x8xf32> to vector<8x16x8xf32>
    %427 = arith.truncf %398 : vector<8x8x8xf32> to vector<8x8x8xbf16>
    %428 = arith.truncf %412 : vector<8x16x8xf32> to vector<8x16x8xbf16>
    %cst_64 = arith.constant dense<0.000000e+00> : vector<8x8x16xf32>
    %429 = tpu.matmul %427, %428, %cst_64 {dimension_numbers = #tpu.dot_dimension_numbers<[2], [2], [1], [1], [0, 0, 0, 1, 1, 1], [0], [0]>} : vector<8x8x8xbf16>, vector<8x16x8xbf16>, vector<8x8x16xf32> -> vector<8x8x16xf32>
    %cst_65 = arith.constant dense<0xFF800000> : vector<8x8xf32>
    %430 = vector.multi_reduction <maximumf>, %429, %cst_65 [2] : vector<8x8x16xf32> to vector<8x8xf32>
    %431 = vector.shape_cast %430 : vector<8x8xf32> to vector<8x8x1xf32>
    %432 = vector.broadcast %431 : vector<8x8x1xf32> to vector<8x8x16xf32>
    %433 = arith.subf %429, %432 : vector<8x8x16xf32>
    %434 = math.exp %433 : vector<8x8x16xf32>
    %cst_66 = arith.constant dense<0.000000e+00> : vector<8x8xf32>
    %435 = vector.multi_reduction <add>, %434, %cst_66 [2] : vector<8x8x16xf32> to vector<8x8xf32>
    %436 = vector.shape_cast %435 : vector<8x8xf32> to vector<8x8x1xf32>
    %437 = tpu.reciprocal %436 {approx = true} : vector<8x8x1xf32> -> vector<8x8x1xf32>
    %438 = vector.broadcast %437 : vector<8x8x1xf32> to vector<8x8x16xf32>
    %439 = arith.mulf %434, %438 : vector<8x8x16xf32>
    %440 = arith.truncf %439 : vector<8x8x16xf32> to vector<8x8x16xbf16>
    %441 = arith.truncf %426 : vector<8x16x8xf32> to vector<8x16x8xbf16>
    %cst_67 = arith.constant dense<0.000000e+00> : vector<8x8x8xf32>
    %442 = tpu.matmul %440, %441, %cst_67 {dimension_numbers = #tpu.dot_dimension_numbers<[2], [1], [1], [2], [0, 0, 0, 1, 1, 2], [0], [0]>} : vector<8x8x16xbf16>, vector<8x16x8xbf16>, vector<8x8x8xf32> -> vector<8x8x8xf32>
    %443 = vector.shape_cast %442 : vector<8x8x8xf32> to vector<4x16x8xf32>
    %444 = vector.extract_strided_slice %443 {offsets = [0, 0, 0], sizes = [1, 16, 8], strides = [1, 1, 1]} : vector<4x16x8xf32> to vector<1x16x8xf32>
    %445 = vector.shape_cast %444 : vector<1x16x8xf32> to vector<16x8xf32>
    %446 = vector.extract_strided_slice %443 {offsets = [1, 0, 0], sizes = [1, 16, 8], strides = [1, 1, 1]} : vector<4x16x8xf32> to vector<1x16x8xf32>
    %447 = vector.shape_cast %446 : vector<1x16x8xf32> to vector<16x8xf32>
    %448 = vector.extract_strided_slice %443 {offsets = [2, 0, 0], sizes = [1, 16, 8], strides = [1, 1, 1]} : vector<4x16x8xf32> to vector<1x16x8xf32>
    %449 = vector.shape_cast %448 : vector<1x16x8xf32> to vector<16x8xf32>
    %450 = vector.extract_strided_slice %443 {offsets = [3, 0, 0], sizes = [1, 16, 8], strides = [1, 1, 1]} : vector<4x16x8xf32> to vector<1x16x8xf32>
    %451 = vector.shape_cast %450 : vector<1x16x8xf32> to vector<16x8xf32>
    %452 = tpu.concatenate %445, %447, %449, %451 in 1 : vector<16x8xf32>, vector<16x8xf32>, vector<16x8xf32>, vector<16x8xf32> -> vector<16x32xf32>
    %453 = arith.truncf %452 : vector<16x32xf32> to vector<16x32xbf16>
    %454 = vector.extract_strided_slice %380 {offsets = [0, 96], sizes = [32, 32], strides = [1, 1]} : vector<32x128xbf16> to vector<32x32xbf16>
    %cst_68 = arith.constant dense<0.000000e+00> : vector<16x32xf32>
    %455 = tpu.matmul %453, %454, %cst_68 {dimension_numbers = #tpu.dot_dimension_numbers<[1], [0], [0], [1], [0, 0, 1, 1], [], []>} : vector<16x32xbf16>, vector<32x32xbf16>, vector<16x32xf32> -> vector<16x32xf32>
    %456 = vector.extract_strided_slice %271 {offsets = [7, 0], sizes = [1, 32], strides = [1, 1]} : vector<15x32xf32> to vector<1x32xf32>
    %457 = vector.broadcast %456 : vector<1x32xf32> to vector<16x32xf32>
    %458 = arith.addf %455, %457 : vector<16x32xf32>
    %459 = arith.addf %378, %458 : vector<16x32xf32>
    %460 = vector.extract_strided_slice %271 {offsets = [11, 0], sizes = [1, 32], strides = [1, 1]} : vector<15x32xf32> to vector<1x32xf32>
    %461 = vector.extract_strided_slice %271 {offsets = [12, 0], sizes = [1, 32], strides = [1, 1]} : vector<15x32xf32> to vector<1x32xf32>
    %cst_69 = arith.constant dense<0.000000e+00> : vector<16xf32>
    %462 = vector.multi_reduction <add>, %459, %cst_69 [1] : vector<16x32xf32> to vector<16xf32>
    %463 = vector.shape_cast %462 : vector<16xf32> to vector<16x1xf32>
    %cst_70 = arith.constant 3.200000e+01 : f32
    %464 = vector.broadcast %cst_70 : f32 to vector<16x1xf32>
    %465 = arith.divf %463, %464 : vector<16x1xf32>
    %466 = vector.broadcast %465 : vector<16x1xf32> to vector<16x32xf32>
    %467 = arith.subf %459, %466 : vector<16x32xf32>
    %468 = arith.mulf %467, %467 : vector<16x32xf32>
    %cst_71 = arith.constant dense<0.000000e+00> : vector<16xf32>
    %469 = vector.multi_reduction <add>, %468, %cst_71 [1] : vector<16x32xf32> to vector<16xf32>
    %470 = vector.shape_cast %469 : vector<16xf32> to vector<16x1xf32>
    %cst_72 = arith.constant 3.200000e+01 : f32
    %471 = vector.broadcast %cst_72 : f32 to vector<16x1xf32>
    %472 = arith.divf %470, %471 : vector<16x1xf32>
    %473 = vector.broadcast %465 : vector<16x1xf32> to vector<16x32xf32>
    %474 = arith.subf %459, %473 : vector<16x32xf32>
    %cst_73 = arith.constant 9.99999974E-6 : f32
    %475 = vector.broadcast %cst_73 : f32 to vector<16x1xf32>
    %476 = arith.addf %472, %475 : vector<16x1xf32>
    %477 = math.rsqrt %476 : vector<16x1xf32>
    %478 = vector.broadcast %477 : vector<16x1xf32> to vector<16x32xf32>
    %479 = arith.mulf %474, %478 : vector<16x32xf32>
    %480 = vector.broadcast %460 : vector<1x32xf32> to vector<16x32xf32>
    %481 = arith.mulf %479, %480 : vector<16x32xf32>
    %482 = vector.broadcast %461 : vector<1x32xf32> to vector<16x32xf32>
    %483 = arith.addf %481, %482 : vector<16x32xf32>
    %484 = arith.truncf %483 : vector<16x32xf32> to vector<16x32xbf16>
    %485 = vector.extract_strided_slice %4 {offsets = [1, 0, 0], sizes = [1, 32, 64], strides = [1, 1, 1]} : vector<2x32x64xbf16> to vector<1x32x64xbf16>
    %486 = vector.shape_cast %485 : vector<1x32x64xbf16> to vector<32x64xbf16>
    %cst_74 = arith.constant dense<0.000000e+00> : vector<16x64xf32>
    %487 = tpu.matmul %484, %486, %cst_74 {dimension_numbers = #tpu.dot_dimension_numbers<[1], [0], [0], [1], [0, 0, 1, 1], [], []>} : vector<16x32xbf16>, vector<32x64xbf16>, vector<16x64xf32> -> vector<16x64xf32>
    %488 = vector.extract_strided_slice %6 {offsets = [1, 0, 0], sizes = [1, 1, 64], strides = [1, 1, 1]} : vector<2x1x64xf32> to vector<1x1x64xf32>
    %489 = vector.shape_cast %488 : vector<1x1x64xf32> to vector<1x64xf32>
    %490 = vector.broadcast %489 : vector<1x64xf32> to vector<16x64xf32>
    %491 = arith.addf %487, %490 : vector<16x64xf32>
    %cst_75 = arith.constant 0.000000e+00 : f32
    %492 = vector.broadcast %cst_75 : f32 to vector<16x64xf32>
    %493 = arith.maximumf %491, %492 : vector<16x64xf32>
    %494 = arith.truncf %493 : vector<16x64xf32> to vector<16x64xbf16>
    %495 = vector.extract_strided_slice %5 {offsets = [1, 0, 0], sizes = [1, 64, 32], strides = [1, 1, 1]} : vector<2x64x32xbf16> to vector<1x64x32xbf16>
    %496 = vector.shape_cast %495 : vector<1x64x32xbf16> to vector<64x32xbf16>
    %cst_76 = arith.constant dense<0.000000e+00> : vector<16x32xf32>
    %497 = tpu.matmul %494, %496, %cst_76 {dimension_numbers = #tpu.dot_dimension_numbers<[1], [0], [0], [1], [0, 0, 1, 1], [], []>} : vector<16x64xbf16>, vector<64x32xbf16>, vector<16x32xf32> -> vector<16x32xf32>
    %498 = vector.extract_strided_slice %271 {offsets = [8, 0], sizes = [1, 32], strides = [1, 1]} : vector<15x32xf32> to vector<1x32xf32>
    %499 = vector.broadcast %498 : vector<1x32xf32> to vector<16x32xf32>
    %500 = arith.addf %497, %499 : vector<16x32xf32>
    %501 = arith.addf %483, %500 : vector<16x32xf32>
    %502 = vector.extract_strided_slice %271 {offsets = [13, 0], sizes = [1, 32], strides = [1, 1]} : vector<15x32xf32> to vector<1x32xf32>
    %503 = vector.extract_strided_slice %271 {offsets = [14, 0], sizes = [1, 32], strides = [1, 1]} : vector<15x32xf32> to vector<1x32xf32>
    %cst_77 = arith.constant dense<0.000000e+00> : vector<16xf32>
    %504 = vector.multi_reduction <add>, %501, %cst_77 [1] : vector<16x32xf32> to vector<16xf32>
    %505 = vector.shape_cast %504 : vector<16xf32> to vector<16x1xf32>
    %cst_78 = arith.constant 3.200000e+01 : f32
    %506 = vector.broadcast %cst_78 : f32 to vector<16x1xf32>
    %507 = arith.divf %505, %506 : vector<16x1xf32>
    %508 = vector.broadcast %507 : vector<16x1xf32> to vector<16x32xf32>
    %509 = arith.subf %501, %508 : vector<16x32xf32>
    %510 = arith.mulf %509, %509 : vector<16x32xf32>
    %cst_79 = arith.constant dense<0.000000e+00> : vector<16xf32>
    %511 = vector.multi_reduction <add>, %510, %cst_79 [1] : vector<16x32xf32> to vector<16xf32>
    %512 = vector.shape_cast %511 : vector<16xf32> to vector<16x1xf32>
    %cst_80 = arith.constant 3.200000e+01 : f32
    %513 = vector.broadcast %cst_80 : f32 to vector<16x1xf32>
    %514 = arith.divf %512, %513 : vector<16x1xf32>
    %515 = vector.broadcast %507 : vector<16x1xf32> to vector<16x32xf32>
    %516 = arith.subf %501, %515 : vector<16x32xf32>
    %cst_81 = arith.constant 9.99999974E-6 : f32
    %517 = vector.broadcast %cst_81 : f32 to vector<16x1xf32>
    %518 = arith.addf %514, %517 : vector<16x1xf32>
    %519 = math.rsqrt %518 : vector<16x1xf32>
    %520 = vector.broadcast %519 : vector<16x1xf32> to vector<16x32xf32>
    %521 = arith.mulf %516, %520 : vector<16x32xf32>
    %522 = vector.broadcast %502 : vector<1x32xf32> to vector<16x32xf32>
    %523 = arith.mulf %521, %522 : vector<16x32xf32>
    %524 = vector.broadcast %503 : vector<1x32xf32> to vector<16x32xf32>
    %525 = arith.addf %523, %524 : vector<16x32xf32>
    %c0_82 = arith.constant 0 : index
    %c0_83 = arith.constant 0 : index
    %526 = vector.load %arg7[%c0_82, %c0_83] : memref<2x32xf32, #tpu.memory_space<vmem>>, vector<2x32xf32>
    %527 = vector.extract_strided_slice %526 {offsets = [0, 0], sizes = [1, 32], strides = [1, 1]} : vector<2x32xf32> to vector<1x32xf32>
    %528 = vector.extract_strided_slice %526 {offsets = [1, 0], sizes = [1, 32], strides = [1, 1]} : vector<2x32xf32> to vector<1x32xf32>
    %cst_84 = arith.constant dense<0.000000e+00> : vector<16xf32>
    %529 = vector.multi_reduction <add>, %525, %cst_84 [1] : vector<16x32xf32> to vector<16xf32>
    %530 = vector.shape_cast %529 : vector<16xf32> to vector<16x1xf32>
    %cst_85 = arith.constant 3.200000e+01 : f32
    %531 = vector.broadcast %cst_85 : f32 to vector<16x1xf32>
    %532 = arith.divf %530, %531 : vector<16x1xf32>
    %533 = vector.broadcast %532 : vector<16x1xf32> to vector<16x32xf32>
    %534 = arith.subf %525, %533 : vector<16x32xf32>
    %535 = arith.mulf %534, %534 : vector<16x32xf32>
    %cst_86 = arith.constant dense<0.000000e+00> : vector<16xf32>
    %536 = vector.multi_reduction <add>, %535, %cst_86 [1] : vector<16x32xf32> to vector<16xf32>
    %537 = vector.shape_cast %536 : vector<16xf32> to vector<16x1xf32>
    %cst_87 = arith.constant 3.200000e+01 : f32
    %538 = vector.broadcast %cst_87 : f32 to vector<16x1xf32>
    %539 = arith.divf %537, %538 : vector<16x1xf32>
    %540 = vector.broadcast %532 : vector<16x1xf32> to vector<16x32xf32>
    %541 = arith.subf %525, %540 : vector<16x32xf32>
    %cst_88 = arith.constant 9.99999974E-6 : f32
    %542 = vector.broadcast %cst_88 : f32 to vector<16x1xf32>
    %543 = arith.addf %539, %542 : vector<16x1xf32>
    %544 = math.rsqrt %543 : vector<16x1xf32>
    %545 = vector.broadcast %544 : vector<16x1xf32> to vector<16x32xf32>
    %546 = arith.mulf %541, %545 : vector<16x32xf32>
    %547 = vector.broadcast %527 : vector<1x32xf32> to vector<16x32xf32>
    %548 = arith.mulf %546, %547 : vector<16x32xf32>
    %549 = vector.broadcast %528 : vector<1x32xf32> to vector<16x32xf32>
    %550 = arith.addf %548, %549 : vector<16x32xf32>
    %c0_89 = arith.constant 0 : index
    %c0_90 = arith.constant 0 : index
    %551 = vector.load %arg8[%c0_89, %c0_90] : memref<16x32xf32, #tpu.memory_space<vmem>>, vector<16x32xf32>
    tpu.vector_store %arg8[%c0_89, %c0_90], %550 {strides = array<i32>} : memref<16x32xf32, #tpu.memory_space<vmem>>, vector<16x32xf32>,
    return
  }
}

</mosaic_0001>

<bundles_post_ra>
// kernel: transformer_decoder_pallas.1
= control target key start
LH: loop header
LB: loop body
LE: loop exit
PB: predicated region body
PF: predicated region fallthrough
CT: control target
= control target key end

     0   :  { %v84_v0 = vlaneseq  ;;  %v6572_v1 = vmov 0.0   ;;  %vm6573_vm0 = vmmov 0   ;;  %vm103_vm1 = vcmask 261120   ;;  %s6575_s15 = smov 112   ;;  %s6576_s16 = smov 120   ;;  %s7865_s2 = inlined_call_operand.vmem [shape: bf16[2,2,32,128], index: 2, kind: input, shape index: {}]   ;;  %s7866_s0 = inlined_call_operand.vmem [shape: f32[16,32], index: 0, kind: input, shape index: {}]   ;;  %s7867_s6 = inlined_call_operand.vmem [shape: f32[2,15,32], index: 6, kind: input, shape index: {}]   ;;  %s7868_s1 = inlined_call_operand.vmem [shape: f32[32,32], index: 1, kind: input, shape index: {}]   ;;  %s7869_s3 = inlined_call_operand.vmem [shape: bf16[2,32,64], index: 3, kind: input, shape index: {}]   ;;  %s7870_s4 = inlined_call_operand.vmem [shape: bf16[2,64,32], index: 4, kind: input, shape index: {}]   ;;  %s7871_s5 = inlined_call_operand.vmem [shape: f32[2,1,64], index: 5, kind: input, shape index: {}]   ;;  %s7872_s7 = inlined_call_operand.vmem [shape: f32[2,32], index: 7, kind: input, shape index: {}]   ;;  %s7873_s8 = inlined_call_operand.vmem [shape: f32[16,32], index: 8, kind: output, shape index: {}]  }
   0x1   :  { %5576 = vmatprep.subr.bf16.mxu1 %v6572_v1  ;;  %v6633_v2 = vld [vmem:[%s7865_s2 + $0x8] sm:$0xff]   ;;  %5580 = vmatprep.mubr.msk.bf16.mxu1 %vm6573_vm0, %v6572_v1  ;;  %v6640_v3 = vld [vmem:[%s7865_s2] sm:$0xff]   ;;  %s6577_s17 = smov 104   ;;  %s6578_s18 = smov 96   ;;  %vm253_vm2 = vcmask 64512   ;;  %vm753_vm4 = vcmask 1043456  }
   0x2   :  { %v6643_v4 = vshrl.u32 %v84_v0, 7  ;;  %5590 = vmatprep.subr.bf16.mxu0 %v6572_v1  ;;  %5592 = vmatprep.mubr.msk.bf16.mxu0 %vm6573_vm0, %v6572_v1  ;;  %v6652_v5 = vld [vmem:[%s7866_s0] sm:$0xff]  ;;  %v6657_v6 = vld [vmem:[%s7866_s0 + $0x8] sm:$0xff]  ;;  %s6574_s0 = smov 32   ;;  %s6579_s19 = smov 64   ;;  %vm1166_vm5 = vcmask 130048  }
   0x3   :  { %5577 = vmatpush3.bf16.msra.mxu1 %v6633_v2  ;;  %v6662_v7 = vld [vmem:[%s7867_s6] sm:$0xff]  ;;  %v90_v9 = vpack.c.bf16 %v6657_v6, %v6652_v5  ;;  %s6581_s20 = smov 8   ;;  %s6582_s21 = smov 16   ;;  %vm1169_vm6 = vcmask 195584   ;;  %vm2593_vm7 = vcmask 523264  }
   0x4   :  { %5578 = vmatprep.subr.bf16.mxu1 %v6572_v1  ;;  %v6666_v8 = vsub.s32 1, %v6643_v4  ;;  %v6690_v21 = vsub.s32 0, %v6643_v4  ;;  %v6713_v47 = vsub.s32 2, %v6643_v4  ;;  %s6583_s22 = smov 24  }
   0x6   :  { %v177_v10 = vrot.slane %v6662_v7, %v6666_v8  ;;  %v151_v24 = vrot.slane %v6662_v7, %v6690_v21  ;;  %v207_v48 = vrot.slane %v6662_v7, %v6713_v47 }
   0x7   :  { %5579 = vmatpush3.bf16.msra.mxu1 %v6640_v3 }
   0x8   :  { %179 = vrot.lane.b32.xlu0 %v177_v10, %s6574_s0  ;;  %5584 = vmatprep.subr.bf16.mxu1 %v6572_v1 }
   0xa   :  { %5581 = vmatmul.mubr.msk.bf16.vlgmr.msra.gmra.mxu1 %vm103_vm1, %v90_v9 }
   0xb   :  { %5586 = vmatprep.mubr.msk.bf16.mxu1 %vm6573_vm0, %v6572_v1 }
  0x7a   :  { %v180_v12 = vpop.permute.xlu0 %179 }
  0xca   :  { %v6678_v11 = vpop.f32.mrf.mxu1 }
  0xcb   :  { %v182_v15 = vadd.f32 %v180_v12, %v6678_v11  ;;  %v152_v33 = vadd.f32 %v151_v24, %v6678_v11 }
  0xcc   :  { %v5582_v13 = vpop.f32.mrf.mxu1 }
  0xcd   :  { %v242_v19 = vpack.c.bf16 %v182_v15, %v182_v15  ;;  %v234_v40 = vpack.c.bf16 %v152_v33, %v152_v33 }
  0xce   :  { %v6680_v14 = vpop.f32.mrf.mxu1 }
  0xcf   :  { %v183_v16 = vadd.f32 %v180_v12, %v6680_v14  ;;  %v153_v27 = vadd.f32 %v151_v24, %v6680_v14 }
  0xd0   :  { %v5583_v17 = vpop.f32.mrf.mxu1 }
  0xd1   :  { %v6097_v18 = vpack.i.bf16 %v183_v16, %v182_v15  ;;  %v243_v20 = vpack.c.bf16 %v183_v16, %v183_v16  ;;  %v6107_v36 = vpack.i.bf16 %v153_v27, %v152_v33  ;;  %v235_v45 = vpack.c.bf16 %v153_v27, %v153_v27 }
  0xd3   :  { %6098 = vrot.lane.b32.xlu1 %v6097_v18, %s6575_s15  ;;  %6093 = vrot.lane.b32.xlu0 %v6097_v18, %s6576_s16 }
  0xd7   :  { %6103 = vrot.lane.b32.xlu1 %v6097_v18, %s6577_s17  ;;  %251 = vrot.lane.b32.xlu0 %v242_v19, %s6578_s18 }
  0xdb   :  { %301 = vrot.lane.b32.xlu1 %v243_v20, %s6578_s18 }
 0x145   :  { %v6099_v22 = vpop.permute.xlu1 %6098  ;;  %v6094_v23 = vpop.permute.xlu0 %6093 }
 0x146   :  { %v6096_v25 = vunpack.i.h.bf16 %v6094_v23  ;;  %v6095_v26 = vunpack.i.l.bf16 %v6094_v23  ;;  %v6100_v28 = vunpack.i.l.bf16 %v6099_v22  ;;  %v6101_v37 = vunpack.i.h.bf16 %v6099_v22 }
 0x148   :  { %v244_v29 = vpack.c.bf16 %v6095_v26, %v6095_v26  ;;  %v245_v30 = vpack.c.bf16 %v6096_v25, %v6096_v25  ;;  %v246_v35 = vpack.c.bf16 %v6100_v28, %v6100_v28  ;;  %v247_v43 = vpack.c.bf16 %v6101_v37, %v6101_v37 }
 0x149   :  { %v6104_v31 = vpop.permute.xlu1 %6103  ;;  %v252_v32 = vpop.permute.xlu0 %251 }
 0x14a   :  { %v258_v34 = vsel %vm253_vm2, %v252_v32, 0  ;;  %350 = vrot.lane.b32.xlu0 %v244_v29, %s6578_s18  ;;  %399 = vrot.lane.b32.xlu1 %v245_v30, %s6578_s18  ;;  %v6106_v41 = vunpack.i.h.bf16 %v6104_v31  ;;  %v6105_v42 = vunpack.i.l.bf16 %v6104_v31  ;;  %v6580_v29 = vmov -1e+30  }
 0x14b   :  { %5585 = vmatpush3.bf16.xpose.msra.mxu1 %v258_v34 }
 0x14c   :  { %5596 = vmatprep.subr.bf16.mxu1 %v6572_v1  ;;  %v249_v44 = vpack.c.bf16 %v6106_v41, %v6106_v41  ;;  %v248_v46 = vpack.c.bf16 %v6105_v42, %v6105_v42 }
 0x14d   :  { %v302_v38 = vpop.permute.xlu1 %301 }
 0x14e   :  { %448 = vrot.lane.b32.xlu1 %v246_v35, %s6578_s18  ;;  %6108 = vrot.lane.b32.xlu0 %v6107_v36, %s6576_s16  ;;  %v307_v39 = vsel %vm253_vm2, %v302_v38, 0 }
 0x14f   :  { %5591 = vmatpush3.bf16.xpose.msra.mxu0 %v307_v39 }
 0x150   :  { %5602 = vmatprep.subr.bf16.mxu0 %v6572_v1 }
 0x152   :  { %5587 = vmatmul.mubr.msk.bf16.vlgmr.msra.gmra.mxu1 %vm253_vm2, %v234_v40  ;;  %6113 = vrot.lane.b32.xlu1 %v6107_v36, %s6575_s15 }
 0x153   :  { %497 = vrot.lane.b32.xlu0 %v247_v43, %s6578_s18  ;;  %5598 = vmatprep.mubr.msk.bf16.mxu1 %vm6573_vm0, %v6572_v1 }
 0x156   :  { %595 = vrot.lane.b32.xlu1 %v249_v44, %s6578_s18  ;;  %5593 = vmatmul.mubr.msk.bf16.vlgmr.msra.gmra.mxu0 %vm253_vm2, %v235_v45 }
 0x157   :  { %546 = vrot.lane.b32.xlu0 %v248_v46, %s6578_s18  ;;  %5604 = vmatprep.mubr.msk.bf16.mxu0 %vm6573_vm0, %v6572_v1 }
 0x15b   :  { %6118 = vrot.lane.b32.xlu0 %v6107_v36, %s6577_s17 }
 0x15f   :  { %209 = vrot.lane.b32.xlu0 %v207_v48, %s6579_s19 }
 0x1bc   :  { %v351_v49 = vpop.permute.xlu0 %350  ;;  %v400_v50 = vpop.permute.xlu1 %399 }
 0x1bd   :  { %v356_v51 = vsel %vm253_vm2, %v351_v49, 0  ;;  %v405_v52 = vsel %vm253_vm2, %v400_v50, 0 }
 0x1be   :  { %5597 = vmatpush3.bf16.xpose.msra.mxu1 %v356_v51  ;;  %5603 = vmatpush3.bf16.xpose.msra.mxu0 %v405_v52 }
 0x1bf   :  { %5608 = vmatprep.subr.bf16.mxu1 %v6572_v1  ;;  %5614 = vmatprep.subr.bf16.mxu0 %v6572_v1 }
 0x1c0   :  { %v449_v53 = vpop.permute.xlu1 %448  ;;  %v6109_v54 = vpop.permute.xlu0 %6108 }
 0x1c1   :  { %v6111_v55 = vunpack.i.h.bf16 %v6109_v54  ;;  %v6110_v56 = vunpack.i.l.bf16 %v6109_v54  ;;  %v454_v60 = vsel %vm253_vm2, %v449_v53, 0 }
 0x1c3   :  { %v237_v57 = vpack.c.bf16 %v6111_v55, %v6111_v55  ;;  %v236_v58 = vpack.c.bf16 %v6110_v56, %v6110_v56 }
 0x1c4   :  { %v6114_v59 = vpop.permute.xlu1 %6113 }
 0x1c5   :  { %v498_v61 = vpop.permute.xlu0 %497  ;;  %5599 = vmatmul.mubr.msk.bf16.vlgmr.msra.gmra.mxu1 %vm253_vm2, %v236_v58  ;;  %5605 = vmatmul.mubr.msk.bf16.vlgmr.msra.gmra.mxu0 %vm253_vm2, %v237_v57  ;;  %v6115_v63 = vunpack.i.l.bf16 %v6114_v59  ;;  %v6116_v9 = vunpack.i.h.bf16 %v6114_v59 }
 0x1c6   :  { %v503_v62 = vsel %vm253_vm2, %v498_v61, 0  ;;  %5609 = vmatpush3.bf16.xpose.msra.mxu1 %v454_v60  ;;  %5610 = vmatprep.mubr.msk.bf16.mxu1 %vm6573_vm0, %v6572_v1 }
 0x1c7   :  { %5615 = vmatpush3.bf16.xpose.msra.mxu0 %v503_v62  ;;  %5616 = vmatprep.mubr.msk.bf16.mxu0 %vm6573_vm0, %v6572_v1  ;;  %v238_v12 = vpack.c.bf16 %v6115_v63, %v6115_v63  ;;  %v239_v15 = vpack.c.bf16 %v6116_v9, %v6116_v9 }
 0x1c8   :  { %5620 = vmatprep.subr.bf16.mxu1 %v6572_v1  ;;  %5626 = vmatprep.subr.bf16.mxu0 %v6572_v1  ;;  %v596_v13 = vpop.permute.xlu1 %595 }
 0x1c9   :  { %v547_v10 = vpop.permute.xlu0 %546  ;;  %v601_v18 = vsel %vm253_vm2, %v596_v13, 0 }
 0x1ca   :  { %v552_v16 = vsel %vm253_vm2, %v547_v10, 0 }
 0x1cd   :  { %v6119_v17 = vpop.permute.xlu0 %6118  ;;  %5611 = vmatmul.mubr.msk.bf16.vlgmr.msra.gmra.mxu1 %vm253_vm2, %v238_v12 }
 0x1ce   :  { %5617 = vmatmul.mubr.msk.bf16.vlgmr.msra.gmra.mxu0 %vm253_vm2, %v239_v15  ;;  %5621 = vmatpush3.bf16.xpose.msra.mxu1 %v552_v16  ;;  %v6120_v19 = vunpack.i.l.bf16 %v6119_v17  ;;  %v6121_v20 = vunpack.i.h.bf16 %v6119_v17 }
 0x1cf   :  { %5627 = vmatpush3.bf16.xpose.msra.mxu0 %v601_v18  ;;  %5622 = vmatprep.mubr.msk.bf16.mxu1 %vm6573_vm0, %v6572_v1 }
 0x1d0   :  { %5628 = vmatprep.mubr.msk.bf16.mxu0 %vm6573_vm0, %v6572_v1  ;;  %5638 = vmatprep.subr.bf16.mxu0 %v6572_v1  ;;  %v240_v25 = vpack.c.bf16 %v6120_v19, %v6120_v19  ;;  %v241_v27 = vpack.c.bf16 %v6121_v20, %v6121_v20 }
 0x1d1   :  { %v210_v22 = vpop.permute.xlu0 %209  ;;  %5632 = vmatprep.subr.bf16.mxu1 %v6572_v1 }
 0x1d2   :  { %v212_v23 = vadd.f32 %v210_v22, %v6678_v11  ;;  %v213_v24 = vadd.f32 %v210_v22, %v6680_v14  ;;  %v87_v14 = vand.u32 127, %v84_v0 }
 0x1d4   :  { %v6127_v26 = vpack.i.bf16 %v213_v24, %v212_v23  ;;  %v740_v28 = vpack.c.bf16 %v213_v24, %v213_v24  ;;  %v739_v11 = vpack.c.bf16 %v212_v23, %v212_v23  ;;  %vm88_vm3 = vcmp.le.s32.totalorder %v87_v14, %v6643_v4 }
 0x1d5   :  { %5623 = vmatmul.mubr.msk.bf16.vlgmr.msra.gmra.mxu1 %vm253_vm2, %v240_v25  ;;  %v6760_v30 = vsel %vm88_vm3, 0.0, %v6580_v29 }
 0x1d6   :  { %6128 = vrot.lane.b32.xlu1 %v6127_v26, %s6575_s15  ;;  %6123 = vrot.lane.b32.xlu0 %v6127_v26, %s6576_s16 }
 0x1d7   :  { %5629 = vmatmul.mubr.msk.bf16.vlgmr.msra.gmra.mxu0 %vm253_vm2, %v241_v27  ;;  %5634 = vmatprep.mubr.msk.bf16.mxu1 %vm6573_vm0, %v6572_v1 }
 0x1d8   :  { %5640 = vmatprep.mubr.msk.bf16.mxu0 %vm6573_vm0, %v6572_v1 }
 0x1da   :  { %798 = vrot.lane.b32.xlu1 %v740_v28, %s6579_s19  ;;  %6133 = vrot.lane.b32.xlu0 %v6127_v26, %s6577_s17 }
 0x1de   :  { %748 = vrot.lane.b32.xlu0 %v739_v11, %s6579_s19 }
 0x212   :  { %v294_v31 = vpop.f32.mrf.mxu1 }
 0x213   :  { %v6763_v32 = vadd.f32 %v294_v31, %v6760_v30 }
 0x214   :  { %v5588_v33 = vpop.f32.mrf.mxu1 }
 0x215   :  { %v643_v34 = vsel %vm253_vm2, %v6763_v32, -inf }
 0x216   :  { %v343_v35 = vpop.f32.mrf.mxu0  ;;  %644 = vmax.xlane.f32.xlu1 %v643_v34  ;;  %v297_v36 = vpop.f32.mrf.mxu1 }
 0x217   :  { %v6768_v37 = vadd.f32 %v343_v35, %v6760_v30 }
 0x218   :  { %v5589_v0 = vpop.f32.mrf.mxu1  ;;  %v5594_v38 = vpop.f32.mrf.mxu0 }
 0x219   :  { %v646_v39 = vsel %vm253_vm2, %v6768_v37, -inf }
 0x21a   :  { %647 = vmax.xlane.f32.xlu0 %v646_v39  ;;  %v346_v40 = vpop.f32.mrf.mxu0 }
 0x21c   :  { %v5595_v41 = vpop.f32.mrf.mxu0 }
 0x248   :  { %v6772_v42 = vpop.permute.xlu1 %6128  ;;  %v6124_v43 = vpop.permute.xlu0 %6123 }
 0x249   :  { %v6126_v44 = vunpack.i.h.bf16 %v6124_v43  ;;  %v6125_v39 = vunpack.i.l.bf16 %v6124_v43 }
 0x24b   :  { %v742_v45 = vpack.c.bf16 %v6126_v44, %v6126_v44  ;;  %v741_v40 = vpack.c.bf16 %v6125_v39, %v6125_v39 }
 0x24c   :  { %v799_v46 = vpop.permute.xlu1 %798  ;;  %v6774_v48 = vpop.permute.xlu0 %6133 }
 0x24d   :  { %v804_v49 = vsel %vm753_vm4, %v799_v46, 0  ;;  %896 = vrot.lane.b32.xlu0 %v742_v45, %s6579_s19 }
 0x24e   :  { %5639 = vmatpush3.bf16.msra.mxu0 %v804_v49 }
 0x24f   :  { %5650 = vmatprep.subr.bf16.mxu0 %v6572_v1 }
 0x250   :  { %v749_v50 = vpop.permute.xlu0 %748 }
 0x251   :  { %v755_v51 = vsel %vm753_vm4, %v749_v50, 0  ;;  %v6131_v50 = vunpack.i.h.bf16 %v6772_v42 }
 0x252   :  { %5633 = vmatpush3.bf16.msra.mxu1 %v755_v51 }
 0x253   :  { %5644 = vmatprep.subr.bf16.mxu1 %v6572_v1 }
 0x285   :  { %v392_v52 = vpop.f32.mrf.mxu1  ;;  %v441_v53 = vpop.f32.mrf.mxu0 }
 0x286   :  { %v6782_v54 = vadd.f32 %v392_v52, %v6760_v30  ;;  %v6785_v57 = vadd.f32 %v441_v53, %v6760_v30  ;;  %v6130_v52 = vunpack.i.l.bf16 %v6772_v42 }
 0x287   :  { %v5600_v55 = vpop.f32.mrf.mxu1  ;;  %v5606_v56 = vpop.f32.mrf.mxu0 }
 0x288   :  { %v649_v58 = vsel %vm253_vm2, %v6782_v54, -inf  ;;  %v652_v63 = vsel %vm253_vm2, %v6785_v57, -inf  ;;  %v743_v53 = vpack.c.bf16 %v6130_v52, %v6130_v52 }
 0x289   :  { %v444_v59 = vpop.f32.mrf.mxu0  ;;  %650 = vmax.xlane.f32.xlu1 %v649_v58  ;;  %v395_v60 = vpop.f32.mrf.mxu1 }
 0x28b   :  { %v5601_v61 = vpop.f32.mrf.mxu1  ;;  %v5607_v62 = vpop.f32.mrf.mxu0 }
 0x28d   :  { %653 = vmax.xlane.f32.xlu1 %v652_v63  ;;  %v490_v9 = vpop.f32.mrf.mxu1 }
 0x28e   :  { %v539_v10 = vpop.f32.mrf.mxu0  ;;  %v491_v12 = vadd.f32 %v490_v9, %v6760_v30 }
 0x28f   :  { %v5612_v13 = vpop.f32.mrf.mxu1  ;;  %v540_v15 = vadd.f32 %v539_v10, %v6760_v30 }
 0x290   :  { %v5618_v16 = vpop.f32.mrf.mxu0  ;;  %v655_v17 = vsel %vm253_vm2, %v491_v12, -inf }
 0x291   :  { %656 = vmax.xlane.f32.xlu1 %v655_v17  ;;  %v493_v18 = vpop.f32.mrf.mxu1  ;;  %v658_v23 = vsel %vm253_vm2, %v540_v15, -inf }
 0x292   :  { %v542_v19 = vpop.f32.mrf.mxu0 }
 0x293   :  { %v5613_v20 = vpop.f32.mrf.mxu1 }
 0x294   :  { %v5619_v22 = vpop.f32.mrf.mxu0 }
 0x295   :  { %659 = vmax.xlane.f32.xlu1 %v658_v23  ;;  %v588_v24 = vpop.f32.mrf.mxu1 }
 0x296   :  { %v589_v25 = vadd.f32 %v588_v24, %v6760_v30 }
 0x297   :  { %v637_v26 = vpop.f32.mrf.mxu0  ;;  %v5624_v27 = vpop.f32.mrf.mxu1 }
 0x298   :  { %v638_v28 = vadd.f32 %v637_v26, %v6760_v30  ;;  %v661_v11 = vsel %vm253_vm2, %v589_v25, -inf }
 0x299   :  { %v5630_v14 = vpop.f32.mrf.mxu0  ;;  %662 = vmax.xlane.f32.xlu1 %v661_v11  ;;  %v591_v29 = vpop.f32.mrf.mxu1 }
 0x29a   :  { %v664_v34 = vsel %vm253_vm2, %v638_v28, -inf }
 0x29b   :  { %v640_v31 = vpop.f32.mrf.mxu0  ;;  %v5625_v33 = vpop.f32.mrf.mxu1 }
 0x29c   :  { %v6135_v31 = vunpack.i.l.bf16 %v6774_v48  ;;  %v6136_v33 = vunpack.i.h.bf16 %v6774_v48 }
 0x29d   :  { %v5631_v35 = vpop.f32.mrf.mxu0  ;;  %665 = vmax.xlane.f32.xlu1 %v664_v34 }
 0x29e   :  { %v745_v34 = vpack.c.bf16 %v6135_v31, %v6135_v31 }
 0x29f   :  { %v645_v36 = vpop.xlane.xlu1 %644 }
 0x2a0   :  { %v667_v0 = vsub.f32 %v6763_v32, %v645_v36  ;;  %v744_v32 = vpack.c.bf16 %v6131_v50, %v6131_v50  ;;  %v746_v36 = vpack.c.bf16 %v6136_v33, %v6136_v33 }
 0x2a2   :  { %v675_v38 = vmul.f32 1.442695, %v667_v0 }
 0x2a3   :  { %v648_v45 = vpop.xlane.xlu0 %647 }
 0x2a4   :  { %6412 = vpow2.f32 %v675_v38  ;;  %v668_v46 = vsub.f32 %v6768_v37, %v648_v45 }
 0x2a6   :  { %v677_v49 = vmul.f32 1.442695, %v668_v46 }
 0x2a8   :  { %6414 = vpow2.f32 %v677_v49 }
 0x2ae   :  { %847 = vrot.lane.b32.xlu1 %v741_v40, %s6579_s19 }
 0x2b1   :  { %v6801_v41 = vpop.eup %6412 }
 0x2b2   :  { %v691_v44 = vsel %vm253_vm2, %v6801_v41, 0.0 }
 0x2b3   :  { %692 = vadd.xlane.f32.xlu0 %v691_v44 }
 0x2b5   :  { %v6808_v43 = vpop.eup %6414 }
 0x2b6   :  { %v694_v51 = vsel %vm253_vm2, %v6808_v43, 0.0 }
 0x2bf   :  { %v897_v11 = vpop.permute.xlu0 %896 }
 0x2c0   :  { %v902_v46 = vsel %vm753_vm4, %v897_v11, 0 }
 0x2c9   :  { %994 = vrot.lane.b32.xlu0 %v744_v32, %s6579_s19 }
 0x2d2   :  { %695 = vadd.xlane.f32.xlu1 %v694_v51 }
 0x2e3   :  { %945 = vrot.lane.b32.xlu1 %v743_v53, %s6579_s19 }
 0x312   :  { %v651_v55 = vpop.xlane.xlu1 %650 }
 0x313   :  { %v669_v37 = vsub.f32 %v6782_v54, %v651_v55 }
 0x315   :  { %v679_v56 = vmul.f32 1.442695, %v669_v37 }
 0x316   :  { %v654_v58 = vpop.xlane.xlu1 %653 }
 0x317   :  { %6416 = vpow2.f32 %v679_v56  ;;  %v670_v59 = vsub.f32 %v6785_v57, %v654_v58 }
 0x319   :  { %v681_v60 = vmul.f32 1.442695, %v670_v59 }
 0x31a   :  { %v657_v61 = vpop.xlane.xlu1 %656 }
 0x31b   :  { %6418 = vpow2.f32 %v681_v60  ;;  %v671_v62 = vsub.f32 %v491_v12, %v657_v61 }
 0x31d   :  { %v683_v63 = vmul.f32 1.442695, %v671_v62 }
 0x31e   :  { %v660_v9 = vpop.xlane.xlu1 %659 }
 0x31f   :  { %6420 = vpow2.f32 %v683_v63  ;;  %v672_v10 = vsub.f32 %v540_v15, %v660_v9 }
 0x321   :  { %v685_v42 = vmul.f32 1.442695, %v672_v10 }
 0x322   :  { %v663_v13 = vpop.xlane.xlu1 %662 }
 0x323   :  { %6422 = vpow2.f32 %v685_v42  ;;  %v673_v16 = vsub.f32 %v589_v25, %v663_v13 }
 0x324   :  { %v6816_v17 = vpop.eup %6416 }
 0x325   :  { %v687_v54 = vmul.f32 1.442695, %v673_v16  ;;  %v697_v18 = vsel %vm253_vm2, %v6816_v17, 0.0 }
 0x326   :  { %698 = vadd.xlane.f32.xlu0 %v697_v18  ;;  %v666_v57 = vpop.xlane.xlu1 %665 }
 0x327   :  { %6424 = vpow2.f32 %v687_v54  ;;  %v674_v19 = vsub.f32 %v638_v28, %v666_v57 }
 0x328   :  { %v6820_v20 = vpop.eup %6418 }
 0x329   :  { %v689_v12 = vmul.f32 1.442695, %v674_v19  ;;  %v700_v15 = vsel %vm253_vm2, %v6820_v20, 0.0 }
 0x32a   :  { %701 = vadd.xlane.f32.xlu0 %v700_v15  ;;  %v848_v38 = vpop.permute.xlu1 %847 }
 0x32b   :  { %6426 = vpow2.f32 %v689_v12  ;;  %v853_v40 = vsel %vm753_vm4, %v848_v38, 0 }
 0x32c   :  { %v6824_v22 = vpop.eup %6420 }
 0x32d   :  { %v703_v23 = vsel %vm253_vm2, %v6824_v22, 0.0 }
 0x32e   :  { %704 = vadd.xlane.f32.xlu0 %v703_v23 }
 0x330   :  { %v6828_v24 = vpop.eup %6422 }
 0x331   :  { %v706_v25 = vsel %vm253_vm2, %v6828_v24, 0.0 }
 0x332   :  { %707 = vadd.xlane.f32.xlu0 %v706_v25 }
 0x334   :  { %v6832_v26 = vpop.eup %6424 }
 0x335   :  { %v709_v27 = vsel %vm253_vm2, %v6832_v26, 0.0 }
 0x336   :  { %710 = vadd.xlane.f32.xlu0 %v709_v27 }
 0x338   :  { %v6836_v28 = vpop.eup %6426 }
 0x339   :  { %v712_v14 = vsel %vm253_vm2, %v6836_v28, 0.0 }
 0x33a   :  { %713 = vadd.xlane.f32.xlu1 %v712_v14 }
 0x33c   :  { %v693_v29 = vpop.xlane.xlu0 %692 }
 0x33d   :  { %6428 = vrcp.f32 %v693_v29 }
 0x34a   :  { %v6429_v35 = vpop.eup %6428 }
 0x34b   :  { %1043 = vrot.lane.b32.xlu1 %v745_v34, %s6579_s19  ;;  %v723_v0 = vmul.f32 %v6429_v35, %v6801_v41 }
 0x34c   :  { %1092 = vrot.lane.b32.xlu0 %v746_v36, %s6579_s19 }
 0x34d   :  { %v731_v39 = vpack.c.bf16 %v723_v0, %v723_v0 }
 0x34f   :  { %5635 = vmatmul.mubr.msk.bf16.vlgmr.msra.gmra.mxu1 %vm253_vm2, %v731_v39  ;;  %1179 = vrot.lane.b32.xlu1 %v6633_v2, %s6574_s0  ;;  %v995_v2 = vpop.permute.xlu0 %994 }
 0x350   :  { %5645 = vmatpush3.bf16.msra.mxu1 %v853_v40  ;;  %5646 = vmatprep.mubr.msk.bf16.mxu1 %vm6573_vm0, %v6572_v1  ;;  %v1000_v63 = vsel %vm753_vm4, %v995_v2, 0 }
 0x351   :  { %5656 = vmatprep.subr.bf16.mxu1 %v6572_v1 }
 0x35b   :  { %v696_v48 = vpop.xlane.xlu1 %695 }
 0x35c   :  { %6430 = vrcp.f32 %v696_v48 }
 0x35f   :  { %v946_v53 = vpop.permute.xlu1 %945 }
 0x360   :  { %v951_v58 = vsel %vm753_vm4, %v946_v53, 0 }
 0x369   :  { %v6431_v41 = vpop.eup %6430 }
 0x36a   :  { %v724_v44 = vmul.f32 %v6431_v41, %v6808_v43 }
 0x36c   :  { %v732_v45 = vpack.c.bf16 %v724_v44, %v724_v44 }
 0x36e   :  { %5641 = vmatmul.mubr.msk.bf16.vlgmr.msra.gmra.mxu0 %vm253_vm2, %v732_v45 }
 0x36f   :  { %5651 = vmatpush3.bf16.msra.mxu0 %v902_v46  ;;  %5652 = vmatprep.mubr.msk.bf16.mxu0 %vm6573_vm0, %v6572_v1 }
 0x370   :  { %5662 = vmatprep.subr.bf16.mxu0 %v6572_v1 }
 0x3af   :  { %v699_v49 = vpop.xlane.xlu0 %698 }
 0x3b0   :  { %6432 = vrcp.f32 %v699_v49 }
 0x3b3   :  { %v702_v50 = vpop.xlane.xlu0 %701 }
 0x3b4   :  { %6434 = vrcp.f32 %v702_v50 }
 0x3b7   :  { %v705_v32 = vpop.xlane.xlu0 %704 }
 0x3b8   :  { %6436 = vrcp.f32 %v705_v32 }
 0x3bb   :  { %v708_v51 = vpop.xlane.xlu0 %707 }
 0x3bc   :  { %6438 = vrcp.f32 %v708_v51 }
 0x3bd   :  { %v6433_v43 = vpop.eup %6432 }
 0x3be   :  { %v725_v52 = vmul.f32 %v6433_v43, %v6816_v17 }
 0x3bf   :  { %v711_v55 = vpop.xlane.xlu0 %710 }
 0x3c0   :  { %6440 = vrcp.f32 %v711_v55  ;;  %v733_v37 = vpack.c.bf16 %v725_v52, %v725_v52 }
 0x3c1   :  { %v6435_v56 = vpop.eup %6434 }
 0x3c2   :  { %5647 = vmatmul.mubr.msk.bf16.vlgmr.msra.gmra.mxu1 %vm253_vm2, %v733_v37  ;;  %v726_v59 = vmul.f32 %v6435_v56, %v6820_v20 }
 0x3c3   :  { %5657 = vmatpush3.bf16.msra.mxu1 %v951_v58  ;;  %v714_v60 = vpop.xlane.xlu1 %713  ;;  %5658 = vmatprep.mubr.msk.bf16.mxu1 %vm6573_vm0, %v6572_v1  ;;  %v1093_v54 = vpop.permute.xlu0 %1092 }
 0x3c4   :  { %6442 = vrcp.f32 %v714_v60  ;;  %v734_v61 = vpack.c.bf16 %v726_v59, %v726_v59  ;;  %5668 = vmatprep.subr.bf16.mxu1 %v6572_v1  ;;  %v1098_v19 = vsel %vm753_vm4, %v1093_v54, 0 }
 0x3c5   :  { %v6437_v62 = vpop.eup %6436 }
 0x3c6   :  { %5653 = vmatmul.mubr.msk.bf16.vlgmr.msra.gmra.mxu0 %vm253_vm2, %v734_v61  ;;  %v727_v9 = vmul.f32 %v6437_v62, %v6824_v22 }
 0x3c7   :  { %5663 = vmatpush3.bf16.msra.mxu0 %v1000_v63  ;;  %v1044_v10 = vpop.permute.xlu1 %1043  ;;  %5664 = vmatprep.mubr.msk.bf16.mxu0 %vm6573_vm0, %v6572_v1 }
 0x3c8   :  { %v1049_v42 = vsel %vm753_vm4, %v1044_v10, 0  ;;  %v735_v13 = vpack.c.bf16 %v727_v9, %v727_v9  ;;  %5674 = vmatprep.subr.bf16.mxu0 %v6572_v1 }
 0x3c9   :  { %v6439_v16 = vpop.eup %6438 }
 0x3ca   :  { %5659 = vmatmul.mubr.msk.bf16.vlgmr.msra.gmra.mxu1 %vm253_vm2, %v735_v13  ;;  %v728_v17 = vmul.f32 %v6439_v16, %v6828_v24 }
 0x3cb   :  { %5669 = vmatpush3.bf16.msra.mxu1 %v1049_v42  ;;  %5670 = vmatprep.mubr.msk.bf16.mxu1 %vm6573_vm0, %v6572_v1  ;;  %v1180_v33 = vpop.permute.xlu1 %1179 }
 0x3cc   :  { %v736_v18 = vpack.c.bf16 %v728_v17, %v728_v17  ;;  %5680 = vmatprep.subr.bf16.mxu1 %v6572_v1 }
 0x3cd   :  { %v6441_v57 = vpop.eup %6440 }
 0x3ce   :  { %5665 = vmatmul.mubr.msk.bf16.vlgmr.msra.gmra.mxu0 %vm253_vm2, %v736_v18  ;;  %v729_v20 = vmul.f32 %v6441_v57, %v6832_v26 }
 0x3cf   :  { %5675 = vmatpush3.bf16.msra.mxu0 %v1098_v19  ;;  %5676 = vmatprep.mubr.msk.bf16.mxu0 %vm6573_vm0, %v6572_v1 }
 0x3d0   :  { %v737_v12 = vpack.c.bf16 %v729_v20, %v729_v20 }
 0x3d1   :  { %v6443_v15 = vpop.eup %6442 }
 0x3d2   :  { %5671 = vmatmul.mubr.msk.bf16.vlgmr.msra.gmra.mxu1 %vm253_vm2, %v737_v12  ;;  %v730_v22 = vmul.f32 %v6443_v15, %v6836_v28 }
 0x3d3   :  { %5684 = vmatprep.mubr.msk.bf16.mxu1 %vm6573_vm0, %v6572_v1  ;;  %5681 = vmatpush3.bf16.msra.mxu1 %v1180_v33 }
 0x3d4   :  { %v738_v23 = vpack.c.bf16 %v730_v22, %v730_v22  ;;  %5682 = vmatprep.subr.bf16.mxu1 %v6572_v1  ;;  %v6904_v22 = vsub.s32 3, %v6643_v4 }
 0x3d6   :  { %5677 = vmatmul.mubr.msk.bf16.vlgmr.msra.gmra.mxu0 %vm253_vm2, %v738_v23  ;;  %v1176_v23 = vrot.slane %v6662_v7, %v6904_v22  ;;  %v6915_v7 = vld [vmem:[%s7865_s2 + $0x18] sm:$0xff]  }
 0x40f   :  { %v791_v24 = vpop.f32.mrf.mxu1 }
 0x411   :  { %v5636_v25 = vpop.f32.mrf.mxu1 }
 0x413   :  { %v794_v27 = vpop.f32.mrf.mxu1 }
 0x415   :  { %v5637_v26 = vpop.f32.mrf.mxu1 }
 0x42e   :  { %v840_v11 = vpop.f32.mrf.mxu0 }
 0x430   :  { %v5642_v14 = vpop.f32.mrf.mxu0 }
 0x432   :  { %v843_v29 = vpop.f32.mrf.mxu0 }
 0x434   :  { %v5643_v31 = vpop.f32.mrf.mxu0 }
 0x482   :  { %v889_v34 = vpop.f32.mrf.mxu1 }
 0x484   :  { %v5648_v28 = vpop.f32.mrf.mxu1 }
 0x486   :  { %v892_v35 = vpop.f32.mrf.mxu1  ;;  %v938_v36 = vpop.f32.mrf.mxu0 }
 0x487   :  { %v6137_v0 = vpack.i.bf16 %v938_v36, %v889_v34 }
 0x488   :  { %v5649_v38 = vpop.f32.mrf.mxu1  ;;  %v5654_v39 = vpop.f32.mrf.mxu0 }
 0x489   :  { %6138 = vrot.lane.b32.xlu0 %v6137_v0, %s6581_s20 }
 0x48a   :  { %v941_v40 = vpop.f32.mrf.mxu0  ;;  %v987_v48 = vpop.f32.mrf.mxu1 }
 0x48c   :  { %v5655_v41 = vpop.f32.mrf.mxu0  ;;  %v5660_v44 = vpop.f32.mrf.mxu1 }
 0x48e   :  { %v990_v45 = vpop.f32.mrf.mxu1  ;;  %v1036_v46 = vpop.f32.mrf.mxu0 }
 0x48f   :  { %v6142_v2 = vpack.i.bf16 %v1036_v46, %v987_v48  ;;  %v32_v45 = vld [vmem:[%s7868_s1] sm:$0xff]  ;;  %v33_v46 = vld [vmem:[%s7868_s1 + $0x8] sm:$0xff] }
 0x490   :  { %v5661_v49 = vpop.f32.mrf.mxu1  ;;  %v5666_v50 = vpop.f32.mrf.mxu0 }
 0x491   :  { %6143 = vrot.lane.b32.xlu1 %v6142_v2, %s6582_s21  ;;  %v6936_v2 = vpack.c.bf16 %v33_v46, %v32_v45 }
 0x492   :  { %v1039_v32 = vpop.f32.mrf.mxu0  ;;  %v1085_v51 = vpop.f32.mrf.mxu1 }
 0x493   :  { %5692 = vmatprep.mubr.msk.bf16.mxu0 %vm103_vm1, %v6936_v2 }
 0x494   :  { %v5667_v43 = vpop.f32.mrf.mxu0  ;;  %v5672_v52 = vpop.f32.mrf.mxu1 }
 0x495   :  { %1177 = vrot.lane.b32.xlu1 %v6640_v3, %s6574_s0  ;;  %v34_v52 = vld [vmem:[%s7868_s1 + $0x10] sm:$0xff] }
 0x496   :  { %v1088_v53 = vpop.f32.mrf.mxu1  ;;  %v1134_v55 = vpop.f32.mrf.mxu0 }
 0x497   :  { %v6147_v37 = vpack.i.bf16 %v1134_v55, %v1085_v51  ;;  %v35_v53 = vld [vmem:[%s7868_s1 + $0x18] sm:$0xff] }
 0x498   :  { %v5673_v56 = vpop.f32.mrf.mxu1  ;;  %v5678_v58 = vpop.f32.mrf.mxu0 }
 0x499   :  { %6148 = vrot.lane.b32.xlu0 %v6147_v37, %s6583_s22  ;;  %v6948_v56 = vpack.c.bf16 %v35_v53, %v34_v52  ;;  %v6958_v58 = vld [vmem:[%s7867_s6 + $0x8] sm:$0x7f] }
 0x49a   :  { %v1137_v59 = vpop.f32.mrf.mxu0 }
 0x49c   :  { %v5679_v60 = vpop.f32.mrf.mxu0 }
 0x4fb   :  { %v6139_v62 = vpop.permute.xlu0 %6138 }
 0x4fc   :  { %v6141_v9 = vunpack.i.h.bf16 %v6139_v62  ;;  %v6140_v10 = vunpack.i.l.bf16 %v6139_v62 }
 0x4fe   :  { %v1165_v16 = vsel %vm253_vm2, %v840_v11, %v6141_v9  ;;  %v1164_v17 = vsel %vm253_vm2, %v791_v24, %v6140_v10  ;;  %v1265_v10 = vrot.slane %v6958_v58, %v6713_v47 }
 0x503   :  { %v6144_v61 = vpop.permute.xlu1 %6143 }
 0x504   :  { %v6146_v42 = vunpack.i.h.bf16 %v6144_v61  ;;  %v6145_v13 = vunpack.i.l.bf16 %v6144_v61  ;;  %v1259_v61 = vrot.slane %v6958_v58, %v6666_v8 }
 0x506   :  { %v1168_v57 = vsel %vm1166_vm5, %v1165_v16, %v6146_v42  ;;  %v1167_v19 = vsel %vm1166_vm5, %v1164_v17, %v6145_v13  ;;  %v6974_v17 = vsub.s32 5, %v6643_v4 }
 0x507   :  { %v1178_v63 = vpop.permute.xlu1 %1177 }
 0x508   :  { %5683 = vmatpush3.bf16.msra.mxu1 %v1178_v63 }
 0x509   :  { %5696 = vmatprep.subr.bf16.mxu1 %v6572_v1 }
 0x50b   :  { %v6149_v3 = vpop.permute.xlu0 %6148 }
 0x50c   :  { %v6151_v54 = vunpack.i.h.bf16 %v6149_v3  ;;  %v6150_v18 = vunpack.i.l.bf16 %v6149_v3 }
 0x50e   :  { %v1171_v20 = vsel %vm1169_vm6, %v1168_v57, %v6151_v54  ;;  %v1170_v12 = vsel %vm1169_vm6, %v1167_v19, %v6150_v18  ;;  %v6981_v18 = vld [vmem:[%s7867_s6] sm:$0xff] }
 0x50f   :  { %v1172_v15 = vpack.c.bf16 %v1171_v20, %v1170_v12  ;;  %v1413_v57 = vrot.slane %v6981_v18, %v6974_v17 }
 0x511   :  { %5685 = vmatmul.mubr.msk.bf16.vlgmr.msra.gmra.mxu1 %vm103_vm1, %v1172_v15 }
 0x512   :  { %5700 = vmatprep.mubr.msk.bf16.mxu1 %vm6573_vm0, %v6572_v1  ;;  %5697 = vmatpush3.bf16.msra.mxu1 %v6915_v7 }
 0x513   :  { %5698 = vmatprep.subr.bf16.mxu1 %v6572_v1 }
 0x5d1   :  { %v1220_v24 = vpop.f32.mrf.mxu1 }
 0x5d2   :  { %v1221_v25 = vadd.f32 %v1220_v24, %v1176_v23 }
 0x5d3   :  { %v5686_v27 = vpop.f32.mrf.mxu1 }
 0x5d4   :  { %v1227_v26 = vadd.f32 %v1221_v25, %v6652_v5  ;;  %v6924_v5 = vld [vmem:[%s7865_s2 + $0x10] sm:$0xff]  }
 0x5d5   :  { %v1223_v11 = vpop.f32.mrf.mxu1  ;;  %5699 = vmatpush3.bf16.msra.mxu1 %v6924_v5 }
 0x5d6   :  { %v1224_v14 = vadd.f32 %v1223_v11, %v1176_v23  ;;  %v1229_v29 = vsel %vm103_vm1, %v1227_v26, 0.0  ;;  %5710 = vmatprep.subr.bf16.mxu1 %v6572_v1 }
 0x5d7   :  { %1230 = vadd.xlane.f32.xlu0 %v1229_v29  ;;  %v5687_v31 = vpop.f32.mrf.mxu1 }
 0x5d8   :  { %v1228_v33 = vadd.f32 %v1224_v14, %v6657_v6  ;;  %v6999_v31 = vsub.s32 4, %v6643_v4 }
 0x5da   :  { %v1232_v34 = vsel %vm103_vm1, %v1228_v33, 0.0 }
 0x5db   :  { %1233 = vadd.xlane.f32.xlu1 %v1232_v34  ;;  %v1343_v34 = vrot.slane %v6981_v18, %v6999_v31 }
 0x5ec   :  { %1281 = vrot.lane.b32.xlu1 %v6915_v7, %s6578_s18 }
 0x660   :  { %v1231_v6 = vpop.xlane.xlu0 %1230 }
 0x661   :  { %v1236_v28 = vmul.f32 0.03125, %v1231_v6 }
 0x663   :  { %v1238_v35 = vsub.f32 %v1227_v26, %v1236_v28 }
 0x664   :  { %v1234_v36 = vpop.xlane.xlu1 %1233 }
 0x665   :  { %v1237_v0 = vmul.f32 0.03125, %v1234_v36  ;;  %v1240_v38 = vmul.f32 %v1238_v35, %v1238_v35 }
 0x667   :  { %v1239_v39 = vsub.f32 %v1228_v33, %v1237_v0  ;;  %v1242_v40 = vsel %vm103_vm1, %v1240_v38, 0.0 }
 0x668   :  { %1243 = vadd.xlane.f32.xlu0 %v1242_v40  ;;  %v1282_v44 = vpop.permute.xlu1 %1281 }
 0x669   :  { %v1241_v48 = vmul.f32 %v1239_v39, %v1239_v39  ;;  %5688 = vmatprep.subr.bf16.mxu0 %v1282_v44 }
 0x66a   :  { %5689 = vmatpush3.bf16.msra.mxu0 %v1282_v44 }
 0x66b   :  { %v1245_v41 = vsel %vm103_vm1, %v1241_v48, 0.0 }
 0x66c   :  { %1246 = vadd.xlane.f32.xlu0 %v1245_v41  ;;  %v7019_v41 = vsub.s32 6, %v6643_v4 }
 0x66e   :  { %v1461_v44 = vrot.slane %v6981_v18, %v7019_v41 }
 0x682   :  { %1279 = vrot.lane.b32.xlu0 %v6924_v5, %s6578_s18 }
 0x6f1   :  { %v1244_v49 = vpop.xlane.xlu0 %1243 }
 0x6f2   :  { %v1248_v50 = vmul.f32 0.03125, %v1244_v49 }
 0x6f4   :  { %v1250_v32 = vadd.f32 1e-05, %v1248_v50 }
 0x6f5   :  { %v1247_v51 = vpop.xlane.xlu0 %1246 }
 0x6f6   :  { %6444 = vrsqrt.f32 %v1250_v32  ;;  %v1249_v43 = vmul.f32 0.03125, %v1247_v51 }
 0x6f8   :  { %v1251_v55 = vadd.f32 1e-05, %v1249_v43 }
 0x6f9   :  { %v1280_v37 = vpop.permute.xlu0 %1279 }
 0x6fa   :  { %6446 = vrsqrt.f32 %v1251_v55  ;;  %5690 = vmatprep.subr.bf16.mxu0 %v1280_v37 }
 0x6fb   :  { %5691 = vmatpush3.bf16.msra.mxu0 %v1280_v37 }
 0x6fc   :  { %5704 = vmatprep.subr.bf16.mxu0 %v6572_v1 }
 0x6fe   :  { %5693 = vmatmul.mubr.msk.bf16.vlgmr.msra.gmra.mxu0 %vm103_vm1, %v6948_v56 }
 0x6ff   :  { %5706 = vmatprep.mubr.msk.bf16.mxu0 %vm6573_vm0, %v6572_v1 }
 0x703   :  { %v6445_v59 = vpop.eup %6444 }
 0x704   :  { %v1254_v60 = vmul.f32 %v6445_v59, %v1238_v35 }
 0x706   :  { %v1260_v9 = vmul.f32 %v1259_v61, %v1254_v60 }
 0x707   :  { %v6447_v62 = vpop.eup %6446 }
 0x708   :  { %v1255_v63 = vmul.f32 %v6447_v62, %v1239_v39  ;;  %v6964_v13 = vadd.f32 %v1265_v10, %v1260_v9 }
 0x70a   :  { %v1261_v42 = vmul.f32 %v1259_v61, %v1255_v63 }
 0x70c   :  { %v6966_v3 = vadd.f32 %v1265_v10, %v1261_v42 }
 0x70e   :  { %v1268_v16 = vpack.c.bf16 %v6966_v3, %v6964_v13 }
 0x710   :  { %5701 = vmatmul.mubr.msk.bf16.vlgmr.msra.gmra.mxu1 %vm103_vm1, %v1268_v16 }
 0x711   :  { %5712 = vmatprep.mubr.msk.bf16.mxu1 %vm6573_vm0, %v6572_v1 }
 0x7be   :  { %v6976_v54 = vpop.f32.mrf.mxu0 }
 0x7bf   :  { %v1416_v20 = vadd.f32 %v6976_v54, %v1413_v57 }
 0x7c0   :  { %v6985_v19 = vpop.f32.mrf.mxu0 }
 0x7c1   :  { %v1414_v15 = vadd.f32 %v1413_v57, %v6985_v19 }
 0x7c2   :  { %v6988_v12 = vpop.f32.mrf.mxu0 }
 0x7c3   :  { %v1417_v23 = vadd.f32 %v6988_v12, %v1413_v57 }
 0x7c4   :  { %v6992_v24 = vpop.f32.mrf.mxu0 }
 0x7c5   :  { %v1415_v25 = vadd.f32 %v1413_v57, %v6992_v24  ;;  %v1519_v27 = vpack.c.bf16 %v1417_v23, %v1416_v20  ;;  %v6157_v33 = vpack.i.bf16 %v1417_v23, %v1416_v20 }
 0x7c7   :  { %v6152_v26 = vpack.i.bf16 %v1415_v25, %v1414_v15  ;;  %v1518_v11 = vpack.c.bf16 %v1415_v25, %v1414_v15  ;;  %v1576_v14 = vsel %vm253_vm2, %v1519_v27, 0 }
 0x7c8   :  { %5711 = vmatpush3.bf16.xpose.msra.mxu1 %v1576_v14 }
 0x7c9   :  { %6153 = vrot.lane.b32.xlu1 %v6152_v26, %s6576_s16  ;;  %v1530_v29 = vsel %vm253_vm2, %v1518_v11, 0  ;;  %5722 = vmatprep.subr.bf16.mxu1 %v6572_v1 }
 0x7ca   :  { %5705 = vmatpush3.bf16.xpose.msra.mxu0 %v1530_v29 }
 0x7cb   :  { %5716 = vmatprep.subr.bf16.mxu0 %v6572_v1 }
 0x7cd   :  { %6158 = vrot.lane.b32.xlu1 %v6157_v33, %s6576_s16 }
 0x7d0   :  { %v1383_v6 = vpop.f32.mrf.mxu1 }
 0x7d1   :  { %v1384_v28 = vadd.f32 %v1383_v6, %v1343_v34  ;;  %6163 = vrot.lane.b32.xlu1 %v6152_v26, %s6575_s15 }
 0x7d2   :  { %v5702_v35 = vpop.f32.mrf.mxu1 }
 0x7d3   :  { %v1510_v36 = vpack.c.bf16 %v1384_v28, %v1384_v28 }
 0x7d4   :  { %v1386_v0 = vpop.f32.mrf.mxu1 }
 0x7d5   :  { %v1387_v38 = vadd.f32 %v1386_v0, %v1343_v34  ;;  %5707 = vmatmul.mubr.msk.bf16.vlgmr.msra.gmra.mxu0 %vm253_vm2, %v1510_v36 }
 0x7d6   :  { %v5703_v39 = vpop.f32.mrf.mxu1  ;;  %5718 = vmatprep.mubr.msk.bf16.mxu0 %vm6573_vm0, %v6572_v1 }
 0x7d7   :  { %v1511_v40 = vpack.c.bf16 %v1387_v38, %v1387_v38  ;;  %v6182_v48 = vpack.i.bf16 %v1387_v38, %v1384_v28 }
 0x7d9   :  { %6183 = vrot.lane.b32.xlu1 %v6182_v48, %s6575_s15  ;;  %6168 = vrot.lane.b32.xlu0 %v6182_v48, %s6576_s16 }
 0x7da   :  { %5713 = vmatmul.mubr.msk.bf16.vlgmr.msra.gmra.mxu1 %vm253_vm2, %v1511_v40 }
 0x7db   :  { %5724 = vmatprep.mubr.msk.bf16.mxu1 %vm6573_vm0, %v6572_v1 }
 0x7dd   :  { %6188 = vrot.lane.b32.xlu1 %v6157_v33, %s6577_s17  ;;  %6173 = vrot.lane.b32.xlu0 %v6157_v33, %s6575_s15 }
 0x7e1   :  { %6178 = vrot.lane.b32.xlu0 %v6152_v26, %s6577_s17 }
 0x7e5   :  { %6193 = vrot.lane.b32.xlu0 %v6182_v48, %s6577_s17 }
 0x7e9   :  { %1463 = vrot.lane.b32.xlu0 %v1461_v44, %s6574_s0 }
 0x83b   :  { %v6154_v45 = vpop.permute.xlu1 %6153 }
 0x83c   :  { %v6156_v46 = vunpack.i.h.bf16 %v6154_v45  ;;  %v6155_v49 = vunpack.i.l.bf16 %v6154_v45 }
 0x83e   :  { %v1520_v50 = vpack.c.bf16 %v6156_v46, %v6155_v49 }
 0x83f   :  { %v6159_v32 = vpop.permute.xlu1 %6158 }
 0x840   :  { %v6161_v51 = vunpack.i.h.bf16 %v6159_v32  ;;  %v6160_v43 = vunpack.i.l.bf16 %v6159_v32  ;;  %v1622_v52 = vsel %vm253_vm2, %v1520_v50, 0 }
 0x841   :  { %5717 = vmatpush3.bf16.xpose.msra.mxu0 %v1622_v52 }
 0x842   :  { %v1521_v53 = vpack.c.bf16 %v6161_v51, %v6160_v43  ;;  %5728 = vmatprep.subr.bf16.mxu0 %v6572_v1 }
 0x843   :  { %v6164_v37 = vpop.permute.xlu1 %6163 }
 0x844   :  { %v1668_v55 = vsel %vm253_vm2, %v1521_v53, 0  ;;  %v6166_v59 = vunpack.i.h.bf16 %v6164_v37  ;;  %v6165_v60 = vunpack.i.l.bf16 %v6164_v37 }
 0x845   :  { %5723 = vmatpush3.bf16.xpose.msra.mxu1 %v1668_v55 }
 0x846   :  { %5734 = vmatprep.subr.bf16.mxu1 %v6572_v1  ;;  %v1522_v10 = vpack.c.bf16 %v6166_v59, %v6165_v60 }
 0x848   :  { %v1714_v25 = vsel %vm253_vm2, %v1522_v10, 0 }
 0x84b   :  { %v6184_v61 = vpop.permute.xlu1 %6183  ;;  %v6169_v62 = vpop.permute.xlu0 %6168 }
 0x84c   :  { %v6171_v63 = vunpack.i.h.bf16 %v6169_v62  ;;  %v6170_v9 = vunpack.i.l.bf16 %v6169_v62  ;;  %v6185_v27 = vunpack.i.l.bf16 %v6184_v61  ;;  %v6186_v28 = vunpack.i.h.bf16 %v6184_v61 }
 0x84e   :  { %v1513_v42 = vpack.c.bf16 %v6171_v63, %v6171_v63  ;;  %v1512_v16 = vpack.c.bf16 %v6170_v9, %v6170_v9  ;;  %v1514_v35 = vpack.c.bf16 %v6185_v27, %v6185_v27  ;;  %v1515_v40 = vpack.c.bf16 %v6186_v28, %v6186_v28 }
 0x84f   :  { %v6174_v57 = vpop.permute.xlu0 %6173  ;;  %v6189_v20 = vpop.permute.xlu1 %6188 }
 0x850   :  { %v6176_v15 = vunpack.i.h.bf16 %v6174_v57  ;;  %v6175_v23 = vunpack.i.l.bf16 %v6174_v57  ;;  %5719 = vmatmul.mubr.msk.bf16.vlgmr.msra.gmra.mxu0 %vm253_vm2, %v1512_v16  ;;  %5725 = vmatmul.mubr.msk.bf16.vlgmr.msra.gmra.mxu1 %vm253_vm2, %v1513_v42  ;;  %v6191_v11 = vunpack.i.h.bf16 %v6189_v20  ;;  %v6190_v14 = vunpack.i.l.bf16 %v6189_v20 }
 0x851   :  { %5729 = vmatpush3.bf16.xpose.msra.mxu0 %v1714_v25  ;;  %5730 = vmatprep.mubr.msk.bf16.mxu0 %vm6573_vm0, %v6572_v1 }
 0x852   :  { %v1523_v26 = vpack.c.bf16 %v6176_v15, %v6175_v23  ;;  %5740 = vmatprep.subr.bf16.mxu0 %v6572_v1  ;;  %5736 = vmatprep.mubr.msk.bf16.mxu1 %vm6573_vm0, %v6572_v1  ;;  %v1525_v38 = vpack.c.bf16 %v6191_v11, %v6190_v14 }
 0x853   :  { %v6179_v29 = vpop.permute.xlu0 %6178 }
 0x854   :  { %v6181_v33 = vunpack.i.h.bf16 %v6179_v29  ;;  %v6180_v34 = vunpack.i.l.bf16 %v6179_v29  ;;  %v1760_v6 = vsel %vm253_vm2, %v1523_v26, 0  ;;  %v1852_v45 = vsel %vm253_vm2, %v1525_v38, 0 }
 0x855   :  { %5735 = vmatpush3.bf16.xpose.msra.mxu1 %v1760_v6 }
 0x856   :  { %v1524_v36 = vpack.c.bf16 %v6181_v33, %v6180_v34  ;;  %5746 = vmatprep.subr.bf16.mxu1 %v6572_v1 }
 0x857   :  { %v6194_v0 = vpop.permute.xlu0 %6193 }
 0x858   :  { %5731 = vmatmul.mubr.msk.bf16.vlgmr.msra.gmra.mxu0 %vm253_vm2, %v1514_v35  ;;  %v1806_v39 = vsel %vm253_vm2, %v1524_v36, 0  ;;  %v6195_v48 = vunpack.i.l.bf16 %v6194_v0  ;;  %v6196_v52 = vunpack.i.h.bf16 %v6194_v0 }
 0x859   :  { %5741 = vmatpush3.bf16.xpose.msra.mxu0 %v1806_v39  ;;  %5742 = vmatprep.mubr.msk.bf16.mxu0 %vm6573_vm0, %v6572_v1 }
 0x85a   :  { %5752 = vmatprep.subr.bf16.mxu0 %v6572_v1  ;;  %v1516_v53 = vpack.c.bf16 %v6195_v48, %v6195_v48 }
 0x85b   :  { %v1464_v44 = vpop.permute.xlu0 %1463 }
 0x85c   :  { %v1466_v46 = vadd.f32 %v1464_v44, %v6985_v19  ;;  %v1467_v49 = vadd.f32 %v1464_v44, %v6992_v24  ;;  %v1468_v50 = vadd.f32 %v6976_v54, %v1464_v44  ;;  %v1469_v32 = vadd.f32 %v6988_v12, %v1464_v44  ;;  %5737 = vmatmul.mubr.msk.bf16.vlgmr.msra.gmra.mxu1 %vm253_vm2, %v1515_v40 }
 0x85d   :  { %5747 = vmatpush3.bf16.xpose.msra.mxu1 %v1852_v45  ;;  %5748 = vmatprep.mubr.msk.bf16.mxu1 %vm6573_vm0, %v6572_v1  ;;  %v1517_v19 = vpack.c.bf16 %v6196_v52, %v6196_v52 }
 0x85e   :  { %v6202_v51 = vpack.i.bf16 %v1469_v32, %v1468_v50  ;;  %v6197_v43 = vpack.i.bf16 %v1467_v49, %v1466_v46  ;;  %5758 = vmatprep.subr.bf16.mxu1 %v6572_v1  ;;  %v1991_v55 = vpack.c.bf16 %v1469_v32, %v1468_v50  ;;  %v1990_v54 = vpack.c.bf16 %v1467_v49, %v1466_v46 }
 0x860   :  { %6203 = vrot.lane.b32.xlu1 %v6202_v51, %s6576_s16  ;;  %6198 = vrot.lane.b32.xlu0 %v6197_v43, %s6576_s16 }
 0x861   :  { %5743 = vmatmul.mubr.msk.bf16.vlgmr.msra.gmra.mxu0 %vm253_vm2, %v1516_v53 }
 0x862   :  { %5754 = vmatprep.mubr.msk.bf16.mxu0 %vm6573_vm0, %v6572_v1 }
 0x864   :  { %6208 = vrot.lane.b32.xlu0 %v6197_v43, %s6575_s15  ;;  %1999 = vrot.lane.b32.xlu1 %v1990_v54, %s6578_s18 }
 0x865   :  { %5749 = vmatmul.mubr.msk.bf16.vlgmr.msra.gmra.mxu1 %vm253_vm2, %v1517_v19 }
 0x866   :  { %5760 = vmatprep.mubr.msk.bf16.mxu1 %vm6573_vm0, %v6572_v1 }
 0x868   :  { %6213 = vrot.lane.b32.xlu0 %v6202_v51, %s6575_s15 }
 0x86c   :  { %6218 = vrot.lane.b32.xlu0 %v6197_v43, %s6577_s17 }
 0x870   :  { %6223 = vrot.lane.b32.xlu0 %v6202_v51, %s6577_s17 }
 0x895   :  { %v1566_v12 = vpop.f32.mrf.mxu0 }
 0x896   :  { %v1894_v24 = vsel %vm1166_vm5, %v1566_v12, -inf }
 0x897   :  { %v5708_v37 = vpop.f32.mrf.mxu0  ;;  %1895 = vmax.xlane.f32.xlu1 %v1894_v24 }
 0x899   :  { %v1569_v59 = vpop.f32.mrf.mxu0 }
 0x89a   :  { %v7067_v60 = vpop.f32.mrf.mxu1 }
 0x89b   :  { %v5709_v61 = vpop.f32.mrf.mxu0  ;;  %v1897_v62 = vsel %vm1166_vm5, %v7067_v60, -inf }
 0x89c   :  { %1898 = vmax.xlane.f32.xlu0 %v1897_v62  ;;  %v5714_v63 = vpop.f32.mrf.mxu1 }
 0x89e   :  { %v1615_v9 = vpop.f32.mrf.mxu1 }
 0x8a0   :  { %v5715_v10 = vpop.f32.mrf.mxu1 }
 0x8b2   :  { %2046 = vrot.lane.b32.xlu0 %v1991_v55, %s6578_s18 }
 0x8d2   :  { %v7072_v42 = vpop.permute.xlu1 %6203  ;;  %v6199_v16 = vpop.permute.xlu0 %6198 }
 0x8d3   :  { %v6201_v57 = vunpack.i.h.bf16 %v6199_v16  ;;  %v6200_v20 = vunpack.i.l.bf16 %v6199_v16 }
 0x8d5   :  { %v1992_v15 = vpack.c.bf16 %v6201_v57, %v6200_v20  ;;  %v6206_v57 = vunpack.i.h.bf16 %v7072_v42  ;;  %v6205_v20 = vunpack.i.l.bf16 %v7072_v42 }
 0x8d6   :  { %v2000_v23 = vpop.permute.xlu1 %1999  ;;  %v7076_v25 = vpop.permute.xlu0 %6208 }
 0x8d7   :  { %2093 = vrot.lane.b32.xlu1 %v1992_v15, %s6578_s18  ;;  %5753 = vmatpush3.bf16.msra.mxu0 %v2000_v23  ;;  %v1993_v23 = vpack.c.bf16 %v6206_v57, %v6205_v20 }
 0x8d8   :  { %5764 = vmatprep.subr.bf16.mxu0 %v6572_v1 }
 0x8da   :  { %v6214_v6 = vpop.permute.xlu0 %6213 }
 0x8de   :  { %v7087_v40 = vpop.permute.xlu0 %6218 }
 0x8e2   :  { %v7093_v51 = vpop.permute.xlu0 %6223 }
 0x910   :  { %v7078_v27 = vpop.f32.mrf.mxu0  ;;  %v7080_v26 = vpop.f32.mrf.mxu1 }
 0x911   :  { %v1900_v11 = vsel %vm1166_vm5, %v7078_v27, -inf  ;;  %v1903_v28 = vsel %vm1166_vm5, %v7080_v26, -inf }
 0x912   :  { %1901 = vmax.xlane.f32.xlu1 %v1900_v11  ;;  %v5720_v14 = vpop.f32.mrf.mxu0  ;;  %v5726_v29 = vpop.f32.mrf.mxu1 }
 0x914   :  { %v1661_v33 = vpop.f32.mrf.mxu0  ;;  %v1707_v34 = vpop.f32.mrf.mxu1 }
 0x915   :  { %v6216_v34 = vunpack.i.h.bf16 %v6214_v6 }
 0x916   :  { %v5721_v35 = vpop.f32.mrf.mxu0  ;;  %1904 = vmax.xlane.f32.xlu1 %v1903_v28  ;;  %v5727_v36 = vpop.f32.mrf.mxu1  ;;  %v6215_v28 = vunpack.i.l.bf16 %v6214_v6 }
 0x918   :  { %v1750_v0 = vpop.f32.mrf.mxu0  ;;  %v1995_v35 = vpack.c.bf16 %v6216_v34, %v6215_v28 }
 0x919   :  { %v1906_v38 = vsel %vm1166_vm5, %v1750_v0, -inf }
 0x91a   :  { %v5732_v39 = vpop.f32.mrf.mxu0  ;;  %1907 = vmax.xlane.f32.xlu1 %v1906_v38 }
 0x91c   :  { %v1753_v48 = vpop.f32.mrf.mxu0  ;;  %v7089_v44 = vpop.f32.mrf.mxu1 }
 0x91d   :  { %v1909_v45 = vsel %vm1166_vm5, %v7089_v44, -inf }
 0x91e   :  { %v5733_v46 = vpop.f32.mrf.mxu0  ;;  %1910 = vmax.xlane.f32.xlu1 %v1909_v45  ;;  %v5738_v49 = vpop.f32.mrf.mxu1 }
 0x920   :  { %v1896_v50 = vpop.xlane.xlu1 %1895  ;;  %v1799_v32 = vpop.f32.mrf.mxu1 }
 0x921   :  { %v1918_v43 = vsub.f32 %v1566_v12, %v1896_v50  ;;  %v1842_v52 = vpop.f32.mrf.mxu0 }
 0x922   :  { %v1912_v53 = vsel %vm1166_vm5, %v1842_v52, -inf  ;;  %v5739_v55 = vpop.f32.mrf.mxu1 }
 0x923   :  { %v1926_v54 = vmul.f32 1.442695, %v1918_v43  ;;  %v5744_v19 = vpop.f32.mrf.mxu0  ;;  %1913 = vmax.xlane.f32.xlu1 %v1912_v53 }
 0x925   :  { %6448 = vpow2.f32 %v1926_v54  ;;  %v1845_v24 = vpop.f32.mrf.mxu0  ;;  %v1899_v37 = vpop.xlane.xlu0 %1898 }
 0x926   :  { %v7096_v59 = vpop.f32.mrf.mxu1  ;;  %v1919_v11 = vsub.f32 %v7067_v60, %v1899_v37 }
 0x927   :  { %v5745_v61 = vpop.f32.mrf.mxu0  ;;  %v1915_v62 = vsel %vm1166_vm5, %v7096_v59, -inf }
 0x928   :  { %1916 = vmax.xlane.f32.xlu1 %v1915_v62  ;;  %v5750_v63 = vpop.f32.mrf.mxu1  ;;  %v1928_v14 = vmul.f32 1.442695, %v1919_v11  ;;  %v6211_v61 = vunpack.i.h.bf16 %v7076_v25  ;;  %v6210_v62 = vunpack.i.l.bf16 %v7076_v25 }
 0x929   :  { %v2047_v9 = vpop.permute.xlu0 %2046 }
 0x92a   :  { %v1891_v12 = vpop.f32.mrf.mxu1  ;;  %5759 = vmatpush3.bf16.msra.mxu1 %v2047_v9  ;;  %6450 = vpow2.f32 %v1928_v14  ;;  %v1994_v63 = vpack.c.bf16 %v6211_v61, %v6210_v62 }
 0x92b   :  { %5770 = vmatprep.subr.bf16.mxu1 %v6572_v1  ;;  %v6226_v12 = vunpack.i.h.bf16 %v7093_v51 }
 0x92c   :  { %v5751_v10 = vpop.f32.mrf.mxu1 }
 0x92d   :  { %v6225_v10 = vunpack.i.l.bf16 %v7093_v51 }
 0x932   :  { %v6449_v16 = vpop.eup %6448 }
 0x933   :  { %v1942_v15 = vsel %vm1166_vm5, %v6449_v16, 0.0 }
 0x934   :  { %1943 = vadd.xlane.f32.xlu0 %v1942_v15 }
 0x937   :  { %v7106_v29 = vpop.eup %6450 }
 0x938   :  { %v1945_v33 = vsel %vm1166_vm5, %v7106_v29, 0.0 }
 0x939   :  { %2140 = vrot.lane.b32.xlu1 %v1993_v23, %s6578_s18  ;;  %v1997_v23 = vpack.c.bf16 %v6226_v12, %v6225_v10 }
 0x949   :  { %v2094_v42 = vpop.permute.xlu1 %2093 }
 0x95d   :  { %1946 = vadd.xlane.f32.xlu1 %v1945_v33 }
 0x96e   :  { %2234 = vrot.lane.b32.xlu1 %v1995_v35, %s6578_s18 }
 0x99b   :  { %v1902_v36 = vpop.xlane.xlu1 %1901 }
 0x99c   :  { %v1920_v38 = vsub.f32 %v7078_v27, %v1902_v36 }
 0x99e   :  { %v1930_v39 = vmul.f32 1.442695, %v1920_v38  ;;  %v6221_v38 = vunpack.i.h.bf16 %v7087_v40 }
 0x99f   :  { %v1905_v48 = vpop.xlane.xlu1 %1904 }
 0x9a0   :  { %6452 = vpow2.f32 %v1930_v39  ;;  %v1921_v60 = vsub.f32 %v7080_v26, %v1905_v48  ;;  %v6220_v39 = vunpack.i.l.bf16 %v7087_v40 }
 0x9a2   :  { %v1932_v45 = vmul.f32 1.442695, %v1921_v60  ;;  %v1996_v48 = vpack.c.bf16 %v6221_v38, %v6220_v39 }
 0x9a3   :  { %v1908_v46 = vpop.xlane.xlu1 %1907 }
 0x9a4   :  { %6454 = vpow2.f32 %v1932_v45  ;;  %v1922_v49 = vsub.f32 %v1750_v0, %v1908_v46 }
 0x9a6   :  { %v1934_v50 = vmul.f32 1.442695, %v1922_v49 }
 0x9a7   :  { %v1911_v32 = vpop.xlane.xlu1 %1910 }
 0x9a8   :  { %6456 = vpow2.f32 %v1934_v50  ;;  %v1923_v15 = vsub.f32 %v7089_v44, %v1911_v32 }
 0x9aa   :  { %v1936_v25 = vmul.f32 1.442695, %v1923_v15 }
 0x9ac   :  { %v1914_v6 = vpop.xlane.xlu1 %1913 }
 0x9ad   :  { %v7113_v43 = vpop.eup %6452  ;;  %v1924_v53 = vsub.f32 %v1842_v52, %v1914_v6 }
 0x9ae   :  { %v1948_v55 = vsel %vm1166_vm5, %v7113_v43, 0.0 }
 0x9af   :  { %v1938_v27 = vmul.f32 1.442695, %v1924_v53  ;;  %1949 = vadd.xlane.f32.xlu0 %v1948_v55 }
 0x9b1   :  { %v7117_v54 = vpop.eup %6454  ;;  %6458 = vpow2.f32 %v1938_v27  ;;  %v1917_v11 = vpop.xlane.xlu1 %1916 }
 0x9b2   :  { %v1951_v26 = vsel %vm1166_vm5, %v7117_v54, 0.0  ;;  %v1925_v14 = vsub.f32 %v7096_v59, %v1917_v11 }
 0x9b3   :  { %1952 = vadd.xlane.f32.xlu0 %v1951_v26 }
 0x9b4   :  { %v1940_v51 = vmul.f32 1.442695, %v1925_v14 }
 0x9b5   :  { %v7121_v0 = vpop.eup %6456 }
 0x9b6   :  { %v1954_v19 = vsel %vm1166_vm5, %v7121_v0, 0.0 }
 0x9b7   :  { %1955 = vadd.xlane.f32.xlu1 %v1954_v19 }
 0x9bd   :  { %v1944_v24 = vpop.xlane.xlu0 %1943 }
 0x9be   :  { %v7125_v52 = vpop.eup %6458  ;;  %6460 = vrcp.f32 %v1944_v24 }
 0x9bf   :  { %v1960_v37 = vsel %vm1166_vm5, %v7125_v52, 0.0  ;;  %6462 = vpow2.f32 %v1936_v25 }
 0x9c0   :  { %1961 = vadd.xlane.f32.xlu1 %v1960_v37  ;;  %6464 = vpow2.f32 %v1940_v51 }
 0x9c9   :  { %2187 = vrot.lane.b32.xlu0 %v1994_v63, %s6578_s18 }
 0x9cb   :  { %v6461_v9 = vpop.eup %6460 }
 0x9cc   :  { %v1974_v57 = vmul.f32 %v6461_v9, %v6449_v16  ;;  %v2141_v16 = vpop.permute.xlu1 %2140  ;;  %v6463_v44 = vpop.eup %6462 }
 0x9cd   :  { %v1957_v34 = vsel %vm1166_vm5, %v6463_v44, 0.0  ;;  %v7142_v28 = vpop.eup %6464 }
 0x9ce   :  { %v1982_v20 = vpack.c.bf16 %v1974_v57, %v1974_v57  ;;  %v1963_v35 = vsel %vm1166_vm5, %v7142_v28, 0.0 }
 0x9d0   :  { %5755 = vmatmul.mubr.msk.bf16.vlgmr.msra.gmra.mxu0 %vm1166_vm5, %v1982_v20 }
 0x9d1   :  { %5765 = vmatpush3.bf16.msra.mxu0 %v2094_v42  ;;  %2328 = vrot.lane.b32.xlu1 %v1997_v23, %s6578_s18 }
 0x9d2   :  { %5766 = vmatprep.mubr.msk.bf16.mxu0 %vm6573_vm0, %v6572_v1  ;;  %5776 = vmatprep.subr.bf16.mxu0 %v6572_v1 }
 0x9e6   :  { %v1947_v33 = vpop.xlane.xlu1 %1946 }
 0x9e7   :  { %6466 = vrcp.f32 %v1947_v33 }
 0x9e8   :  { %1958 = vadd.xlane.f32.xlu0 %v1957_v34 }
 0x9ea   :  { %v2235_v60 = vpop.permute.xlu1 %2234 }
 0x9ec   :  { %1964 = vadd.xlane.f32.xlu0 %v1963_v35 }
 0x9f4   :  { %v6467_v42 = vpop.eup %6466 }
 0x9f5   :  { %v1975_v36 = vmul.f32 %v6467_v42, %v7106_v29 }
 0x9f7   :  { %v1983_v59 = vpack.c.bf16 %v1975_v36, %v1975_v36 }
 0x9f9   :  { %5761 = vmatmul.mubr.msk.bf16.vlgmr.msra.gmra.mxu1 %vm1166_vm5, %v1983_v59 }
 0x9fa   :  { %5771 = vmatpush3.bf16.msra.mxu1 %v2141_v16  ;;  %5772 = vmatprep.mubr.msk.bf16.mxu1 %vm6573_vm0, %v6572_v1 }
 0x9fb   :  { %5782 = vmatprep.subr.bf16.mxu1 %v6572_v1 }
 0xa02   :  { %2281 = vrot.lane.b32.xlu0 %v1996_v48, %s6578_s18 }
 0xa06   :  { %2411 = vrot.lane.b32.xlu0 %v6915_v7, %s6574_s0 }
 0xa38   :  { %v1950_v29 = vpop.xlane.xlu0 %1949 }
 0xa39   :  { %6468 = vrcp.f32 %v1950_v29 }
 0xa3c   :  { %v1953_v45 = vpop.xlane.xlu0 %1952 }
 0xa3d   :  { %6470 = vrcp.f32 %v1953_v45 }
 0xa40   :  { %v1956_v46 = vpop.xlane.xlu1 %1955  ;;  %v2188_v53 = vpop.permute.xlu0 %2187 }
 0xa41   :  { %6472 = vrcp.f32 %v1956_v46 }
 0xa46   :  { %v6469_v49 = vpop.eup %6468 }
 0xa47   :  { %v1976_v50 = vmul.f32 %v6469_v49, %v7113_v43 }
 0xa49   :  { %v1984_v32 = vpack.c.bf16 %v1976_v50, %v1976_v50 }
 0xa4a   :  { %v6471_v6 = vpop.eup %6470 }
 0xa4b   :  { %5767 = vmatmul.mubr.msk.bf16.vlgmr.msra.gmra.mxu0 %vm1166_vm5, %v1984_v32  ;;  %v1977_v40 = vmul.f32 %v6471_v6, %v7117_v54  ;;  %v1962_v54 = vpop.xlane.xlu1 %1961 }
 0xa4c   :  { %5777 = vmatpush3.bf16.msra.mxu0 %v2188_v53  ;;  %5778 = vmatprep.mubr.msk.bf16.mxu0 %vm6573_vm0, %v6572_v1  ;;  %6474 = vrcp.f32 %v1962_v54 }
 0xa4d   :  { %v1985_v7 = vpack.c.bf16 %v1977_v40, %v1977_v40  ;;  %5788 = vmatprep.subr.bf16.mxu0 %v6572_v1 }
 0xa4e   :  { %v6473_v55 = vpop.eup %6472 }
 0xa4f   :  { %5773 = vmatmul.mubr.msk.bf16.vlgmr.msra.gmra.mxu1 %vm1166_vm5, %v1985_v7  ;;  %v1978_v27 = vmul.f32 %v6473_v55, %v7121_v0  ;;  %v2329_v10 = vpop.permute.xlu1 %2328 }
 0xa50   :  { %5783 = vmatpush3.bf16.msra.mxu1 %v2235_v60  ;;  %5784 = vmatprep.mubr.msk.bf16.mxu1 %vm6573_vm0, %v6572_v1 }
 0xa51   :  { %v1986_v43 = vpack.c.bf16 %v1978_v27, %v1978_v27  ;;  %5794 = vmatprep.subr.bf16.mxu1 %v6572_v1 }
 0xa53   :  { %5779 = vmatmul.mubr.msk.bf16.vlgmr.msra.gmra.mxu0 %vm1166_vm5, %v1986_v43 }
 0xa54   :  { %5790 = vmatprep.mubr.msk.bf16.mxu0 %vm6573_vm0, %v6572_v1 }
 0xa59   :  { %v6475_v19 = vpop.eup %6474 }
 0xa5a   :  { %v1980_v0 = vmul.f32 %v6475_v19, %v7125_v52 }
 0xa5c   :  { %v1988_v61 = vpack.c.bf16 %v1980_v0, %v1980_v0 }
 0xa71   :  { %v1959_v26 = vpop.xlane.xlu0 %1958 }
 0xa72   :  { %6476 = vrcp.f32 %v1959_v26 }
 0xa75   :  { %v1965_v24 = vpop.xlane.xlu0 %1964 }
 0xa76   :  { %6478 = vrcp.f32 %v1965_v24 }
 0xa79   :  { %v2282_v37 = vpop.permute.xlu0 %2281 }
 0xa7a   :  { %5789 = vmatpush3.bf16.msra.mxu0 %v2282_v37 }
 0xa7b   :  { %5800 = vmatprep.subr.bf16.mxu0 %v6572_v1 }
 0xa7d   :  { %5791 = vmatmul.mubr.msk.bf16.vlgmr.msra.gmra.mxu0 %vm1166_vm5, %v1988_v61 }
 0xa7e   :  { %5804 = vmatprep.mubr.msk.bf16.mxu0 %vm6573_vm0, %v6572_v1 }
 0xa7f   :  { %v6477_v62 = vpop.eup %6476 }
 0xa80   :  { %v1979_v63 = vmul.f32 %v6477_v62, %v6463_v44  ;;  %v2412_v44 = vpop.permute.xlu0 %2411 }
 0xa81   :  { %5801 = vmatpush3.bf16.msra.mxu0 %v2412_v44 }
 0xa82   :  { %v1987_v9 = vpack.c.bf16 %v1979_v63, %v1979_v63  ;;  %5802 = vmatprep.subr.bf16.mxu0 %v6572_v1 }
 0xa83   :  { %v6479_v12 = vpop.eup %6478 }
 0xa84   :  { %5785 = vmatmul.mubr.msk.bf16.vlgmr.msra.gmra.mxu1 %vm1166_vm5, %v1987_v9  ;;  %v1981_v52 = vmul.f32 %v6479_v12, %v7142_v28 }
 0xa85   :  { %5795 = vmatpush3.bf16.msra.mxu1 %v2329_v10  ;;  %5796 = vmatprep.mubr.msk.bf16.mxu1 %vm6573_vm0, %v6572_v1 }
 0xa86   :  { %5808 = vmatprep.subr.bf16.mxu1 %v6572_v1  ;;  %v1989_v57 = vpack.c.bf16 %v1981_v52, %v1981_v52 }
 0xa8c   :  { %5797 = vmatmul.mubr.msk.bf16.vlgmr.msra.gmra.mxu1 %vm1166_vm5, %v1989_v57 }
 0xa8d   :  { %5812 = vmatprep.mubr.msk.bf16.mxu1 %vm6573_vm0, %v6572_v1 }
 0xa90   :  { %v2039_v20 = vpop.f32.mrf.mxu0 }
 0xa92   :  { %v5756_v15 = vpop.f32.mrf.mxu0 }
 0xa94   :  { %v2042_v23 = vpop.f32.mrf.mxu0 }
 0xa96   :  { %v5757_v11 = vpop.f32.mrf.mxu0 }
 0xab9   :  { %v2086_v25 = vpop.f32.mrf.mxu1 }
 0xabb   :  { %v5762_v14 = vpop.f32.mrf.mxu1 }
 0xabd   :  { %v2089_v51 = vpop.f32.mrf.mxu1 }
 0xabf   :  { %v5763_v16 = vpop.f32.mrf.mxu1 }
 0xb0b   :  { %v2133_v33 = vpop.f32.mrf.mxu0 }
 0xb0d   :  { %v5768_v34 = vpop.f32.mrf.mxu0 }
 0xb0f   :  { %v2136_v28 = vpop.f32.mrf.mxu0  ;;  %v2180_v35 = vpop.f32.mrf.mxu1 }
 0xb10   :  { %v6227_v42 = vpack.i.bf16 %v2180_v35, %v2133_v33 }
 0xb11   :  { %v5769_v36 = vpop.f32.mrf.mxu0  ;;  %v5774_v59 = vpop.f32.mrf.mxu1 }
 0xb12   :  { %6228 = vrot.lane.b32.xlu1 %v6227_v42, %s6581_s20 }
 0xb13   :  { %v2183_v38 = vpop.f32.mrf.mxu1  ;;  %v2227_v39 = vpop.f32.mrf.mxu0 }
 0xb15   :  { %v5775_v48 = vpop.f32.mrf.mxu1  ;;  %v5780_v29 = vpop.f32.mrf.mxu0 }
 0xb17   :  { %v2230_v60 = vpop.f32.mrf.mxu0 }
 0xb19   :  { %v5781_v45 = vpop.f32.mrf.mxu0 }
 0xb3d   :  { %v2321_v46 = vpop.f32.mrf.mxu0 }
 0xb3f   :  { %v5792_v49 = vpop.f32.mrf.mxu0 }
 0xb41   :  { %v2324_v50 = vpop.f32.mrf.mxu0 }
 0xb43   :  { %v5793_v32 = vpop.f32.mrf.mxu0 }
 0xb44   :  { %v2274_v6 = vpop.f32.mrf.mxu1  ;;  %v6397_v32 = vld [vmem:[%s7869_s3] sm:$0xff]  }
 0xb45   :  { %v6232_v53 = vpack.i.bf16 %v2274_v6, %v2227_v39  ;;  %v6398_v6 = vld [vmem:[%s7870_s4 + $0x18] sm:$0xff]  }
 0xb46   :  { %v5786_v40 = vpop.f32.mrf.mxu1 }
 0xb47   :  { %6233 = vrot.lane.b32.xlu0 %v6232_v53, %s6582_s21 }
 0xb48   :  { %v2277_v7 = vpop.f32.mrf.mxu1 }
 0xb4a   :  { %v5787_v55 = vpop.f32.mrf.mxu1 }
 0xb4b   :  { %2409 = vrot.lane.b32.xlu0 %v6924_v5, %s6574_s0 }
 0xb4c   :  { %v2368_v27 = vpop.f32.mrf.mxu1 }
 0xb4d   :  { %v6237_v43 = vpack.i.bf16 %v2368_v27, %v2321_v46 }
 0xb4e   :  { %v5798_v54 = vpop.f32.mrf.mxu1 }
 0xb4f   :  { %6238 = vrot.lane.b32.xlu1 %v6237_v43, %s6583_s22 }
 0xb50   :  { %v2371_v26 = vpop.f32.mrf.mxu1 }
 0xb52   :  { %v5799_v19 = vpop.f32.mrf.mxu1 }
 0xb53   :  { %v2490_v19 = vrot.slane %v6958_v58, %v6904_v22 }
 0xb84   :  { %v6229_v0 = vpop.permute.xlu1 %6228 }
 0xb85   :  { %v6231_v61 = vunpack.i.h.bf16 %v6229_v0  ;;  %v6230_v62 = vunpack.i.l.bf16 %v6229_v0 }
 0xb87   :  { %v2399_v5 = vsel %vm253_vm2, %v2086_v25, %v6231_v61  ;;  %v2398_v10 = vsel %vm253_vm2, %v2039_v20, %v6230_v62  ;;  %v2407_v25 = vsub.s32 7, %v6643_v4  ;;  %v2496_v61 = vrot.slane %v6958_v58, %v6999_v31  ;;  %v6400_v58 = vld [vmem:[%s7870_s4 + $0x8] sm:$0xff]  }
 0xb89   :  { %v2408_v20 = vrot.slane %v6981_v18, %v2407_v25 }
 0xbb9   :  { %v6234_v24 = vpop.permute.xlu0 %6233 }
 0xbba   :  { %v6236_v63 = vunpack.i.h.bf16 %v6234_v24  ;;  %v6235_v9 = vunpack.i.l.bf16 %v6234_v24 }
 0xbbc   :  { %v2401_v15 = vsel %vm1166_vm5, %v2399_v5, %v6236_v63  ;;  %v2400_v23 = vsel %vm1166_vm5, %v2398_v10, %v6235_v9  ;;  %v6399_v5 = vld [vmem:[%s7870_s4 + $0x10] sm:$0xff]   ;;  %v6401_v10 = vld [vmem:[%s7870_s4] sm:$0xff]  }
 0xbbd   :  { %v2410_v37 = vpop.permute.xlu0 %2409 }
 0xbbe   :  { %5803 = vmatpush3.bf16.msra.mxu0 %v2410_v37 }
 0xbbf   :  { %5816 = vmatprep.subr.bf16.mxu0 %v6572_v1 }
 0xbc1   :  { %v6239_v12 = vpop.permute.xlu1 %6238 }
 0xbc2   :  { %v6241_v52 = vunpack.i.h.bf16 %v6239_v12  ;;  %v6240_v57 = vunpack.i.l.bf16 %v6239_v12 }
 0xbc4   :  { %v2403_v11 = vsel %vm1169_vm6, %v2401_v15, %v6241_v52  ;;  %v2402_v14 = vsel %vm1169_vm6, %v2400_v23, %v6240_v57  ;;  %v5340_v52 = vld [vmem:[%s7871_s5] ss:$0 sm:$0xff] }
 0xbc5   :  { %v2404_v51 = vpack.c.bf16 %v2403_v11, %v2402_v14 }
 0xbc7   :  { %5805 = vmatmul.mubr.msk.bf16.vlgmr.msra.gmra.mxu0 %vm103_vm1, %v2404_v51 }
 0xbc8   :  { %5824 = vmatprep.mubr.msk.bf16.mxu0 %vm6573_vm0, %v6572_v1  ;;  %5817 = vmatpush3.bf16.msra.mxu0 %v6398_v6 }
 0xbc9   :  { %5818 = vmatprep.subr.bf16.mxu0 %v6572_v1 }
 0xbcc   :  { %5819 = vmatpush3.bf16.msra.mxu0 %v6399_v5 }
 0xbcd   :  { %5820 = vmatprep.subr.bf16.mxu0 %v6572_v1 }
 0xbd0   :  { %5821 = vmatpush3.bf16.msra.mxu0 %v6400_v58 }
 0xbd1   :  { %5822 = vmatprep.subr.bf16.mxu0 %v6572_v1 }
 0xbd4   :  { %5823 = vmatpush3.bf16.msra.mxu0 %v6401_v10 }
 0xbd5   :  { %5842 = vmatprep.subr.bf16.mxu0 %v6572_v1 }
 0xc87   :  { %v2452_v16 = vpop.f32.mrf.mxu0 }
 0xc88   :  { %v2453_v44 = vadd.f32 %v2452_v16, %v2408_v20 }
 0xc89   :  { %v5806_v33 = vpop.f32.mrf.mxu0 }
 0xc8a   :  { %v2459_v34 = vadd.f32 %v2453_v44, %v6964_v13  ;;  %v6569_v33 = vld [vmem:[%s7867_s6 + $0x8] sm:$0x7f] }
 0xc8b   :  { %v2455_v28 = vpop.f32.mrf.mxu0  ;;  %v2675_v5 = vrot.slane %v6569_v33, %v7019_v41 }
 0xc8c   :  { %v2456_v35 = vadd.f32 %v2455_v28, %v2408_v20  ;;  %v2461_v42 = vsel %vm103_vm1, %v2459_v34, 0.0 }
 0xc8d   :  { %2462 = vadd.xlane.f32.xlu1 %v2461_v42  ;;  %v5807_v36 = vpop.f32.mrf.mxu0 }
 0xc8e   :  { %v2460_v59 = vadd.f32 %v2456_v35, %v6966_v3  ;;  %v6396_v3 = vld [vmem:[%s7869_s3 + $0x8] sm:$0xff]  }
 0xc8f   :  { %5809 = vmatpush3.bf16.msra.mxu1 %v6396_v3 }
 0xc90   :  { %v2464_v38 = vsel %vm103_vm1, %v2460_v59, 0.0  ;;  %5810 = vmatprep.subr.bf16.mxu1 %v6572_v1 }
 0xc91   :  { %2465 = vadd.xlane.f32.xlu0 %v2464_v38 }
 0xc93   :  { %5811 = vmatpush3.bf16.msra.mxu1 %v6397_v32 }
 0xc94   :  { %5828 = vmatprep.subr.bf16.mxu1 %v6572_v1 }
 0xd16   :  { %v2463_v39 = vpop.xlane.xlu1 %2462 }
 0xd17   :  { %v2467_v48 = vmul.f32 0.03125, %v2463_v39 }
 0xd19   :  { %v2469_v29 = vsub.f32 %v2459_v34, %v2467_v48  ;;  %v2568_v34 = vrot.slane %v6569_v33, %v6690_v21 }
 0xd1a   :  { %v2466_v18 = vpop.xlane.xlu0 %2465 }
 0xd1b   :  { %v2468_v60 = vmul.f32 0.03125, %v2466_v18  ;;  %v2471_v45 = vmul.f32 %v2469_v29, %v2469_v29 }
 0xd1d   :  { %v2470_v46 = vsub.f32 %v2460_v59, %v2468_v60  ;;  %v2473_v13 = vsel %vm103_vm1, %v2471_v45, 0.0 }
 0xd1e   :  { %2474 = vadd.xlane.f32.xlu0 %v2473_v13 }
 0xd1f   :  { %v2472_v49 = vmul.f32 %v2470_v46, %v2470_v46 }
 0xd21   :  { %v2476_v50 = vsel %vm103_vm1, %v2472_v49, 0.0 }
 0xd22   :  { %2477 = vadd.xlane.f32.xlu1 %v2476_v50 }
 0xda7   :  { %v2475_v53 = vpop.xlane.xlu0 %2474 }
 0xda8   :  { %v2479_v40 = vmul.f32 0.03125, %v2475_v53 }
 0xdaa   :  { %v2481_v7 = vadd.f32 1e-05, %v2479_v40  ;;  %v7257_v40 = vld [vmem:[%s7865_s2 + $0x28] sm:$0xff]  }
 0xdab   :  { %v2478_v55 = vpop.xlane.xlu1 %2477 }
 0xdac   :  { %6480 = vrsqrt.f32 %v2481_v7  ;;  %v2480_v27 = vmul.f32 0.03125, %v2478_v55  ;;  %v7263_v7 = vld [vmem:[%s7865_s2 + $0x20] sm:$0xff]   ;;  %v7271_v55 = vld [vmem:[%s7867_s6 + $0x10] sm:$0xff] }
 0xdae   :  { %v2482_v43 = vadd.f32 1e-05, %v2480_v27  ;;  %v2764_v27 = vrot.slane %v7271_v55, %v6666_v8 }
 0xdb0   :  { %6482 = vrsqrt.f32 %v2482_v43 }
 0xdb9   :  { %v6481_v54 = vpop.eup %6480 }
 0xdba   :  { %v2485_v26 = vmul.f32 %v6481_v54, %v2469_v29 }
 0xdbc   :  { %v2491_v37 = vmul.f32 %v2490_v19, %v2485_v26 }
 0xdbd   :  { %v6483_v24 = vpop.eup %6482 }
 0xdbe   :  { %v2486_v0 = vmul.f32 %v6483_v24, %v2470_v46  ;;  %v2497_v63 = vadd.f32 %v2496_v61, %v2491_v37 }
 0xdc0   :  { %v2492_v62 = vmul.f32 %v2490_v19, %v2486_v0 }
 0xdc2   :  { %v2498_v9 = vadd.f32 %v2496_v61, %v2492_v62  ;;  %v2669_v62 = vrot.slane %v6569_v33, %v6974_v17 }
 0xdc4   :  { %v2499_v12 = vpack.c.bf16 %v2498_v9, %v2497_v63 }
 0xdc6   :  { %5813 = vmatmul.mubr.msk.bf16.vlgmr.msra.gmra.mxu1 %vm103_vm1, %v2499_v12 }
 0xdc7   :  { %5832 = vmatprep.mubr.msk.bf16.mxu1 %vm6573_vm0, %v6572_v1  ;;  %5829 = vmatpush3.bf16.msra.mxu1 %v7257_v40 }
 0xdc8   :  { %5830 = vmatprep.subr.bf16.mxu1 %v6572_v1 }
 0xdcb   :  { %5831 = vmatpush3.bf16.msra.mxu1 %v7263_v7 }
 0xdcc   :  { %5836 = vmatprep.subr.bf16.mxu1 %v6572_v1 }
 0xe86   :  { %v2555_v57 = vpop.f32.mrf.mxu1 }
 0xe87   :  { %v2556_v23 = vadd.f32 %v5340_v52, %v2555_v57 }
 0xe88   :  { %v5814_v15 = vpop.f32.mrf.mxu1 }
 0xe89   :  { %v2562_v20 = vmax.f32 %v2556_v23, 0.0 }
 0xe8a   :  { %v2558_v11 = vpop.f32.mrf.mxu1 }
 0xe8b   :  { %v2559_v14 = vadd.f32 %v5340_v52, %v2558_v11 }
 0xe8c   :  { %v5815_v51 = vpop.f32.mrf.mxu1 }
 0xe8d   :  { %v2563_v16 = vmax.f32 %v2559_v14, 0.0 }
 0xe8f   :  { %v2564_v44 = vpack.c.bf16 %v2563_v16, %v2562_v20 }
 0xe91   :  { %5825 = vmatmul.mubr.msk.bf16.vlgmr.msra.gmra.mxu0 %vm2593_vm7, %v2564_v44 }
 0xe92   :  { %5844 = vmatprep.mubr.msk.bf16.mxu0 %vm6573_vm0, %v6572_v1 }
 0xf51   :  { %v2631_v28 = vpop.f32.mrf.mxu0 }
 0xf52   :  { %v2632_v35 = vadd.f32 %v2631_v28, %v2568_v34 }
 0xf53   :  { %v5826_v42 = vpop.f32.mrf.mxu0 }
 0xf54   :  { %v2638_v36 = vadd.f32 %v2632_v35, %v2497_v63  ;;  %v2738_v42 = vrot.slane %v7271_v55, %v6690_v21 }
 0xf55   :  { %v2634_v59 = vpop.f32.mrf.mxu0 }
 0xf56   :  { %v2635_v38 = vadd.f32 %v2634_v59, %v2568_v34  ;;  %v2640_v39 = vsel %vm103_vm1, %v2638_v36, 0.0 }
 0xf57   :  { %2641 = vadd.xlane.f32.xlu0 %v2640_v39  ;;  %v5827_v48 = vpop.f32.mrf.mxu0 }
 0xf58   :  { %v2639_v29 = vadd.f32 %v2635_v38, %v2498_v9 }
 0xf5a   :  { %v2643_v18 = vsel %vm103_vm1, %v2639_v29, 0.0 }
 0xf5b   :  { %2644 = vadd.xlane.f32.xlu1 %v2643_v18 }
 0xfe0   :  { %v2642_v60 = vpop.xlane.xlu0 %2641 }
 0xfe1   :  { %v2646_v45 = vmul.f32 0.03125, %v2642_v60 }
 0xfe3   :  { %v2648_v46 = vsub.f32 %v2638_v36, %v2646_v45 }
 0xfe4   :  { %v2645_v13 = vpop.xlane.xlu1 %2644 }
 0xfe5   :  { %v2647_v49 = vmul.f32 0.03125, %v2645_v13  ;;  %v2650_v50 = vmul.f32 %v2648_v46, %v2648_v46 }
 0xfe7   :  { %v2649_v3 = vsub.f32 %v2639_v29, %v2647_v49  ;;  %v2652_v32 = vsel %vm103_vm1, %v2650_v50, 0.0 }
 0xfe8   :  { %2653 = vadd.xlane.f32.xlu0 %v2652_v32 }
 0xfe9   :  { %v2651_v6 = vmul.f32 %v2649_v3, %v2649_v3 }
 0xfeb   :  { %v2655_v53 = vsel %vm103_vm1, %v2651_v6, 0.0 }
 0xfec   :  { %2656 = vadd.xlane.f32.xlu1 %v2655_v53 }
 0xffe   :  { %2766 = vrot.lane.b32.xlu0 %v2764_v27, %s6574_s0 }
0x1071   :  { %v2654_v43 = vpop.xlane.xlu0 %2653 }
0x1072   :  { %v2658_v54 = vmul.f32 0.03125, %v2654_v43 }
0x1074   :  { %v2660_v26 = vadd.f32 1e-05, %v2658_v54 }
0x1075   :  { %v2657_v19 = vpop.xlane.xlu1 %2656  ;;  %v2767_v23 = vpop.permute.xlu0 %2766 }
0x1076   :  { %6484 = vrsqrt.f32 %v2660_v26  ;;  %v2659_v24 = vmul.f32 0.03125, %v2657_v19 }
0x1078   :  { %v2661_v0 = vadd.f32 1e-05, %v2659_v24 }
0x107a   :  { %6486 = vrsqrt.f32 %v2661_v0 }
0x1083   :  { %v6485_v37 = vpop.eup %6484 }
0x1084   :  { %v2664_v61 = vmul.f32 %v6485_v37, %v2648_v46 }
0x1086   :  { %v2670_v12 = vmul.f32 %v2669_v62, %v2664_v61 }
0x1087   :  { %v6487_v63 = vpop.eup %6486 }
0x1088   :  { %v2665_v9 = vmul.f32 %v6487_v63, %v2649_v3  ;;  %v7278_v10 = vadd.f32 %v2675_v5, %v2670_v12 }
0x108a   :  { %v2671_v58 = vmul.f32 %v2669_v62, %v2665_v9 }
0x108c   :  { %v7280_v52 = vadd.f32 %v2675_v5, %v2671_v58 }
0x108e   :  { %v2678_v57 = vpack.c.bf16 %v7280_v52, %v7278_v10 }
0x1090   :  { %5833 = vmatmul.mubr.msk.bf16.vlgmr.msra.gmra.mxu1 %vm103_vm1, %v2678_v57 }
0x1091   :  { %5838 = vmatprep.mubr.msk.bf16.mxu1 %vm6573_vm0, %v6572_v1 }
0x1150   :  { %v7287_v15 = vpop.f32.mrf.mxu1 }
0x1151   :  { %v2769_v51 = vadd.f32 %v2767_v23, %v7287_v15  ;;  %v2739_v60 = vadd.f32 %v2738_v42, %v7287_v15 }
0x1152   :  { %v5834_v11 = vpop.f32.mrf.mxu1 }
0x1153   :  { %v2829_v34 = vpack.c.bf16 %v2769_v51, %v2769_v51  ;;  %v2821_v54 = vpack.c.bf16 %v2739_v60, %v2739_v60 }
0x1154   :  { %v7289_v14 = vpop.f32.mrf.mxu1 }
0x1155   :  { %v2770_v20 = vadd.f32 %v2767_v23, %v7289_v14  ;;  %v2740_v38 = vadd.f32 %v2738_v42, %v7289_v14 }
0x1156   :  { %v5835_v16 = vpop.f32.mrf.mxu1 }
0x1157   :  { %v6252_v44 = vpack.i.bf16 %v2770_v20, %v2769_v51  ;;  %v2830_v33 = vpack.c.bf16 %v2770_v20, %v2770_v20  ;;  %v6257_v50 = vpack.i.bf16 %v2740_v38, %v2739_v60  ;;  %v2822_v27 = vpack.c.bf16 %v2740_v38, %v2740_v38 }
0x1159   :  { %6253 = vrot.lane.b32.xlu0 %v6252_v44, %s6577_s17  ;;  %6243 = vrot.lane.b32.xlu1 %v6252_v44, %s6576_s16 }
0x115d   :  { %6248 = vrot.lane.b32.xlu1 %v6252_v44, %s6575_s15  ;;  %2887 = vrot.lane.b32.xlu0 %v2830_v33, %s6578_s18 }
0x1161   :  { %2838 = vrot.lane.b32.xlu1 %v2829_v34, %s6578_s18 }
0x11cb   :  { %v6254_v28 = vpop.permute.xlu0 %6253  ;;  %v6244_v35 = vpop.permute.xlu1 %6243 }
0x11cc   :  { %v6246_v36 = vunpack.i.h.bf16 %v6244_v35  ;;  %v6245_v59 = vunpack.i.l.bf16 %v6244_v35  ;;  %v6256_v6 = vunpack.i.h.bf16 %v6254_v28  ;;  %v6255_v43 = vunpack.i.l.bf16 %v6254_v28 }
0x11ce   :  { %v2832_v39 = vpack.c.bf16 %v6246_v36, %v6246_v36  ;;  %v2831_v48 = vpack.c.bf16 %v6245_v59, %v6245_v59  ;;  %v2836_v26 = vpack.c.bf16 %v6256_v6, %v6256_v6  ;;  %v2835_v19 = vpack.c.bf16 %v6255_v43, %v6255_v43 }
0x11cf   :  { %v6249_v29 = vpop.permute.xlu1 %6248  ;;  %v2888_v18 = vpop.permute.xlu0 %2887 }
0x11d0   :  { %v6250_v45 = vunpack.i.l.bf16 %v6249_v29  ;;  %v2893_v46 = vsel %vm253_vm2, %v2888_v18, 0  ;;  %2936 = vrot.lane.b32.xlu1 %v2831_v48, %s6578_s18  ;;  %2985 = vrot.lane.b32.xlu0 %v2832_v39, %s6578_s18  ;;  %v6251_v13 = vunpack.i.h.bf16 %v6249_v29 }
0x11d1   :  { %5843 = vmatpush3.bf16.xpose.msra.mxu0 %v2893_v46 }
0x11d2   :  { %v2833_v49 = vpack.c.bf16 %v6250_v45, %v6250_v45  ;;  %5854 = vmatprep.subr.bf16.mxu0 %v6572_v1  ;;  %v2834_v53 = vpack.c.bf16 %v6251_v13, %v6251_v13 }
0x11d3   :  { %v2839_v3 = vpop.permute.xlu1 %2838 }
0x11d4   :  { %v2844_v32 = vsel %vm253_vm2, %v2839_v3, 0  ;;  %3034 = vrot.lane.b32.xlu0 %v2833_v49, %s6578_s18  ;;  %6258 = vrot.lane.b32.xlu1 %v6257_v50, %s6576_s16 }
0x11d5   :  { %5837 = vmatpush3.bf16.xpose.msra.mxu1 %v2844_v32 }
0x11d6   :  { %5848 = vmatprep.subr.bf16.mxu1 %v6572_v1 }
0x11d8   :  { %6263 = vrot.lane.b32.xlu0 %v6257_v50, %s6575_s15  ;;  %3083 = vrot.lane.b32.xlu1 %v2834_v53, %s6578_s18 }
0x11d9   :  { %5845 = vmatmul.mubr.msk.bf16.vlgmr.msra.gmra.mxu0 %vm253_vm2, %v2822_v27  ;;  %v2794_v27 = vrot.slane %v7271_v55, %v6713_v47 }
0x11da   :  { %5856 = vmatprep.mubr.msk.bf16.mxu0 %vm6573_vm0, %v6572_v1 }
0x11dc   :  { %5839 = vmatmul.mubr.msk.bf16.vlgmr.msra.gmra.mxu1 %vm253_vm2, %v2821_v54  ;;  %3181 = vrot.lane.b32.xlu0 %v2836_v26, %s6578_s18 }
0x11dd   :  { %3132 = vrot.lane.b32.xlu1 %v2835_v19, %s6578_s18  ;;  %5850 = vmatprep.mubr.msk.bf16.mxu1 %vm6573_vm0, %v6572_v1 }
0x11e1   :  { %6268 = vrot.lane.b32.xlu1 %v6257_v50, %s6577_s17 }
0x1242   :  { %v2937_v24 = vpop.permute.xlu1 %2936  ;;  %v2986_v0 = vpop.permute.xlu0 %2985 }
0x1243   :  { %v2942_v37 = vsel %vm253_vm2, %v2937_v24, 0  ;;  %v2991_v61 = vsel %vm253_vm2, %v2986_v0, 0 }
0x1244   :  { %5849 = vmatpush3.bf16.xpose.msra.mxu1 %v2942_v37  ;;  %5855 = vmatpush3.bf16.xpose.msra.mxu0 %v2991_v61 }
0x1245   :  { %5860 = vmatprep.subr.bf16.mxu1 %v6572_v1  ;;  %5866 = vmatprep.subr.bf16.mxu0 %v6572_v1 }
0x1246   :  { %v3035_v62 = vpop.permute.xlu0 %3034  ;;  %v6259_v63 = vpop.permute.xlu1 %6258 }
0x1247   :  { %v6261_v9 = vunpack.i.h.bf16 %v6259_v63  ;;  %v6260_v12 = vunpack.i.l.bf16 %v6259_v63  ;;  %v3040_v11 = vsel %vm253_vm2, %v3035_v62, 0 }
0x1249   :  { %v2824_v5 = vpack.c.bf16 %v6261_v9, %v6261_v9  ;;  %v2823_v58 = vpack.c.bf16 %v6260_v12, %v6260_v12 }
0x124a   :  { %v6264_v57 = vpop.permute.xlu0 %6263  ;;  %v3084_v23 = vpop.permute.xlu1 %3083 }
0x124b   :  { %v3089_v51 = vsel %vm253_vm2, %v3084_v23, 0  ;;  %5851 = vmatmul.mubr.msk.bf16.vlgmr.msra.gmra.mxu1 %vm253_vm2, %v2823_v58  ;;  %5857 = vmatmul.mubr.msk.bf16.vlgmr.msra.gmra.mxu0 %vm253_vm2, %v2824_v5  ;;  %v6266_v20 = vunpack.i.h.bf16 %v6264_v57  ;;  %v6265_v16 = vunpack.i.l.bf16 %v6264_v57 }
0x124c   :  { %5861 = vmatpush3.bf16.xpose.msra.mxu1 %v3040_v11  ;;  %5867 = vmatpush3.bf16.xpose.msra.mxu0 %v3089_v51 }
0x124d   :  { %5862 = vmatprep.mubr.msk.bf16.mxu1 %vm6573_vm0, %v6572_v1  ;;  %5868 = vmatprep.mubr.msk.bf16.mxu0 %vm6573_vm0, %v6572_v1  ;;  %v2826_v34 = vpack.c.bf16 %v6266_v20, %v6266_v20  ;;  %v2825_v28 = vpack.c.bf16 %v6265_v16, %v6265_v16 }
0x124e   :  { %5872 = vmatprep.subr.bf16.mxu1 %v6572_v1  ;;  %5878 = vmatprep.subr.bf16.mxu0 %v6572_v1  ;;  %v3182_v33 = vpop.permute.xlu0 %3181 }
0x124f   :  { %v3133_v44 = vpop.permute.xlu1 %3132  ;;  %v3187_v35 = vsel %vm253_vm2, %v3182_v33, 0 }
0x1250   :  { %v3138_v42 = vsel %vm253_vm2, %v3133_v44, 0 }
0x1253   :  { %v6269_v36 = vpop.permute.xlu1 %6268  ;;  %5863 = vmatmul.mubr.msk.bf16.vlgmr.msra.gmra.mxu1 %vm253_vm2, %v2825_v28  ;;  %5869 = vmatmul.mubr.msk.bf16.vlgmr.msra.gmra.mxu0 %vm253_vm2, %v2826_v34 }
0x1254   :  { %5873 = vmatpush3.bf16.xpose.msra.mxu1 %v3138_v42  ;;  %5879 = vmatpush3.bf16.xpose.msra.mxu0 %v3187_v35  ;;  %v6271_v59 = vunpack.i.h.bf16 %v6269_v36  ;;  %v6270_v38 = vunpack.i.l.bf16 %v6269_v36 }
0x1255   :  { %5874 = vmatprep.mubr.msk.bf16.mxu1 %vm6573_vm0, %v6572_v1  ;;  %5880 = vmatprep.mubr.msk.bf16.mxu0 %vm6573_vm0, %v6572_v1 }
0x1256   :  { %5884 = vmatprep.subr.bf16.mxu1 %v6572_v1  ;;  %5890 = vmatprep.subr.bf16.mxu0 %v6572_v1  ;;  %v2828_v39 = vpack.c.bf16 %v6271_v59, %v6271_v59  ;;  %v2827_v48 = vpack.c.bf16 %v6270_v38, %v6270_v38 }
0x125b   :  { %5875 = vmatmul.mubr.msk.bf16.vlgmr.msra.gmra.mxu1 %vm253_vm2, %v2827_v48  ;;  %5881 = vmatmul.mubr.msk.bf16.vlgmr.msra.gmra.mxu0 %vm253_vm2, %v2828_v39 }
0x125c   :  { %5886 = vmatprep.mubr.msk.bf16.mxu1 %vm6573_vm0, %v6572_v1  ;;  %5892 = vmatprep.mubr.msk.bf16.mxu0 %vm6573_vm0, %v6572_v1 }
0x1299   :  { %v2929_v29 = vpop.f32.mrf.mxu0 }
0x129a   :  { %v7352_v18 = vadd.f32 %v2929_v29, %v6760_v30 }
0x129b   :  { %v5846_v60 = vpop.f32.mrf.mxu0 }
0x129c   :  { %v3232_v45 = vsel %vm253_vm2, %v7352_v18, -inf  ;;  %v2880_v46 = vpop.f32.mrf.mxu1 }
0x129d   :  { %3233 = vmax.xlane.f32.xlu1 %v3232_v45  ;;  %v7357_v13 = vadd.f32 %v2880_v46, %v6760_v30  ;;  %v2932_v49 = vpop.f32.mrf.mxu0 }
0x129e   :  { %v5840_v50 = vpop.f32.mrf.mxu1 }
0x129f   :  { %v5847_v3 = vpop.f32.mrf.mxu0  ;;  %v3229_v32 = vsel %vm253_vm2, %v7357_v13, -inf }
0x12a0   :  { %3230 = vmax.xlane.f32.xlu0 %v3229_v32  ;;  %v2883_v6 = vpop.f32.mrf.mxu1 }
0x12a2   :  { %v5841_v53 = vpop.f32.mrf.mxu1 }
0x12b6   :  { %2796 = vrot.lane.b32.xlu0 %v2794_v27, %s6579_s19 }
0x130b   :  { %v2978_v43 = vpop.f32.mrf.mxu1  ;;  %v3027_v54 = vpop.f32.mrf.mxu0 }
0x130c   :  { %v7365_v26 = vadd.f32 %v2978_v43, %v6760_v30  ;;  %v7368_v0 = vadd.f32 %v3027_v54, %v6760_v30 }
0x130d   :  { %v5852_v19 = vpop.f32.mrf.mxu1  ;;  %v5858_v24 = vpop.f32.mrf.mxu0 }
0x130e   :  { %v3235_v37 = vsel %vm253_vm2, %v7365_v26, -inf  ;;  %v3238_v12 = vsel %vm253_vm2, %v7368_v0, -inf }
0x130f   :  { %v3030_v61 = vpop.f32.mrf.mxu0  ;;  %3236 = vmax.xlane.f32.xlu1 %v3235_v37  ;;  %v2981_v62 = vpop.f32.mrf.mxu1 }
0x1311   :  { %v5853_v63 = vpop.f32.mrf.mxu1  ;;  %v5859_v9 = vpop.f32.mrf.mxu0 }
0x1313   :  { %v3125_v5 = vpop.f32.mrf.mxu0  ;;  %3239 = vmax.xlane.f32.xlu1 %v3238_v12  ;;  %v3076_v58 = vpop.f32.mrf.mxu1 }
0x1314   :  { %v7375_v57 = vadd.f32 %v3076_v58, %v6760_v30  ;;  %v7378_v51 = vadd.f32 %v3125_v5, %v6760_v30 }
0x1315   :  { %v5864_v23 = vpop.f32.mrf.mxu1  ;;  %v5870_v11 = vpop.f32.mrf.mxu0 }
0x1316   :  { %v3241_v20 = vsel %vm253_vm2, %v7375_v57, -inf  ;;  %v3244_v28 = vsel %vm253_vm2, %v7378_v51, -inf }
0x1317   :  { %v3128_v16 = vpop.f32.mrf.mxu0  ;;  %3242 = vmax.xlane.f32.xlu1 %v3241_v20  ;;  %v3079_v44 = vpop.f32.mrf.mxu1 }
0x1319   :  { %v5865_v33 = vpop.f32.mrf.mxu1  ;;  %v5871_v34 = vpop.f32.mrf.mxu0 }
0x131b   :  { %v3223_v35 = vpop.f32.mrf.mxu0  ;;  %3245 = vmax.xlane.f32.xlu1 %v3244_v28  ;;  %v3174_v42 = vpop.f32.mrf.mxu1 }
0x131c   :  { %v7385_v36 = vadd.f32 %v3223_v35, %v6760_v30  ;;  %v7388_v59 = vadd.f32 %v3174_v42, %v6760_v30 }
0x131d   :  { %v5876_v38 = vpop.f32.mrf.mxu1  ;;  %v5882_v39 = vpop.f32.mrf.mxu0 }
0x131e   :  { %v3250_v48 = vsel %vm253_vm2, %v7385_v36, -inf  ;;  %v3247_v29 = vsel %vm253_vm2, %v7388_v59, -inf }
0x131f   :  { %v3226_v60 = vpop.f32.mrf.mxu0  ;;  %3251 = vmax.xlane.f32.xlu0 %v3250_v48  ;;  %3248 = vmax.xlane.f32.xlu1 %v3247_v29  ;;  %v3177_v45 = vpop.f32.mrf.mxu1 }
0x1321   :  { %v5877_v46 = vpop.f32.mrf.mxu1  ;;  %v5883_v49 = vpop.f32.mrf.mxu0 }
0x1326   :  { %v3234_v19 = vpop.xlane.xlu1 %3233 }
0x1327   :  { %v3254_v29 = vsub.f32 %v7352_v18, %v3234_v19 }
0x1329   :  { %v3231_v50 = vpop.xlane.xlu0 %3230  ;;  %v3263_v60 = vmul.f32 1.442695, %v3254_v29 }
0x132a   :  { %v3253_v43 = vsub.f32 %v7357_v13, %v3231_v50 }
0x132c   :  { %v3261_v54 = vmul.f32 1.442695, %v3253_v43 }
0x132d   :  { %v2797_v3 = vpop.permute.xlu0 %2796 }
0x132e   :  { %v2799_v32 = vadd.f32 %v2797_v3, %v7287_v15  ;;  %v2800_v30 = vadd.f32 %v2797_v3, %v7289_v14  ;;  %6488 = vpow2.f32 %v3261_v54 }
0x132f   :  { %6490 = vpow2.f32 %v3263_v60 }
0x1330   :  { %v6272_v6 = vpack.i.bf16 %v2800_v30, %v2799_v32  ;;  %v3325_v53 = vpack.c.bf16 %v2799_v32, %v2799_v32  ;;  %v3326_v27 = vpack.c.bf16 %v2800_v30, %v2800_v30 }
0x1332   :  { %6273 = vrot.lane.b32.xlu1 %v6272_v6, %s6576_s16 }
0x1335   :  { %3334 = vrot.lane.b32.xlu0 %v3325_v53, %s6579_s19 }
0x1336   :  { %6278 = vrot.lane.b32.xlu1 %v6272_v6, %s6575_s15 }
0x133a   :  { %6283 = vrot.lane.b32.xlu1 %v6272_v6, %s6577_s17 }
0x133b   :  { %v7402_v15 = vpop.eup %6488 }
0x133c   :  { %v3277_v14 = vsel %vm253_vm2, %v7402_v15, 0.0  ;;  %v6491_v53 = vpop.eup %6490 }
0x133d   :  { %v3280_v43 = vsel %vm253_vm2, %v6491_v53, 0.0 }
0x133e   :  { %3383 = vrot.lane.b32.xlu1 %v3326_v27, %s6579_s19 }
0x1362   :  { %3278 = vadd.xlane.f32.xlu1 %v3277_v14 }
0x1398   :  { %v3237_v24 = vpop.xlane.xlu1 %3236 }
0x1399   :  { %v3255_v45 = vsub.f32 %v7365_v26, %v3237_v24 }
0x139b   :  { %v3265_v46 = vmul.f32 1.442695, %v3255_v45 }
0x139c   :  { %v3240_v37 = vpop.xlane.xlu1 %3239 }
0x139d   :  { %v3256_v49 = vsub.f32 %v7368_v0, %v3240_v37  ;;  %6492 = vpow2.f32 %v3265_v46 }
0x139f   :  { %v3267_v50 = vmul.f32 1.442695, %v3256_v49 }
0x13a0   :  { %v3243_v61 = vpop.xlane.xlu1 %3242 }
0x13a1   :  { %v3257_v3 = vsub.f32 %v7375_v57, %v3243_v61  ;;  %6494 = vpow2.f32 %v3267_v50 }
0x13a3   :  { %v3269_v32 = vmul.f32 1.442695, %v3257_v3 }
0x13a4   :  { %v3246_v62 = vpop.xlane.xlu1 %3245 }
0x13a5   :  { %v3258_v30 = vsub.f32 %v7378_v51, %v3246_v62  ;;  %6496 = vpow2.f32 %v3269_v32 }
0x13a7   :  { %v3271_v6 = vmul.f32 1.442695, %v3258_v30 }
0x13a8   :  { %v3252_v63 = vpop.xlane.xlu0 %3251  ;;  %v3249_v9 = vpop.xlane.xlu1 %3248 }
0x13a9   :  { %v3259_v18 = vsub.f32 %v7388_v59, %v3249_v9  ;;  %6498 = vpow2.f32 %v3271_v6  ;;  %v3260_v26 = vsub.f32 %v7385_v36, %v3252_v63 }
0x13aa   :  { %v6493_v0 = vpop.eup %6492 }
0x13ab   :  { %v3273_v27 = vmul.f32 1.442695, %v3259_v18  ;;  %v3275_v54 = vmul.f32 1.442695, %v3260_v26  ;;  %v3283_v57 = vsel %vm253_vm2, %v6493_v0, 0.0 }
0x13ac   :  { %v3335_v12 = vpop.permute.xlu0 %3334  ;;  %v6274_v5 = vpop.permute.xlu1 %6273 }
0x13ad   :  { %v3340_v58 = vsel %vm753_vm4, %v3335_v12, 0  ;;  %v6276_v13 = vunpack.i.h.bf16 %v6274_v5  ;;  %v6275_v23 = vunpack.i.l.bf16 %v6274_v5  ;;  %6500 = vpow2.f32 %v3273_v27 }
0x13ae   :  { %5885 = vmatpush3.bf16.msra.mxu1 %v3340_v58  ;;  %v6495_v14 = vpop.eup %6494  ;;  %6502 = vpow2.f32 %v3275_v54 }
0x13af   :  { %v3328_v11 = vpack.c.bf16 %v6276_v13, %v6276_v13  ;;  %v3327_v20 = vpack.c.bf16 %v6275_v23, %v6275_v23  ;;  %5896 = vmatprep.subr.bf16.mxu1 %v6572_v1  ;;  %v3286_v51 = vsel %vm253_vm2, %v6495_v14, 0.0 }
0x13b0   :  { %v6279_v16 = vpop.permute.xlu1 %6278 }
0x13b1   :  { %v6281_v44 = vunpack.i.h.bf16 %v6279_v16  ;;  %v6280_v33 = vunpack.i.l.bf16 %v6279_v16  ;;  %3481 = vrot.lane.b32.xlu1 %v3328_v11, %s6579_s19  ;;  %3432 = vrot.lane.b32.xlu0 %v3327_v20, %s6579_s19 }
0x13b2   :  { %v7425_v19 = vpop.eup %6496 }
0x13b3   :  { %v3330_v34 = vpack.c.bf16 %v6281_v44, %v6281_v44  ;;  %v3329_v28 = vpack.c.bf16 %v6280_v33, %v6280_v33  ;;  %v3289_v36 = vsel %vm253_vm2, %v7425_v19, 0.0 }
0x13b4   :  { %v6284_v35 = vpop.permute.xlu1 %6283 }
0x13b5   :  { %v6286_v42 = vunpack.i.h.bf16 %v6284_v35  ;;  %3579 = vrot.lane.b32.xlu1 %v3330_v34, %s6579_s19  ;;  %3530 = vrot.lane.b32.xlu0 %v3329_v28, %s6579_s19  ;;  %v6285_v58 = vunpack.i.l.bf16 %v6284_v35 }
0x13b6   :  { %v7429_v59 = vpop.eup %6498 }
0x13b7   :  { %v3332_v38 = vpack.c.bf16 %v6286_v42, %v6286_v42  ;;  %v3292_v24 = vsel %vm253_vm2, %v7429_v59, 0.0  ;;  %v3331_v23 = vpack.c.bf16 %v6285_v58, %v6285_v58 }
0x13b8   :  { %v3384_v39 = vpop.permute.xlu1 %3383 }
0x13b9   :  { %v3389_v48 = vsel %vm753_vm4, %v3384_v39, 0  ;;  %3677 = vrot.lane.b32.xlu1 %v3332_v38, %s6579_s19 }
0x13ba   :  { %5891 = vmatpush3.bf16.msra.mxu0 %v3389_v48  ;;  %v7433_v37 = vpop.eup %6500 }
0x13bb   :  { %5902 = vmatprep.subr.bf16.mxu0 %v6572_v1  ;;  %v3295_v61 = vsel %vm253_vm2, %v7433_v37, 0.0  ;;  %v7437_v62 = vpop.eup %6502 }
0x13bc   :  { %v3298_v9 = vsel %vm253_vm2, %v7437_v62, 0.0 }
0x13d4   :  { %3281 = vadd.xlane.f32.xlu0 %v3280_v43 }
0x13d8   :  { %3284 = vadd.xlane.f32.xlu0 %v3283_v57 }
0x13dc   :  { %3287 = vadd.xlane.f32.xlu0 %v3286_v51 }
0x13e0   :  { %3290 = vadd.xlane.f32.xlu0 %v3289_v36 }
0x13e4   :  { %3293 = vadd.xlane.f32.xlu0 %v3292_v24 }
0x13e8   :  { %3296 = vadd.xlane.f32.xlu0 %v3295_v61 }
0x13eb   :  { %v3279_v63 = vpop.xlane.xlu1 %3278 }
0x13ec   :  { %6504 = vrcp.f32 %v3279_v63  ;;  %3299 = vadd.xlane.f32.xlu0 %v3298_v9 }
0x13f9   :  { %v6505_v12 = vpop.eup %6504 }
0x13fa   :  { %v3309_v5 = vmul.f32 %v6505_v12, %v7402_v15 }
0x13fc   :  { %v3317_v13 = vpack.c.bf16 %v3309_v5, %v3309_v5 }
0x13fe   :  { %5887 = vmatmul.mubr.msk.bf16.vlgmr.msra.gmra.mxu1 %vm253_vm2, %v3317_v13 }
0x13ff   :  { %5898 = vmatprep.mubr.msk.bf16.mxu1 %vm6573_vm0, %v6572_v1 }
0x1402   :  { %3628 = vrot.lane.b32.xlu0 %v3331_v23, %s6579_s19 }
0x1406   :  { %3762 = vrot.lane.b32.xlu0 %v7257_v40, %s6574_s0 }
0x1423   :  { %v3433_v11 = vpop.permute.xlu0 %3432  ;;  %v3482_v42 = vpop.permute.xlu1 %3481 }
0x1424   :  { %v3438_v20 = vsel %vm753_vm4, %v3433_v11, 0  ;;  %v3487_v48 = vsel %vm753_vm4, %v3482_v42, 0 }
0x1425   :  { %5897 = vmatpush3.bf16.msra.mxu1 %v3438_v20 }
0x1426   :  { %5908 = vmatprep.subr.bf16.mxu1 %v6572_v1 }
0x1427   :  { %v3531_v15 = vpop.permute.xlu0 %3530  ;;  %v3580_v3 = vpop.permute.xlu1 %3579 }
0x1428   :  { %v3536_v49 = vsel %vm753_vm4, %v3531_v15, 0  ;;  %v3585_v18 = vsel %vm753_vm4, %v3580_v3, 0 }
0x142b   :  { %v3678_v57 = vpop.permute.xlu1 %3677 }
0x145d   :  { %v3282_v16 = vpop.xlane.xlu0 %3281 }
0x145e   :  { %6506 = vrcp.f32 %v3282_v16 }
0x1461   :  { %v3285_v44 = vpop.xlane.xlu0 %3284 }
0x1462   :  { %6508 = vrcp.f32 %v3285_v44 }
0x1465   :  { %v3288_v33 = vpop.xlane.xlu0 %3287 }
0x1466   :  { %6510 = vrcp.f32 %v3288_v33 }
0x1469   :  { %v3291_v34 = vpop.xlane.xlu0 %3290 }
0x146a   :  { %6512 = vrcp.f32 %v3291_v34 }
0x146b   :  { %v6507_v28 = vpop.eup %6506 }
0x146c   :  { %v3310_v35 = vmul.f32 %v6507_v28, %v6491_v53 }
0x146d   :  { %v3294_v38 = vpop.xlane.xlu0 %3293 }
0x146e   :  { %6514 = vrcp.f32 %v3294_v38  ;;  %v3318_v40 = vpack.c.bf16 %v3310_v35, %v3310_v35 }
0x146f   :  { %v6509_v39 = vpop.eup %6508 }
0x1470   :  { %5893 = vmatmul.mubr.msk.bf16.vlgmr.msra.gmra.mxu0 %vm253_vm2, %v3318_v40  ;;  %v3311_v29 = vmul.f32 %v6509_v39, %v6493_v0 }
0x1471   :  { %5903 = vmatpush3.bf16.msra.mxu0 %v3487_v48  ;;  %v3297_v60 = vpop.xlane.xlu0 %3296  ;;  %5904 = vmatprep.mubr.msk.bf16.mxu0 %vm6573_vm0, %v6572_v1 }
0x1472   :  { %6516 = vrcp.f32 %v3297_v60  ;;  %v3319_v45 = vpack.c.bf16 %v3311_v29, %v3311_v29  ;;  %5914 = vmatprep.subr.bf16.mxu0 %v6572_v1 }
0x1473   :  { %v6511_v46 = vpop.eup %6510 }
0x1474   :  { %5899 = vmatmul.mubr.msk.bf16.vlgmr.msra.gmra.mxu1 %vm253_vm2, %v3319_v45  ;;  %v3312_v50 = vmul.f32 %v6511_v46, %v6495_v14 }
0x1475   :  { %5909 = vmatpush3.bf16.msra.mxu1 %v3536_v49  ;;  %v3300_v32 = vpop.xlane.xlu0 %3299  ;;  %5910 = vmatprep.mubr.msk.bf16.mxu1 %vm6573_vm0, %v6572_v1 }
0x1476   :  { %6518 = vrcp.f32 %v3300_v32  ;;  %v3320_v30 = vpack.c.bf16 %v3312_v50, %v3312_v50  ;;  %5920 = vmatprep.subr.bf16.mxu1 %v6572_v1 }
0x1477   :  { %v6513_v6 = vpop.eup %6512 }
0x1478   :  { %5905 = vmatmul.mubr.msk.bf16.vlgmr.msra.gmra.mxu0 %vm253_vm2, %v3320_v30  ;;  %v3313_v53 = vmul.f32 %v6513_v6, %v7425_v19  ;;  %v3683_v19 = vsel %vm753_vm4, %v3678_v57, 0 }
0x1479   :  { %5915 = vmatpush3.bf16.msra.mxu0 %v3585_v18  ;;  %v3629_v26 = vpop.permute.xlu0 %3628  ;;  %5916 = vmatprep.mubr.msk.bf16.mxu0 %vm6573_vm0, %v6572_v1 }
0x147a   :  { %v3634_v27 = vsel %vm753_vm4, %v3629_v26, 0  ;;  %v3321_v43 = vpack.c.bf16 %v3313_v53, %v3313_v53  ;;  %5926 = vmatprep.subr.bf16.mxu0 %v6572_v1 }
0x147b   :  { %v6515_v0 = vpop.eup %6514 }
0x147c   :  { %5911 = vmatmul.mubr.msk.bf16.vlgmr.msra.gmra.mxu1 %vm253_vm2, %v3321_v43  ;;  %v3314_v54 = vmul.f32 %v6515_v0, %v7429_v59 }
0x147d   :  { %5921 = vmatpush3.bf16.msra.mxu1 %v3634_v27  ;;  %5922 = vmatprep.mubr.msk.bf16.mxu1 %vm6573_vm0, %v6572_v1  ;;  %v3763_v13 = vpop.permute.xlu0 %3762 }
0x147e   :  { %v3322_v14 = vpack.c.bf16 %v3314_v54, %v3314_v54  ;;  %5932 = vmatprep.subr.bf16.mxu1 %v6572_v1 }
0x147f   :  { %v6517_v51 = vpop.eup %6516 }
0x1480   :  { %v3315_v36 = vmul.f32 %v6517_v51, %v7433_v37  ;;  %5917 = vmatmul.mubr.msk.bf16.vlgmr.msra.gmra.mxu0 %vm253_vm2, %v3322_v14 }
0x1481   :  { %5927 = vmatpush3.bf16.msra.mxu0 %v3683_v19  ;;  %5928 = vmatprep.mubr.msk.bf16.mxu0 %vm6573_vm0, %v6572_v1 }
0x1482   :  { %v3323_v59 = vpack.c.bf16 %v3315_v36, %v3315_v36 }
0x1483   :  { %v6519_v24 = vpop.eup %6518 }
0x1484   :  { %5923 = vmatmul.mubr.msk.bf16.vlgmr.msra.gmra.mxu1 %vm253_vm2, %v3323_v59  ;;  %v3316_v61 = vmul.f32 %v6519_v24, %v7437_v62 }
0x1485   :  { %5936 = vmatprep.mubr.msk.bf16.mxu1 %vm6573_vm0, %v6572_v1  ;;  %5933 = vmatpush3.bf16.msra.mxu1 %v3763_v13 }
0x1486   :  { %v3324_v63 = vpack.c.bf16 %v3316_v61, %v3316_v61  ;;  %5934 = vmatprep.subr.bf16.mxu1 %v6572_v1 }
0x1488   :  { %5929 = vmatmul.mubr.msk.bf16.vlgmr.msra.gmra.mxu0 %vm253_vm2, %v3324_v63 }
0x1489   :  { %5944 = vmatprep.mubr.msk.bf16.mxu0 %vm103_vm1, %v6936_v2 }
0x14be   :  { %v3376_v37 = vpop.f32.mrf.mxu1 }
0x14c0   :  { %v5888_v9 = vpop.f32.mrf.mxu1 }
0x14c2   :  { %v3379_v12 = vpop.f32.mrf.mxu1 }
0x14c4   :  { %v5889_v5 = vpop.f32.mrf.mxu1 }
0x1530   :  { %v3425_v58 = vpop.f32.mrf.mxu0 }
0x1532   :  { %v5894_v23 = vpop.f32.mrf.mxu0 }
0x1534   :  { %v3428_v62 = vpop.f32.mrf.mxu0  ;;  %v3474_v11 = vpop.f32.mrf.mxu1 }
0x1536   :  { %v5895_v20 = vpop.f32.mrf.mxu0  ;;  %v5900_v15 = vpop.f32.mrf.mxu1 }
0x1538   :  { %v3477_v16 = vpop.f32.mrf.mxu1  ;;  %v3523_v44 = vpop.f32.mrf.mxu0 }
0x1539   :  { %v6287_v33 = vpack.i.bf16 %v3523_v44, %v3474_v11 }
0x153a   :  { %v5901_v34 = vpop.f32.mrf.mxu1  ;;  %v5906_v28 = vpop.f32.mrf.mxu0 }
0x153b   :  { %6288 = vrot.lane.b32.xlu1 %v6287_v33, %s6581_s20  ;;  %v7509_v34 = vld [vmem:[%s7865_s2 + $0x38] sm:$0xff]  }
0x153c   :  { %v3526_v2 = vpop.f32.mrf.mxu0  ;;  %v3572_v35 = vpop.f32.mrf.mxu1 }
0x153e   :  { %v5907_v42 = vpop.f32.mrf.mxu0  ;;  %v5912_v38 = vpop.f32.mrf.mxu1 }
0x1540   :  { %v3575_v40 = vpop.f32.mrf.mxu1  ;;  %v3621_v39 = vpop.f32.mrf.mxu0 }
0x1541   :  { %v6292_v48 = vpack.i.bf16 %v3621_v39, %v3572_v35 }
0x1542   :  { %v5913_v29 = vpop.f32.mrf.mxu1  ;;  %v5918_v60 = vpop.f32.mrf.mxu0 }
0x1543   :  { %6293 = vrot.lane.b32.xlu0 %v6292_v48, %s6582_s21 }
0x1544   :  { %v3624_v45 = vpop.f32.mrf.mxu0  ;;  %v3670_v46 = vpop.f32.mrf.mxu1 }
0x1546   :  { %v5919_v49 = vpop.f32.mrf.mxu0  ;;  %v5924_v50 = vpop.f32.mrf.mxu1 }
0x1547   :  { %3760 = vrot.lane.b32.xlu0 %v7263_v7, %s6574_s0 }
0x1548   :  { %v3673_v3 = vpop.f32.mrf.mxu1  ;;  %v3719_v32 = vpop.f32.mrf.mxu0 }
0x1549   :  { %v6297_v30 = vpack.i.bf16 %v3719_v32, %v3670_v46 }
0x154a   :  { %v5925_v6 = vpop.f32.mrf.mxu1  ;;  %v5930_v18 = vpop.f32.mrf.mxu0 }
0x154b   :  { %6298 = vrot.lane.b32.xlu1 %v6297_v30, %s6583_s22  ;;  %v7534_v6 = vld [vmem:[%s7867_s6 + $0x18] sm:$0x7f] }
0x154c   :  { %v3722_v53 = vpop.f32.mrf.mxu0 }
0x154d   :  { %v3841_v53 = vrot.slane %v7534_v6, %v6666_v8 }
0x154e   :  { %v5931_v26 = vpop.f32.mrf.mxu0 }
0x15ad   :  { %v6289_v43 = vpop.permute.xlu1 %6288 }
0x15ae   :  { %v6291_v54 = vunpack.i.h.bf16 %v6289_v43  ;;  %v6290_v57 = vunpack.i.l.bf16 %v6289_v43  ;;  %v3847_v43 = vrot.slane %v7534_v6, %v6713_v47 }
0x15b0   :  { %v3750_v19 = vsel %vm253_vm2, %v3425_v58, %v6291_v54  ;;  %v3749_v36 = vsel %vm253_vm2, %v3376_v37, %v6290_v57  ;;  %v3759_v58 = vrot.slane %v7271_v55, %v6904_v22 }
0x15b5   :  { %v6294_v27 = vpop.permute.xlu0 %6293 }
0x15b6   :  { %v6296_v14 = vunpack.i.h.bf16 %v6294_v27  ;;  %v6295_v51 = vunpack.i.l.bf16 %v6294_v27 }
0x15b8   :  { %v3752_v61 = vsel %vm1166_vm5, %v3750_v19, %v6296_v14  ;;  %v3751_v63 = vsel %vm1166_vm5, %v3749_v36, %v6295_v51 }
0x15b9   :  { %v3761_v0 = vpop.permute.xlu0 %3760 }
0x15ba   :  { %5935 = vmatpush3.bf16.msra.mxu1 %v3761_v0 }
0x15bb   :  { %5948 = vmatprep.subr.bf16.mxu1 %v6572_v1 }
0x15bd   :  { %v6299_v7 = vpop.permute.xlu1 %6298 }
0x15be   :  { %v6301_v59 = vunpack.i.h.bf16 %v6299_v7  ;;  %v6300_v24 = vunpack.i.l.bf16 %v6299_v7  ;;  %v3989_v7 = vrot.slane %v7271_v55, %v6974_v17 }
0x15c0   :  { %v3754_v9 = vsel %vm1169_vm6, %v3752_v61, %v6301_v59  ;;  %v3753_v12 = vsel %vm1169_vm6, %v3751_v63, %v6300_v24 }
0x15c1   :  { %v3755_v5 = vpack.c.bf16 %v3754_v9, %v3753_v12 }
0x15c3   :  { %5937 = vmatmul.mubr.msk.bf16.vlgmr.msra.gmra.mxu1 %vm103_vm1, %v3755_v5 }
0x15c4   :  { %5952 = vmatprep.mubr.msk.bf16.mxu1 %vm6573_vm0, %v6572_v1  ;;  %5949 = vmatpush3.bf16.msra.mxu1 %v7509_v34 }
0x15c5   :  { %5950 = vmatprep.subr.bf16.mxu1 %v6572_v1 }
0x1683   :  { %v3803_v37 = vpop.f32.mrf.mxu1 }
0x1684   :  { %v3804_v13 = vadd.f32 %v3803_v37, %v3759_v58 }
0x1685   :  { %v5938_v23 = vpop.f32.mrf.mxu1 }
0x1686   :  { %v3810_v62 = vadd.f32 %v3804_v13, %v7278_v10  ;;  %v7516_v10 = vld [vmem:[%s7865_s2 + $0x30] sm:$0xff]  }
0x1687   :  { %v3806_v11 = vpop.f32.mrf.mxu1  ;;  %5951 = vmatpush3.bf16.msra.mxu1 %v7516_v10  ;;  %v7573_v23 = vld [vmem:[%s7867_s6 + $0x10] sm:$0xff] }
0x1688   :  { %v3807_v20 = vadd.f32 %v3806_v11, %v3759_v58  ;;  %v3812_v15 = vsel %vm103_vm1, %v3810_v62, 0.0  ;;  %5962 = vmatprep.subr.bf16.mxu1 %v6572_v1 }
0x1689   :  { %3813 = vadd.xlane.f32.xlu1 %v3812_v15  ;;  %v5939_v16 = vpop.f32.mrf.mxu1 }
0x168a   :  { %v3811_v44 = vadd.f32 %v3807_v20, %v7280_v52 }
0x168c   :  { %v3815_v33 = vsel %vm103_vm1, %v3811_v44, 0.0 }
0x168d   :  { %3816 = vadd.xlane.f32.xlu0 %v3815_v33 }
0x1712   :  { %v3814_v52 = vpop.xlane.xlu1 %3813 }
0x1713   :  { %v3818_v28 = vmul.f32 0.03125, %v3814_v52 }
0x1715   :  { %v3820_v2 = vsub.f32 %v3810_v62, %v3818_v28  ;;  %v3919_v62 = vrot.slane %v7573_v23, %v6999_v31 }
0x1716   :  { %v3817_v35 = vpop.xlane.xlu0 %3816 }
0x1717   :  { %v3819_v42 = vmul.f32 0.03125, %v3817_v35  ;;  %v3822_v38 = vmul.f32 %v3820_v2, %v3820_v2  ;;  %v4037_v35 = vrot.slane %v7573_v23, %v7019_v41 }
0x1719   :  { %v3821_v40 = vsub.f32 %v3811_v44, %v3819_v42  ;;  %v3824_v39 = vsel %vm103_vm1, %v3822_v38, 0.0 }
0x171a   :  { %3825 = vadd.xlane.f32.xlu0 %v3824_v39 }
0x171b   :  { %v3823_v48 = vmul.f32 %v3821_v40, %v3821_v40 }
0x171d   :  { %v3827_v29 = vsel %vm103_vm1, %v3823_v48, 0.0 }
0x171e   :  { %3828 = vadd.xlane.f32.xlu1 %v3827_v29 }
0x172f   :  { %3861 = vrot.lane.b32.xlu1 %v7516_v10, %s6578_s18 }
0x1730   :  { %3863 = vrot.lane.b32.xlu0 %v7509_v34, %s6578_s18 }
0x17a3   :  { %v3826_v60 = vpop.xlane.xlu0 %3825 }
0x17a4   :  { %v3830_v45 = vmul.f32 0.03125, %v3826_v60 }
0x17a6   :  { %v3832_v46 = vadd.f32 1e-05, %v3830_v45 }
0x17a7   :  { %v3829_v49 = vpop.xlane.xlu1 %3828  ;;  %v3864_v50 = vpop.permute.xlu0 %3863 }
0x17a8   :  { %6520 = vrsqrt.f32 %v3832_v46  ;;  %v3831_v3 = vmul.f32 0.03125, %v3829_v49  ;;  %5940 = vmatprep.subr.bf16.mxu0 %v3864_v50 }
0x17a9   :  { %5941 = vmatpush3.bf16.msra.mxu0 %v3864_v50 }
0x17aa   :  { %v3833_v32 = vadd.f32 1e-05, %v3831_v3 }
0x17ab   :  { %v3862_v30 = vpop.permute.xlu1 %3861 }
0x17ac   :  { %6522 = vrsqrt.f32 %v3833_v32  ;;  %5942 = vmatprep.subr.bf16.mxu0 %v3862_v30 }
0x17ad   :  { %5943 = vmatpush3.bf16.msra.mxu0 %v3862_v30 }
0x17ae   :  { %5956 = vmatprep.subr.bf16.mxu0 %v6572_v1 }
0x17b0   :  { %5945 = vmatmul.mubr.msk.bf16.vlgmr.msra.gmra.mxu0 %vm103_vm1, %v6948_v56 }
0x17b1   :  { %5958 = vmatprep.mubr.msk.bf16.mxu0 %vm6573_vm0, %v6572_v1 }
0x17b5   :  { %v6521_v18 = vpop.eup %6520 }
0x17b6   :  { %v3836_v26 = vmul.f32 %v6521_v18, %v3820_v2 }
0x17b8   :  { %v3842_v0 = vmul.f32 %v3841_v53, %v3836_v26 }
0x17b9   :  { %v6523_v27 = vpop.eup %6522 }
0x17ba   :  { %v3837_v54 = vmul.f32 %v6523_v27, %v3821_v40  ;;  %v7540_v57 = vadd.f32 %v3847_v43, %v3842_v0 }
0x17bc   :  { %v3843_v56 = vmul.f32 %v3841_v53, %v3837_v54 }
0x17be   :  { %v7542_v14 = vadd.f32 %v3847_v43, %v3843_v56 }
0x17c0   :  { %v3850_v51 = vpack.c.bf16 %v7542_v14, %v7540_v57 }
0x17c2   :  { %5953 = vmatmul.mubr.msk.bf16.vlgmr.msra.gmra.mxu1 %vm103_vm1, %v3850_v51 }
0x17c3   :  { %5964 = vmatprep.mubr.msk.bf16.mxu1 %vm6573_vm0, %v6572_v1 }
0x1870   :  { %v7551_v19 = vpop.f32.mrf.mxu0 }
0x1871   :  { %v3992_v36 = vadd.f32 %v7551_v19, %v3989_v7 }
0x1872   :  { %v7553_v47 = vpop.f32.mrf.mxu0 }
0x1873   :  { %v3990_v24 = vadd.f32 %v3989_v7, %v7553_v47 }
0x1874   :  { %v7556_v59 = vpop.f32.mrf.mxu0 }
0x1875   :  { %v3993_v61 = vadd.f32 %v7556_v59, %v3989_v7 }
0x1876   :  { %v7560_v63 = vpop.f32.mrf.mxu0 }
0x1877   :  { %v3991_v9 = vadd.f32 %v3989_v7, %v7560_v63  ;;  %v6307_v12 = vpack.i.bf16 %v3993_v61, %v3992_v36  ;;  %v4095_v5 = vpack.c.bf16 %v3993_v61, %v3992_v36 }
0x1879   :  { %6308 = vrot.lane.b32.xlu0 %v6307_v12, %s6576_s16  ;;  %v6312_v55 = vpack.i.bf16 %v3991_v9, %v3990_v24  ;;  %v4094_v58 = vpack.c.bf16 %v3991_v9, %v3990_v24  ;;  %v4152_v37 = vsel %vm253_vm2, %v4095_v5, 0 }
0x187a   :  { %5963 = vmatpush3.bf16.xpose.msra.mxu1 %v4152_v37 }
0x187b   :  { %6303 = vrot.lane.b32.xlu1 %v6312_v55, %s6576_s16  ;;  %v4106_v13 = vsel %vm253_vm2, %v4094_v58, 0  ;;  %5974 = vmatprep.subr.bf16.mxu1 %v6572_v1 }
0x187c   :  { %5957 = vmatpush3.bf16.xpose.msra.mxu0 %v4106_v13 }
0x187d   :  { %6313 = vrot.lane.b32.xlu0 %v6312_v55, %s6575_s15  ;;  %5968 = vmatprep.subr.bf16.mxu0 %v6572_v1 }
0x1882   :  { %v3959_v11 = vpop.f32.mrf.mxu1 }
0x1883   :  { %v3960_v20 = vadd.f32 %v3959_v11, %v3919_v62 }
0x1884   :  { %v5954_v15 = vpop.f32.mrf.mxu1 }
0x1885   :  { %v4086_v16 = vpack.c.bf16 %v3960_v20, %v3960_v20 }
0x1886   :  { %v3962_v44 = vpop.f32.mrf.mxu1 }
0x1887   :  { %v3963_v33 = vadd.f32 %v3962_v44, %v3919_v62  ;;  %5959 = vmatmul.mubr.msk.bf16.vlgmr.msra.gmra.mxu0 %vm253_vm2, %v4086_v16 }
0x1888   :  { %v5955_v52 = vpop.f32.mrf.mxu1  ;;  %5970 = vmatprep.mubr.msk.bf16.mxu0 %vm6573_vm0, %v6572_v1 }
0x1889   :  { %v4087_v28 = vpack.c.bf16 %v3963_v33, %v3963_v33  ;;  %v6332_v2 = vpack.i.bf16 %v3963_v33, %v3960_v20 }
0x188b   :  { %6333 = vrot.lane.b32.xlu0 %v6332_v2, %s6575_s15  ;;  %6318 = vrot.lane.b32.xlu1 %v6332_v2, %s6576_s16 }
0x188c   :  { %5965 = vmatmul.mubr.msk.bf16.vlgmr.msra.gmra.mxu1 %vm253_vm2, %v4087_v28 }
0x188d   :  { %5976 = vmatprep.mubr.msk.bf16.mxu1 %vm6573_vm0, %v6572_v1 }
0x188f   :  { %6338 = vrot.lane.b32.xlu0 %v6307_v12, %s6577_s17  ;;  %6323 = vrot.lane.b32.xlu1 %v6307_v12, %s6575_s15 }
0x1893   :  { %4039 = vrot.lane.b32.xlu0 %v4037_v35, %s6574_s0  ;;  %6328 = vrot.lane.b32.xlu1 %v6312_v55, %s6577_s17 }
0x1897   :  { %6343 = vrot.lane.b32.xlu1 %v6332_v2, %s6577_s17 }
0x18eb   :  { %v6309_v42 = vpop.permute.xlu0 %6308 }
0x18ec   :  { %v6311_v38 = vunpack.i.h.bf16 %v6309_v42  ;;  %v6310_v40 = vunpack.i.l.bf16 %v6309_v42 }
0x18ed   :  { %v6304_v39 = vpop.permute.xlu1 %6303 }
0x18ee   :  { %v4097_v48 = vpack.c.bf16 %v6311_v38, %v6310_v40  ;;  %v6306_v29 = vunpack.i.h.bf16 %v6304_v39  ;;  %v6305_v60 = vunpack.i.l.bf16 %v6304_v39 }
0x18ef   :  { %v6314_v50 = vpop.permute.xlu0 %6313 }
0x18f0   :  { %v4096_v45 = vpack.c.bf16 %v6306_v29, %v6305_v60  ;;  %v4244_v46 = vsel %vm253_vm2, %v4097_v48, 0  ;;  %v6316_v3 = vunpack.i.h.bf16 %v6314_v50  ;;  %v6315_v32 = vunpack.i.l.bf16 %v6314_v50 }
0x18f1   :  { %5975 = vmatpush3.bf16.xpose.msra.mxu1 %v4244_v46 }
0x18f2   :  { %v4198_v49 = vsel %vm253_vm2, %v4096_v45, 0  ;;  %5986 = vmatprep.subr.bf16.mxu1 %v6572_v1  ;;  %v4098_v53 = vpack.c.bf16 %v6316_v3, %v6315_v32 }
0x18f3   :  { %5969 = vmatpush3.bf16.xpose.msra.mxu0 %v4198_v49 }
0x18f4   :  { %5980 = vmatprep.subr.bf16.mxu0 %v6572_v1  ;;  %v4290_v36 = vsel %vm253_vm2, %v4098_v53, 0 }
0x18fd   :  { %v6334_v30 = vpop.permute.xlu0 %6333  ;;  %v6319_v18 = vpop.permute.xlu1 %6318 }
0x18fe   :  { %v6321_v26 = vunpack.i.h.bf16 %v6319_v18  ;;  %v6320_v27 = vunpack.i.l.bf16 %v6319_v18  ;;  %v6335_v61 = vunpack.i.l.bf16 %v6334_v30  ;;  %v6336_v16 = vunpack.i.h.bf16 %v6334_v30 }
0x1900   :  { %v4089_v43 = vpack.c.bf16 %v6321_v26, %v6321_v26  ;;  %v4088_v0 = vpack.c.bf16 %v6320_v27, %v6320_v27  ;;  %v4090_v44 = vpack.c.bf16 %v6335_v61, %v6335_v61  ;;  %v4091_v35 = vpack.c.bf16 %v6336_v16, %v6336_v16 }
0x1901   :  { %v6339_v54 = vpop.permute.xlu0 %6338  ;;  %v6324_v56 = vpop.permute.xlu1 %6323 }
0x1902   :  { %v6326_v51 = vunpack.i.h.bf16 %v6324_v56  ;;  %v6325_v7 = vunpack.i.l.bf16 %v6324_v56  ;;  %5971 = vmatmul.mubr.msk.bf16.vlgmr.msra.gmra.mxu0 %vm253_vm2, %v4088_v0  ;;  %5977 = vmatmul.mubr.msk.bf16.vlgmr.msra.gmra.mxu1 %vm253_vm2, %v4089_v43  ;;  %v6341_v9 = vunpack.i.h.bf16 %v6339_v54  ;;  %v6340_v62 = vunpack.i.l.bf16 %v6339_v54 }
0x1903   :  { %5981 = vmatpush3.bf16.xpose.msra.mxu0 %v4290_v36  ;;  %5982 = vmatprep.mubr.msk.bf16.mxu0 %vm6573_vm0, %v6572_v1 }
0x1904   :  { %v4099_v24 = vpack.c.bf16 %v6326_v51, %v6325_v7  ;;  %5992 = vmatprep.subr.bf16.mxu0 %v6572_v1  ;;  %5988 = vmatprep.mubr.msk.bf16.mxu1 %vm6573_vm0, %v6572_v1  ;;  %v4101_v28 = vpack.c.bf16 %v6341_v9, %v6340_v62 }
0x1905   :  { %v4040_v12 = vpop.permute.xlu0 %4039  ;;  %v6329_v5 = vpop.permute.xlu1 %6328 }
0x1906   :  { %v7605_v55 = vadd.f32 %v4040_v12, %v7553_v47  ;;  %v7608_v58 = vadd.f32 %v4040_v12, %v7560_v63  ;;  %v7611_v37 = vadd.f32 %v7551_v19, %v4040_v12  ;;  %v7614_v13 = vadd.f32 %v7556_v59, %v4040_v12 }
0x1907   :  { %v6331_v11 = vunpack.i.h.bf16 %v6329_v5  ;;  %v6330_v20 = vunpack.i.l.bf16 %v6329_v5  ;;  %v4336_v15 = vsel %vm253_vm2, %v4099_v24, 0  ;;  %v4428_v38 = vsel %vm253_vm2, %v4101_v28, 0 }
0x1908   :  { %5987 = vmatpush3.bf16.xpose.msra.mxu1 %v4336_v15  ;;  %v6367_v47 = vpack.i.bf16 %v7608_v58, %v7605_v55  ;;  %v7622_v19 = vpack.i.bf16 %v7614_v13, %v7611_v37  ;;  %v4567_v59 = vpack.c.bf16 %v7614_v13, %v7611_v37  ;;  %v4566_v52 = vpack.c.bf16 %v7608_v58, %v7605_v55 }
0x1909   :  { %v4100_v33 = vpack.c.bf16 %v6331_v11, %v6330_v20  ;;  %5998 = vmatprep.subr.bf16.mxu1 %v6572_v1  ;;  %v6344_v63 = vpop.permute.xlu1 %6343 }
0x190a   :  { %6368 = vrot.lane.b32.xlu0 %v6367_v47, %s6577_s17  ;;  %6348 = vrot.lane.b32.xlu1 %v6367_v47, %s6576_s16  ;;  %v6345_v42 = vunpack.i.l.bf16 %v6344_v63  ;;  %v6346_v40 = vunpack.i.h.bf16 %v6344_v63 }
0x190b   :  { %5983 = vmatmul.mubr.msk.bf16.vlgmr.msra.gmra.mxu0 %vm253_vm2, %v4090_v44  ;;  %v4382_v2 = vsel %vm253_vm2, %v4100_v33, 0 }
0x190c   :  { %5993 = vmatpush3.bf16.xpose.msra.mxu0 %v4382_v2  ;;  %5994 = vmatprep.mubr.msk.bf16.mxu0 %vm6573_vm0, %v6572_v1  ;;  %v4092_v39 = vpack.c.bf16 %v6345_v42, %v6345_v42  ;;  %v4093_v48 = vpack.c.bf16 %v6346_v40, %v6346_v40 }
0x190d   :  { %6004 = vmatprep.subr.bf16.mxu0 %v6572_v1 }
0x190e   :  { %6353 = vrot.lane.b32.xlu1 %v7622_v19, %s6576_s16 }
0x190f   :  { %5989 = vmatmul.mubr.msk.bf16.vlgmr.msra.gmra.mxu1 %vm253_vm2, %v4091_v35 }
0x1910   :  { %5999 = vmatpush3.bf16.xpose.msra.mxu1 %v4428_v38  ;;  %6000 = vmatprep.mubr.msk.bf16.mxu1 %vm6573_vm0, %v6572_v1 }
0x1911   :  { %6010 = vmatprep.subr.bf16.mxu1 %v6572_v1 }
0x1912   :  { %6358 = vrot.lane.b32.xlu1 %v6367_v47, %s6575_s15 }
0x1913   :  { %5995 = vmatmul.mubr.msk.bf16.vlgmr.msra.gmra.mxu0 %vm253_vm2, %v4092_v39 }
0x1914   :  { %6006 = vmatprep.mubr.msk.bf16.mxu0 %vm6573_vm0, %v6572_v1 }
0x1916   :  { %6363 = vrot.lane.b32.xlu1 %v7622_v19, %s6575_s15 }
0x1917   :  { %6001 = vmatmul.mubr.msk.bf16.vlgmr.msra.gmra.mxu1 %vm253_vm2, %v4093_v48 }
0x1918   :  { %6012 = vmatprep.mubr.msk.bf16.mxu1 %vm6573_vm0, %v6572_v1 }
0x1947   :  { %v7651_v29 = vpop.f32.mrf.mxu0 }
0x1948   :  { %v4470_v60 = vsel %vm1166_vm5, %v7651_v29, -inf }
0x1949   :  { %v5960_v45 = vpop.f32.mrf.mxu0  ;;  %4471 = vmax.xlane.f32.xlu0 %v4470_v60 }
0x194b   :  { %v4145_v46 = vpop.f32.mrf.mxu0 }
0x194c   :  { %v4188_v49 = vpop.f32.mrf.mxu1 }
0x194d   :  { %v5961_v50 = vpop.f32.mrf.mxu0  ;;  %v4473_v3 = vsel %vm1166_vm5, %v4188_v49, -inf }
0x194e   :  { %4474 = vmax.xlane.f32.xlu1 %v4473_v3  ;;  %v5966_v32 = vpop.f32.mrf.mxu1 }
0x1950   :  { %v4191_v30 = vpop.f32.mrf.mxu1 }
0x1952   :  { %v5967_v18 = vpop.f32.mrf.mxu1 }
0x197c   :  { %v6349_v38 = vpop.permute.xlu1 %6348  ;;  %v7698_v55 = vpop.permute.xlu0 %6368 }
0x197d   :  { %v6351_v30 = vunpack.i.h.bf16 %v6349_v38  ;;  %v6350_v18 = vunpack.i.l.bf16 %v6349_v38 }
0x197f   :  { %v4568_v37 = vpack.c.bf16 %v6351_v30, %v6350_v18 }
0x1980   :  { %v6354_v39 = vpop.permute.xlu1 %6353 }
0x1981   :  { %v6356_v13 = vunpack.i.h.bf16 %v6354_v39 }
0x1984   :  { %v6359_v48 = vpop.permute.xlu1 %6358 }
0x1988   :  { %v6364_v60 = vpop.permute.xlu1 %6363 }
0x19c2   :  { %v7656_v53 = vpop.f32.mrf.mxu0  ;;  %v7658_v26 = vpop.f32.mrf.mxu1 }
0x19c3   :  { %v4476_v27 = vsel %vm1166_vm5, %v7656_v53, -inf  ;;  %v4479_v51 = vsel %vm1166_vm5, %v7658_v26, -inf }
0x19c4   :  { %v5972_v43 = vpop.f32.mrf.mxu0  ;;  %4477 = vmax.xlane.f32.xlu1 %v4476_v27  ;;  %v5978_v0 = vpop.f32.mrf.mxu1  ;;  %v6361_v27 = vunpack.i.h.bf16 %v6359_v48 }
0x19c5   :  { %v6360_v43 = vunpack.i.l.bf16 %v6359_v48  ;;  %v6366_v0 = vunpack.i.h.bf16 %v6364_v60 }
0x19c6   :  { %v4237_v54 = vpop.f32.mrf.mxu0  ;;  %v4283_v56 = vpop.f32.mrf.mxu1 }
0x19c7   :  { %v6365_v54 = vunpack.i.l.bf16 %v6364_v60  ;;  %v4570_v56 = vpack.c.bf16 %v6361_v27, %v6360_v43 }
0x19c8   :  { %v5973_v7 = vpop.f32.mrf.mxu0  ;;  %4480 = vmax.xlane.f32.xlu1 %v4479_v51  ;;  %v5979_v36 = vpop.f32.mrf.mxu1 }
0x19c9   :  { %v4571_v51 = vpack.c.bf16 %v6366_v0, %v6365_v54 }
0x19cb   :  { %v7664_v24 = vpop.f32.mrf.mxu0 }
0x19cc   :  { %v4482_v61 = vsel %vm1166_vm5, %v7664_v24, -inf }
0x19cd   :  { %v5984_v9 = vpop.f32.mrf.mxu0  ;;  %4483 = vmax.xlane.f32.xlu1 %v4482_v61 }
0x19cf   :  { %v4329_v12 = vpop.f32.mrf.mxu0  ;;  %v7668_v5 = vpop.f32.mrf.mxu1 }
0x19d0   :  { %v4485_v62 = vsel %vm1166_vm5, %v7668_v5, -inf }
0x19d1   :  { %v5985_v11 = vpop.f32.mrf.mxu0  ;;  %4486 = vmax.xlane.f32.xlu1 %v4485_v62  ;;  %v5990_v20 = vpop.f32.mrf.mxu1 }
0x19d2   :  { %v4472_v58 = vpop.xlane.xlu0 %4471 }
0x19d3   :  { %v4375_v15 = vpop.f32.mrf.mxu1  ;;  %v7672_v16 = vpop.f32.mrf.mxu0 }
0x19d4   :  { %v4488_v3 = vsel %vm1166_vm5, %v7672_v16, -inf }
0x19d5   :  { %v5991_v47 = vpop.f32.mrf.mxu1  ;;  %v5996_v44 = vpop.f32.mrf.mxu0 }
0x19d7   :  { %v4421_v33 = vpop.f32.mrf.mxu0  ;;  %v7674_v63 = vpop.f32.mrf.mxu1 }
0x19d8   :  { %v4491_v2 = vsel %vm1166_vm5, %v7674_v63, -inf  ;;  %v4475_v45 = vpop.xlane.xlu1 %4474 }
0x19d9   :  { %v5997_v28 = vpop.f32.mrf.mxu0  ;;  %4492 = vmax.xlane.f32.xlu0 %v4491_v2  ;;  %v6002_v35 = vpop.f32.mrf.mxu1  ;;  %v4495_v46 = vsub.f32 %v4188_v49, %v4475_v45 }
0x19db   :  { %v4467_v42 = vpop.f32.mrf.mxu1  ;;  %v4504_v50 = vmul.f32 1.442695, %v4495_v46 }
0x19dd   :  { %v6003_v40 = vpop.f32.mrf.mxu1  ;;  %6524 = vpow2.f32 %v4504_v50 }
0x19e2   :  { %6373 = vrot.lane.b32.xlu1 %v7622_v19, %s6577_s17 }
0x19ea   :  { %v7686_v32 = vpop.eup %6524 }
0x19eb   :  { %v4521_v19 = vsel %vm1166_vm5, %v7686_v32, 0.0 }
0x19ef   :  { %4622 = vrot.lane.b32.xlu0 %v4567_v59, %s6578_s18  ;;  %v6355_v59 = vunpack.i.l.bf16 %v6354_v39 }
0x19f1   :  { %v4569_v49 = vpack.c.bf16 %v6356_v13, %v6355_v59 }
0x1a06   :  { %4489 = vmax.xlane.f32.xlu1 %v4488_v3 }
0x1a0e   :  { %4522 = vadd.xlane.f32.xlu0 %v4521_v19 }
0x1a17   :  { %4575 = vrot.lane.b32.xlu1 %v4566_v52, %s6578_s18  ;;  %v4494_v52 = vsub.f32 %v7651_v29, %v4472_v58  ;;  %v6371_v58 = vunpack.i.h.bf16 %v7698_v55 }
0x1a19   :  { %v4502_v7 = vmul.f32 1.442695, %v4494_v52  ;;  %v6370_v52 = vunpack.i.l.bf16 %v7698_v55 }
0x1a1b   :  { %4669 = vrot.lane.b32.xlu1 %v4568_v37, %s6578_s18  ;;  %6526 = vpow2.f32 %v4502_v7  ;;  %v4572_v7 = vpack.c.bf16 %v6371_v58, %v6370_v52 }
0x1a1f   :  { %4716 = vrot.lane.b32.xlu1 %v4569_v49, %s6578_s18 }
0x1a23   :  { %4763 = vrot.lane.b32.xlu1 %v4570_v56, %s6578_s18 }
0x1a24   :  { %4810 = vrot.lane.b32.xlu0 %v4571_v51, %s6578_s18 }
0x1a28   :  { %v7701_v36 = vpop.eup %6526 }
0x1a29   :  { %v4518_v61 = vsel %vm1166_vm5, %v7701_v36, 0.0 }
0x1a47   :  { %4519 = vadd.xlane.f32.xlu1 %v4518_v61 }
0x1a4d   :  { %v4478_v9 = vpop.xlane.xlu1 %4477 }
0x1a4e   :  { %v4496_v12 = vsub.f32 %v7656_v53, %v4478_v9 }
0x1a50   :  { %v4506_v62 = vmul.f32 1.442695, %v4496_v12 }
0x1a51   :  { %v4481_v11 = vpop.xlane.xlu1 %4480 }
0x1a52   :  { %6528 = vpow2.f32 %v4506_v62  ;;  %v4497_v20 = vsub.f32 %v7658_v26, %v4481_v11 }
0x1a54   :  { %v4508_v15 = vmul.f32 1.442695, %v4497_v20 }
0x1a56   :  { %6530 = vpow2.f32 %v4508_v15  ;;  %v4484_v47 = vpop.xlane.xlu1 %4483 }
0x1a57   :  { %v4498_v29 = vsub.f32 %v7664_v24, %v4484_v47 }
0x1a59   :  { %v4510_v44 = vmul.f32 1.442695, %v4498_v29 }
0x1a5a   :  { %v4487_v33 = vpop.xlane.xlu1 %4486 }
0x1a5b   :  { %6532 = vpow2.f32 %v4510_v44  ;;  %v4499_v28 = vsub.f32 %v7668_v5, %v4487_v33 }
0x1a5d   :  { %v4512_v2 = vmul.f32 1.442695, %v4499_v28 }
0x1a5e   :  { %v6374_v50 = vpop.permute.xlu1 %6373 }
0x1a5f   :  { %v7709_v35 = vpop.eup %6528  ;;  %6534 = vpow2.f32 %v4512_v2  ;;  %v6376_v3 = vunpack.i.h.bf16 %v6374_v50  ;;  %v6375_v19 = vunpack.i.l.bf16 %v6374_v50 }
0x1a60   :  { %v4524_v53 = vsel %vm1166_vm5, %v7709_v35, 0.0 }
0x1a61   :  { %4525 = vadd.xlane.f32.xlu1 %v4524_v53  ;;  %v4573_v30 = vpack.c.bf16 %v6376_v3, %v6375_v19 }
0x1a62   :  { %v4493_v26 = vpop.xlane.xlu0 %4492 }
0x1a63   :  { %v7713_v42 = vpop.eup %6530  ;;  %v4501_v38 = vsub.f32 %v7674_v63, %v4493_v26 }
0x1a64   :  { %v4527_v24 = vsel %vm1166_vm5, %v7713_v42, 0.0 }
0x1a65   :  { %4528 = vadd.xlane.f32.xlu1 %v4527_v24  ;;  %v4516_v40 = vmul.f32 1.442695, %v4501_v38 }
0x1a66   :  { %v4623_v39 = vpop.permute.xlu0 %4622 }
0x1a67   :  { %6536 = vpow2.f32 %v4516_v40  ;;  %6011 = vmatpush3.bf16.msra.mxu1 %v4623_v39 }
0x1a68   :  { %v7718_v5 = vpop.eup %6532  ;;  %6022 = vmatprep.subr.bf16.mxu1 %v6572_v1 }
0x1a69   :  { %v4530_v48 = vsel %vm1166_vm5, %v7718_v5, 0.0 }
0x1a6a   :  { %4531 = vadd.xlane.f32.xlu1 %v4530_v48 }
0x1a6c   :  { %v7723_v60 = vpop.eup %6534 }
0x1a6d   :  { %v4533_v63 = vsel %vm1166_vm5, %v7723_v60, 0.0 }
0x1a6e   :  { %4534 = vadd.xlane.f32.xlu0 %v4533_v63 }
0x1a74   :  { %v7727_v45 = vpop.eup %6536 }
0x1a75   :  { %v4539_v46 = vsel %vm1166_vm5, %v7727_v45, 0.0 }
0x1a76   :  { %4540 = vadd.xlane.f32.xlu0 %v4539_v46 }
0x1a8c   :  { %4904 = vrot.lane.b32.xlu0 %v4573_v30, %s6578_s18 }
0x1a8f   :  { %v4490_v18 = vpop.xlane.xlu1 %4489 }
0x1a90   :  { %v4500_v37 = vsub.f32 %v7672_v16, %v4490_v18 }
0x1a92   :  { %v4514_v13 = vmul.f32 1.442695, %v4500_v37 }
0x1a93   :  { %v4576_v59 = vpop.permute.xlu1 %4575 }
0x1a94   :  { %6538 = vpow2.f32 %v4514_v13  ;;  %6005 = vmatpush3.bf16.msra.mxu0 %v4576_v59 }
0x1a95   :  { %6016 = vmatprep.subr.bf16.mxu0 %v6572_v1 }
0x1a97   :  { %v4523_v49 = vpop.xlane.xlu0 %4522  ;;  %v4670_v0 = vpop.permute.xlu1 %4669 }
0x1a98   :  { %6540 = vrcp.f32 %v4523_v49 }
0x1a9b   :  { %v4717_v16 = vpop.permute.xlu1 %4716 }
0x1aa1   :  { %v7734_v27 = vpop.eup %6538 }
0x1aa2   :  { %v4536_v43 = vsel %vm1166_vm5, %v7734_v27, 0.0 }
0x1aa3   :  { %4537 = vadd.xlane.f32.xlu1 %v4536_v43 }
0x1aa5   :  { %v6541_v54 = vpop.eup %6540 }
0x1aa6   :  { %v4551_v56 = vmul.f32 %v6541_v54, %v7686_v32  ;;  %v4764_v32 = vpop.permute.xlu1 %4763 }
0x1aa8   :  { %v4559_v51 = vpack.c.bf16 %v4551_v56, %v4551_v56 }
0x1aaa   :  { %6013 = vmatmul.mubr.msk.bf16.vlgmr.msra.gmra.mxu1 %vm1166_vm5, %v4559_v51 }
0x1aab   :  { %6023 = vmatpush3.bf16.msra.mxu1 %v4717_v16  ;;  %6024 = vmatprep.mubr.msk.bf16.mxu1 %vm6573_vm0, %v6572_v1 }
0x1aac   :  { %6034 = vmatprep.subr.bf16.mxu1 %v6572_v1 }
0x1ab4   :  { %4857 = vrot.lane.b32.xlu1 %v4572_v7, %s6578_s18 }
0x1ab8   :  { %4987 = vrot.lane.b32.xlu1 %v7509_v34, %s6574_s0  ;;  %v4811_v34 = vpop.permute.xlu0 %4810 }
0x1ad0   :  { %v4520_v61 = vpop.xlane.xlu1 %4519 }
0x1ad1   :  { %6542 = vrcp.f32 %v4520_v61 }
0x1ade   :  { %v6543_v9 = vpop.eup %6542 }
0x1adf   :  { %v4550_v12 = vmul.f32 %v6543_v9, %v7701_v36 }
0x1ae1   :  { %v4558_v62 = vpack.c.bf16 %v4550_v12, %v4550_v12 }
0x1ae3   :  { %6007 = vmatmul.mubr.msk.bf16.vlgmr.msra.gmra.mxu0 %vm1166_vm5, %v4558_v62 }
0x1ae4   :  { %6017 = vmatpush3.bf16.msra.mxu0 %v4670_v0  ;;  %6018 = vmatprep.mubr.msk.bf16.mxu0 %vm6573_vm0, %v6572_v1 }
0x1ae5   :  { %6028 = vmatprep.subr.bf16.mxu0 %v6572_v1 }
0x1aea   :  { %v4526_v55 = vpop.xlane.xlu1 %4525 }
0x1aeb   :  { %6544 = vrcp.f32 %v4526_v55 }
0x1aee   :  { %v4529_v11 = vpop.xlane.xlu1 %4528 }
0x1aef   :  { %6546 = vrcp.f32 %v4529_v11 }
0x1af3   :  { %v4532_v20 = vpop.xlane.xlu1 %4531 }
0x1af4   :  { %6548 = vrcp.f32 %v4532_v20 }
0x1af7   :  { %v4535_v15 = vpop.xlane.xlu0 %4534 }
0x1af8   :  { %v6545_v47 = vpop.eup %6544  ;;  %6550 = vrcp.f32 %v4535_v15 }
0x1af9   :  { %v4552_v36 = vmul.f32 %v6545_v47, %v7709_v35 }
0x1afb   :  { %v4560_v29 = vpack.c.bf16 %v4552_v36, %v4552_v36 }
0x1afc   :  { %v6547_v44 = vpop.eup %6546 }
0x1afd   :  { %v4553_v33 = vmul.f32 %v6547_v44, %v7713_v42  ;;  %6019 = vmatmul.mubr.msk.bf16.vlgmr.msra.gmra.mxu0 %vm1166_vm5, %v4560_v29 }
0x1afe   :  { %6029 = vmatpush3.bf16.msra.mxu0 %v4764_v32  ;;  %6030 = vmatprep.mubr.msk.bf16.mxu0 %vm6573_vm0, %v6572_v1 }
0x1aff   :  { %v4561_v28 = vpack.c.bf16 %v4553_v33, %v4553_v33  ;;  %6040 = vmatprep.subr.bf16.mxu0 %v6572_v1  ;;  %v4541_v2 = vpop.xlane.xlu0 %4540 }
0x1b00   :  { %6552 = vrcp.f32 %v4541_v2 }
0x1b01   :  { %v6549_v53 = vpop.eup %6548  ;;  %6025 = vmatmul.mubr.msk.bf16.vlgmr.msra.gmra.mxu1 %vm1166_vm5, %v4561_v28 }
0x1b02   :  { %v4554_v35 = vmul.f32 %v6549_v53, %v7718_v5  ;;  %6035 = vmatpush3.bf16.msra.mxu1 %v4811_v34  ;;  %6036 = vmatprep.mubr.msk.bf16.mxu1 %vm6573_vm0, %v6572_v1 }
0x1b03   :  { %6046 = vmatprep.subr.bf16.mxu1 %v6572_v1  ;;  %v4905_v40 = vpop.permute.xlu0 %4904 }
0x1b04   :  { %v4562_v42 = vpack.c.bf16 %v4554_v35, %v4554_v35 }
0x1b05   :  { %v6551_v26 = vpop.eup %6550 }
0x1b06   :  { %v4555_v38 = vmul.f32 %v6551_v26, %v7723_v60  ;;  %6031 = vmatmul.mubr.msk.bf16.vlgmr.msra.gmra.mxu0 %vm1166_vm5, %v4562_v42 }
0x1b07   :  { %6042 = vmatprep.mubr.msk.bf16.mxu0 %vm6573_vm0, %v6572_v1 }
0x1b08   :  { %v4563_v24 = vpack.c.bf16 %v4555_v38, %v4555_v38 }
0x1b0a   :  { %6037 = vmatmul.mubr.msk.bf16.vlgmr.msra.gmra.mxu1 %vm1166_vm5, %v4563_v24 }
0x1b0b   :  { %6047 = vmatpush3.bf16.msra.mxu1 %v4905_v40  ;;  %6048 = vmatprep.mubr.msk.bf16.mxu1 %vm6573_vm0, %v6572_v1 }
0x1b0c   :  { %6060 = vmatprep.subr.bf16.mxu1 %v6572_v1 }
0x1b0d   :  { %v6553_v39 = vpop.eup %6552 }
0x1b0e   :  { %v4557_v5 = vmul.f32 %v6553_v39, %v7727_v45 }
0x1b10   :  { %v4565_v48 = vpack.c.bf16 %v4557_v5, %v4557_v5 }
0x1b12   :  { %6049 = vmatmul.mubr.msk.bf16.vlgmr.msra.gmra.mxu1 %vm1166_vm5, %v4565_v48 }
0x1b13   :  { %6064 = vmatprep.mubr.msk.bf16.mxu1 %vm6573_vm0, %v6572_v1 }
0x1b2c   :  { %v4538_v60 = vpop.xlane.xlu1 %4537 }
0x1b2d   :  { %6554 = vrcp.f32 %v4538_v60 }
0x1b30   :  { %v4858_v63 = vpop.permute.xlu1 %4857 }
0x1b31   :  { %6041 = vmatpush3.bf16.msra.mxu0 %v4858_v63 }
0x1b32   :  { %6052 = vmatprep.subr.bf16.mxu0 %v6572_v1 }
0x1b34   :  { %v4988_v43 = vpop.permute.xlu1 %4987 }
0x1b3a   :  { %v6555_v46 = vpop.eup %6554 }
0x1b3b   :  { %v4556_v50 = vmul.f32 %v6555_v46, %v7734_v27 }
0x1b3d   :  { %v4564_v3 = vpack.c.bf16 %v4556_v50, %v4556_v50 }
0x1b3f   :  { %6043 = vmatmul.mubr.msk.bf16.vlgmr.msra.gmra.mxu0 %vm1166_vm5, %v4564_v3 }
0x1b40   :  { %6056 = vmatprep.mubr.msk.bf16.mxu0 %vm6573_vm0, %v6572_v1  ;;  %6053 = vmatpush3.bf16.msra.mxu0 %v4988_v43 }
0x1b41   :  { %6054 = vmatprep.subr.bf16.mxu0 %v6572_v1 }
0x1b6a   :  { %v4662_v45 = vpop.f32.mrf.mxu1 }
0x1b6c   :  { %v6014_v19 = vpop.f32.mrf.mxu1 }
0x1b6e   :  { %v4665_v30 = vpop.f32.mrf.mxu1 }
0x1b70   :  { %v6015_v18 = vpop.f32.mrf.mxu1 }
0x1ba3   :  { %v4615_v37 = vpop.f32.mrf.mxu0 }
0x1ba5   :  { %v6008_v13 = vpop.f32.mrf.mxu0 }
0x1ba7   :  { %v4618_v59 = vpop.f32.mrf.mxu0 }
0x1ba9   :  { %v6009_v49 = vpop.f32.mrf.mxu0 }
0x1bbd   :  { %v4709_v0 = vpop.f32.mrf.mxu0 }
0x1bbf   :  { %v6020_v27 = vpop.f32.mrf.mxu0 }
0x1bc1   :  { %v4712_v54 = vpop.f32.mrf.mxu0  ;;  %v4756_v56 = vpop.f32.mrf.mxu1 }
0x1bc2   :  { %v6377_v51 = vpack.i.bf16 %v4756_v56, %v4709_v0 }
0x1bc3   :  { %v6021_v16 = vpop.f32.mrf.mxu0  ;;  %v6026_v58 = vpop.f32.mrf.mxu1 }
0x1bc4   :  { %6378 = vrot.lane.b32.xlu0 %v6377_v51, %s6581_s20 }
0x1bc5   :  { %v4759_v52 = vpop.f32.mrf.mxu1 }
0x1bc6   :  { %v4803_v7 = vpop.f32.mrf.mxu0 }
0x1bc7   :  { %v6027_v32 = vpop.f32.mrf.mxu1 }
0x1bc8   :  { %v6032_v61 = vpop.f32.mrf.mxu0 }
0x1bc9   :  { %v6407_v61 = vld [vmem:[%s7869_s3 + $0x10] sm:$0xff]  }
0x1bca   :  { %v4806_v9 = vpop.f32.mrf.mxu0  ;;  %v4850_v12 = vpop.f32.mrf.mxu1 }
0x1bcb   :  { %v6382_v62 = vpack.i.bf16 %v4850_v12, %v4803_v7  ;;  %v6408_v9 = vld [vmem:[%s7870_s4 + $0x38] sm:$0xff]  }
0x1bcc   :  { %v6033_v55 = vpop.f32.mrf.mxu0  ;;  %v6038_v11 = vpop.f32.mrf.mxu1 }
0x1bcd   :  { %6383 = vrot.lane.b32.xlu1 %v6382_v62, %s6582_s21 }
0x1bce   :  { %v4853_v34 = vpop.f32.mrf.mxu1 }
0x1bd0   :  { %v6039_v20 = vpop.f32.mrf.mxu1 }
0x1bd1   :  { %4985 = vrot.lane.b32.xlu1 %v7516_v10, %s6574_s0 }
0x1bd2   :  { %v4944_v15 = vpop.f32.mrf.mxu1 }
0x1bd4   :  { %v6050_v47 = vpop.f32.mrf.mxu1 }
0x1bd5   :  { %v5066_v47 = vrot.slane %v7534_v6, %v6904_v22  ;;  %v6410_v22 = vld [vmem:[%s7870_s4 + $0x28] sm:$0xff]  }
0x1bd6   :  { %v4947_v36 = vpop.f32.mrf.mxu1 }
0x1bd8   :  { %v6051_v29 = vpop.f32.mrf.mxu1 }
0x1bff   :  { %v4897_v44 = vpop.f32.mrf.mxu0 }
0x1c00   :  { %v6387_v33 = vpack.i.bf16 %v4944_v15, %v4897_v44  ;;  %v5072_v44 = vrot.slane %v7534_v6, %v6999_v31  ;;  %v6411_v31 = vld [vmem:[%s7870_s4 + $0x20] sm:$0xff]  }
0x1c01   :  { %v6044_v28 = vpop.f32.mrf.mxu0 }
0x1c02   :  { %6388 = vrot.lane.b32.xlu0 %v6387_v33, %s6583_s22 }
0x1c03   :  { %v4900_v2 = vpop.f32.mrf.mxu0 }
0x1c05   :  { %v6045_v53 = vpop.f32.mrf.mxu0 }
0x1c36   :  { %v6379_v26 = vpop.permute.xlu0 %6378 }
0x1c37   :  { %v6381_v38 = vunpack.i.h.bf16 %v6379_v26  ;;  %v6380_v24 = vunpack.i.l.bf16 %v6379_v26  ;;  %v6409_v26 = vld [vmem:[%s7870_s4 + $0x30] sm:$0xff]  }
0x1c39   :  { %v4975_v5 = vsel %vm253_vm2, %v4662_v45, %v6381_v38  ;;  %v4974_v48 = vsel %vm253_vm2, %v4615_v37, %v6380_v24  ;;  %v4984_v45 = vrot.slane %v7573_v23, %v2407_v25  ;;  %v5391_v38 = vld [vmem:[%s7871_s5 + $0x1] ss:$0 sm:$0xff] }
0x1c3f   :  { %v6384_v35 = vpop.permute.xlu1 %6383 }
0x1c40   :  { %v6386_v10 = vunpack.i.h.bf16 %v6384_v35  ;;  %v6385_v40 = vunpack.i.l.bf16 %v6384_v35 }
0x1c42   :  { %v4977_v46 = vsel %vm1166_vm5, %v4975_v5, %v6386_v10  ;;  %v4976_v50 = vsel %vm1166_vm5, %v4974_v48, %v6385_v40 }
0x1c43   :  { %v4986_v42 = vpop.permute.xlu1 %4985 }
0x1c44   :  { %6055 = vmatpush3.bf16.msra.mxu0 %v4986_v42 }
0x1c45   :  { %6068 = vmatprep.subr.bf16.mxu0 %v6572_v1 }
0x1c74   :  { %v6389_v39 = vpop.permute.xlu0 %6388 }
0x1c75   :  { %v6391_v60 = vunpack.i.h.bf16 %v6389_v39  ;;  %v6390_v63 = vunpack.i.l.bf16 %v6389_v39 }
0x1c77   :  { %v4979_v3 = vsel %vm1169_vm6, %v4977_v46, %v6391_v60  ;;  %v4978_v19 = vsel %vm1169_vm6, %v4976_v50, %v6390_v63 }
0x1c78   :  { %v4980_v30 = vpack.c.bf16 %v4979_v3, %v4978_v19 }
0x1c7a   :  { %6057 = vmatmul.mubr.msk.bf16.vlgmr.msra.gmra.mxu0 %vm103_vm1, %v4980_v30 }
0x1c7b   :  { %6076 = vmatprep.mubr.msk.bf16.mxu0 %vm6573_vm0, %v6572_v1  ;;  %6069 = vmatpush3.bf16.msra.mxu0 %v6408_v9 }
0x1c7c   :  { %6070 = vmatprep.subr.bf16.mxu0 %v6572_v1 }
0x1c7f   :  { %6071 = vmatpush3.bf16.msra.mxu0 %v6409_v26 }
0x1c80   :  { %6072 = vmatprep.subr.bf16.mxu0 %v6572_v1 }
0x1c83   :  { %6073 = vmatpush3.bf16.msra.mxu0 %v6410_v22 }
0x1c84   :  { %6074 = vmatprep.subr.bf16.mxu0 %v6572_v1 }
0x1c87   :  { %6075 = vmatpush3.bf16.msra.mxu0 %v6411_v31 }
0x1d3a   :  { %v5028_v18 = vpop.f32.mrf.mxu0 }
0x1d3b   :  { %v5029_v37 = vadd.f32 %v5028_v18, %v4984_v45 }
0x1d3c   :  { %v6058_v13 = vpop.f32.mrf.mxu0 }
0x1d3d   :  { %v5035_v59 = vadd.f32 %v5029_v37, %v7540_v57 }
0x1d3e   :  { %v5031_v49 = vpop.f32.mrf.mxu0 }
0x1d3f   :  { %v5032_v43 = vadd.f32 %v5031_v49, %v4984_v45  ;;  %v5037_v0 = vsel %vm103_vm1, %v5035_v59, 0.0 }
0x1d40   :  { %5038 = vadd.xlane.f32.xlu0 %v5037_v0  ;;  %v6059_v27 = vpop.f32.mrf.mxu0 }
0x1d41   :  { %v5036_v54 = vadd.f32 %v5032_v43, %v7542_v14  ;;  %v6406_v14 = vld [vmem:[%s7869_s3 + $0x18] sm:$0xff]  }
0x1d42   :  { %6061 = vmatpush3.bf16.msra.mxu1 %v6406_v14  ;;  %v6571_v14 = vld [vmem:[%s7867_s6 + $0x18] sm:$0x7f] }
0x1d43   :  { %v5040_v56 = vsel %vm103_vm1, %v5036_v54, 0.0  ;;  %6062 = vmatprep.subr.bf16.mxu1 %v6572_v1  ;;  %v5144_v1 = vrot.slane %v7534_v6, %v6690_v21 }
0x1d44   :  { %5041 = vadd.xlane.f32.xlu1 %v5040_v56 }
0x1d46   :  { %6063 = vmatpush3.bf16.msra.mxu1 %v6407_v61  ;;  %v5244_v61 = vrot.slane %v6571_v14, %v6974_v17 }
0x1dc9   :  { %v5039_v51 = vpop.xlane.xlu0 %5038 }
0x1dca   :  { %v5043_v4 = vmul.f32 0.03125, %v5039_v51 }
0x1dcc   :  { %v5045_v16 = vsub.f32 %v5035_v59, %v5043_v4 }
0x1dcd   :  { %v5042_v25 = vpop.xlane.xlu1 %5041 }
0x1dce   :  { %v5044_v23 = vmul.f32 0.03125, %v5042_v25  ;;  %v5047_v58 = vmul.f32 %v5045_v16, %v5045_v16 }
0x1dd0   :  { %v5046_v52 = vsub.f32 %v5036_v54, %v5044_v23  ;;  %v5049_v57 = vsel %vm103_vm1, %v5047_v58, 0.0 }
0x1dd1   :  { %5050 = vadd.xlane.f32.xlu0 %v5049_v57 }
0x1dd2   :  { %v5048_v7 = vmul.f32 %v5046_v52, %v5046_v52 }
0x1dd4   :  { %v5052_v32 = vsel %vm103_vm1, %v5048_v7, 0.0 }
0x1dd5   :  { %5053 = vadd.xlane.f32.xlu0 %v5052_v32 }
0x1e5a   :  { %v5051_v12 = vpop.xlane.xlu0 %5050 }
0x1e5b   :  { %v5055_v62 = vmul.f32 0.03125, %v5051_v12 }
0x1e5d   :  { %v5057_v55 = vadd.f32 1e-05, %v5055_v62  ;;  %v5250_v62 = vrot.slane %v6571_v14, %v7019_v41 }
0x1e5e   :  { %v5054_v11 = vpop.xlane.xlu0 %5053 }
0x1e5f   :  { %6556 = vrsqrt.f32 %v5057_v55  ;;  %v5056_v34 = vmul.f32 0.03125, %v5054_v11 }
0x1e61   :  { %v5058_v20 = vadd.f32 1e-05, %v5056_v34 }
0x1e63   :  { %6558 = vrsqrt.f32 %v5058_v20 }
0x1e6c   :  { %v6557_v15 = vpop.eup %6556 }
0x1e6d   :  { %v5061_v36 = vmul.f32 %v6557_v15, %v5045_v16 }
0x1e6f   :  { %v5067_v33 = vmul.f32 %v5066_v47, %v5061_v36 }
0x1e70   :  { %v6559_v29 = vpop.eup %6558 }
0x1e71   :  { %v5062_v28 = vmul.f32 %v6559_v29, %v5046_v52  ;;  %v5073_v53 = vadd.f32 %v5072_v44, %v5067_v33 }
0x1e73   :  { %v5068_v2 = vmul.f32 %v5066_v47, %v5062_v28 }
0x1e75   :  { %v5074_v35 = vadd.f32 %v5072_v44, %v5068_v2 }
0x1e77   :  { %v5075_v42 = vpack.c.bf16 %v5074_v35, %v5073_v53 }
0x1e79   :  { %6065 = vmatmul.mubr.msk.bf16.vlgmr.msra.gmra.mxu1 %vm103_vm1, %v5075_v42 }
0x1f39   :  { %v5131_v24 = vpop.f32.mrf.mxu1 }
0x1f3a   :  { %v5132_v40 = vadd.f32 %v5391_v38, %v5131_v24 }
0x1f3b   :  { %v6066_v10 = vpop.f32.mrf.mxu1 }
0x1f3c   :  { %v5138_v60 = vmax.f32 %v5132_v40, 0.0 }
0x1f3d   :  { %v5134_v39 = vpop.f32.mrf.mxu1 }
0x1f3e   :  { %v5135_v5 = vadd.f32 %v5391_v38, %v5134_v39  ;;  %v5253_v39 = vld [vmem:[%s7872_s7] sm:$0x3] }
0x1f3f   :  { %v6067_v48 = vpop.f32.mrf.mxu1 }
0x1f40   :  { %v5139_v63 = vmax.f32 %v5135_v5, 0.0  ;;  %v5283_v5 = vrot.slane %v5253_v39, %v6690_v21 }
0x1f42   :  { %v5140_v46 = vpack.c.bf16 %v5139_v63, %v5138_v60  ;;  %v5289_v60 = vrot.slane %v5253_v39, %v6666_v8 }
0x1f44   :  { %6077 = vmatmul.mubr.msk.bf16.vlgmr.msra.gmra.mxu0 %vm2593_vm7, %v5140_v46 }
0x2004   :  { %v5206_v50 = vpop.f32.mrf.mxu0 }
0x2005   :  { %v5207_v3 = vadd.f32 %v5206_v50, %v5144_v1 }
0x2006   :  { %v6078_v19 = vpop.f32.mrf.mxu0 }
0x2007   :  { %v5213_v30 = vadd.f32 %v5207_v3, %v5073_v53 }
0x2008   :  { %v5209_v45 = vpop.f32.mrf.mxu0 }
0x2009   :  { %v5210_v18 = vadd.f32 %v5209_v45, %v5144_v1  ;;  %v5215_v37 = vsel %vm103_vm1, %v5213_v30, 0.0 }
0x200a   :  { %5216 = vadd.xlane.f32.xlu0 %v5215_v37  ;;  %v6079_v13 = vpop.f32.mrf.mxu0 }
0x200b   :  { %v5214_v59 = vadd.f32 %v5210_v18, %v5074_v35 }
0x200d   :  { %v5218_v49 = vsel %vm103_vm1, %v5214_v59, 0.0 }
0x200e   :  { %5219 = vadd.xlane.f32.xlu1 %v5218_v49 }
0x2093   :  { %v5217_v43 = vpop.xlane.xlu0 %5216 }
0x2094   :  { %v5221_v0 = vmul.f32 0.03125, %v5217_v43 }
0x2096   :  { %v5223_v27 = vsub.f32 %v5213_v30, %v5221_v0 }
0x2097   :  { %v5220_v54 = vpop.xlane.xlu1 %5219 }
0x2098   :  { %v5222_v56 = vmul.f32 0.03125, %v5220_v54  ;;  %v5225_v6 = vmul.f32 %v5223_v27, %v5223_v27 }
0x209a   :  { %v5224_v51 = vsub.f32 %v5214_v59, %v5222_v56  ;;  %v5227_v4 = vsel %vm103_vm1, %v5225_v6, 0.0 }
0x209b   :  { %5228 = vadd.xlane.f32.xlu0 %v5227_v4 }
0x209c   :  { %v5226_v16 = vmul.f32 %v5224_v51, %v5224_v51 }
0x209e   :  { %v5230_v25 = vsel %vm103_vm1, %v5226_v16, 0.0 }
0x209f   :  { %5231 = vadd.xlane.f32.xlu1 %v5230_v25 }
0x2124   :  { %v5229_v23 = vpop.xlane.xlu0 %5228 }
0x2125   :  { %v5233_v58 = vmul.f32 0.03125, %v5229_v23 }
0x2127   :  { %v5235_v52 = vadd.f32 1e-05, %v5233_v58 }
0x2128   :  { %v5232_v57 = vpop.xlane.xlu1 %5231 }
0x2129   :  { %6560 = vrsqrt.f32 %v5235_v52  ;;  %v5234_v7 = vmul.f32 0.03125, %v5232_v57 }
0x212b   :  { %v5236_v32 = vadd.f32 1e-05, %v5234_v7 }
0x212d   :  { %6562 = vrsqrt.f32 %v5236_v32 }
0x2136   :  { %v6561_v9 = vpop.eup %6560 }
0x2137   :  { %v5239_v12 = vmul.f32 %v6561_v9, %v5223_v27 }
0x2139   :  { %v5245_v55 = vmul.f32 %v5244_v61, %v5239_v12 }
0x213a   :  { %v6563_v11 = vpop.eup %6562 }
0x213b   :  { %v5251_v34 = vadd.f32 %v5250_v62, %v5245_v55  ;;  %v5240_v20 = vmul.f32 %v6563_v11, %v5224_v51 }
0x213d   :  { %v5254_v15 = vsel %vm103_vm1, %v5251_v34, 0.0  ;;  %v5246_v47 = vmul.f32 %v5244_v61, %v5240_v20 }
0x213e   :  { %5255 = vadd.xlane.f32.xlu0 %v5254_v15 }
0x213f   :  { %v5252_v36 = vadd.f32 %v5250_v62, %v5246_v47 }
0x2141   :  { %v5257_v29 = vsel %vm103_vm1, %v5252_v36, 0.0 }
0x2142   :  { %5258 = vadd.xlane.f32.xlu1 %v5257_v29 }
0x21c7   :  { %v5256_v44 = vpop.xlane.xlu0 %5255 }
0x21c8   :  { %v5260_v33 = vmul.f32 0.03125, %v5256_v44 }
0x21ca   :  { %v5262_v28 = vsub.f32 %v5251_v34, %v5260_v33 }
0x21cb   :  { %v5259_v17 = vpop.xlane.xlu1 %5258 }
0x21cc   :  { %v5261_v2 = vmul.f32 0.03125, %v5259_v17  ;;  %v5264_v53 = vmul.f32 %v5262_v28, %v5262_v28 }
0x21ce   :  { %v5263_v35 = vsub.f32 %v5252_v36, %v5261_v2  ;;  %v5266_v41 = vsel %vm103_vm1, %v5264_v53, 0.0 }
0x21cf   :  { %5267 = vadd.xlane.f32.xlu0 %v5266_v41 }
0x21d0   :  { %v5265_v42 = vmul.f32 %v5263_v35, %v5263_v35 }
0x21d2   :  { %v5269_v26 = vsel %vm103_vm1, %v5265_v42, 0.0 }
0x21d3   :  { %5270 = vadd.xlane.f32.xlu1 %v5269_v26 }
0x2258   :  { %v5268_v22 = vpop.xlane.xlu0 %5267 }
0x2259   :  { %v5272_v31 = vmul.f32 0.03125, %v5268_v22 }
0x225b   :  { %v5274_v38 = vadd.f32 1e-05, %v5272_v31 }
0x225c   :  { %v5271_v24 = vpop.xlane.xlu1 %5270 }
0x225d   :  { %6564 = vrsqrt.f32 %v5274_v38  ;;  %v5273_v10 = vmul.f32 0.03125, %v5271_v24 }
0x225f   :  { %v5275_v40 = vadd.f32 1e-05, %v5273_v10 }
0x2261   :  { %6566 = vrsqrt.f32 %v5275_v40 }
0x226a   :  { %v6565_v48 = vpop.eup %6564 }
0x226b   :  { %v5278_v63 = vmul.f32 %v6565_v48, %v5262_v28 }
0x226d   :  { %v5284_v46 = vmul.f32 %v5283_v5, %v5278_v63 }
0x226e   :  { %v6567_v1 = vpop.eup %6566 }
0x226f   :  { %v5290_v50 = vadd.f32 %v5289_v60, %v5284_v46  ;;  %v5279_v3 = vmul.f32 %v6567_v1, %v5263_v35 }
0x2271   :  { %5292 = vst.msk [vmem:[%s7873_s8] sm:$0xff] %vm103_vm1, %v5290_v50  ;;  %v5285_v19 = vmul.f32 %v5283_v5, %v5279_v3 }
0x2273   :  { %v5291_v30 = vadd.f32 %v5289_v60, %v5285_v19 }
0x2275   :  { %5293 = vst.msk [vmem:[%s7873_s8 + $0x8] sm:$0xff] %vm103_vm1, %v5291_v30 }

</bundles_post_ra>
